<compile_context>
chip_gen: v7x
topology: tpu7x:2x2x1
jax: 0.10.0
libtpu: 0.0.40
codegen_flags: <defaults>
</compile_context>

<pallas_src>
import jax
import jax.numpy as jnp
from jax import lax
from jax.experimental import pallas as pl
from jax.experimental.pallas import tpu as pltpu

_SQRT1_2 = 0.7071067811865476


def _gelu_erf(x):
    # PyTorch nn.GELU() default: 0.5*x*(1+erf(x/sqrt(2))).
    # erf via Abramowitz & Stegun 7.1.26 (|err| <= 1.5e-7).  Exact divide —
    # the approximate reciprocal previously used here failed the tolerance.
    a1, a2, a3, a4, a5 = (0.254829592, -0.284496736, 1.421413741,
                          -1.453152027, 1.061405429)
    p = 0.3275911
    z = x * _SQRT1_2
    sgn = jnp.where(z >= 0.0, 1.0, -1.0)
    az = jnp.abs(z)
    t = 1.0 / (1.0 + p * az)
    poly = ((((a5 * t + a4) * t + a3) * t + a2) * t + a1) * t
    erf = sgn * (1.0 - poly * jnp.exp(-az * az))
    return 0.5 * x * (1.0 + erf)


def _make_kernel(H, W, S, cp, N1, N3p, NB, NC):
    """Per-batch-element kernel body.

    Flat layout: image position (i, j) lives at lane i*S + j of a zero-padded
    frame, so a conv tap (dy, dx) is a plain lane slice at offset dy*S + dx.
    All taps of a conv are stacked on sublanes into one RHS and contracted by
    a single fused-K MXU matmul.
    """
    inv_hw = 1.0 / float(H * W)
    taps3 = [(dy, dx) for dy in range(3) for dx in range(3)]
    taps7 = [(sy, sx) for sy in range(7) for sx in range(7)]

    def kernel(x_ref, mask_ref, w1_ref, b1_ref, g1_ref, be1_ref,
               w2_ref, b2_ref, wt_ref, bup_ref, o_ref,
               bufB, bufC, rhs3, rhs7):
        f32 = jnp.float32
        m = mask_ref[...]                                   # (1, N1) valid cols

        # ---- conv1 (3x3, pad 1): stack 9 shifted taps on sublanes, ONE dot --
        for t, (dy, dx) in enumerate(taps3):
            rhs3[pl.ds(t * cp, cp), :] = x_ref[0, :, pl.ds(dy * S + dx, N1)]
        y1 = jnp.dot(w1_ref[...], rhs3[...],
                     preferred_element_type=f32) + b1_ref[...]

        # ---- InstanceNorm2d(affine, eps=1e-5): masked two-pass stats --------
        mu = jnp.sum(y1 * m, axis=1, keepdims=True) * inv_hw       # (cp, 1)
        d = (y1 - mu) * m
        var = jnp.sum(d * d, axis=1, keepdims=True) * inv_hw
        scale = g1_ref[...] * lax.rsqrt(var + 1e-5)
        shift = be1_ref[...] - mu * scale
        h1 = _gelu_erf(y1 * scale + shift) * m              # pads/garbage -> 0

        # ---- conv2 (3x3, pad 1): zero only the frame borders, re-embed ------
        bufB[:, pl.ds(0, S + 1)] = jnp.zeros((cp, S + 1), f32)
        bufB[:, pl.ds(S + 1 + N1, NB - (S + 1 + N1))] = jnp.zeros(
            (cp, NB - (S + 1 + N1)), f32)
        bufB[:, pl.ds(S + 1, N1)] = h1
        for t, (dy, dx) in enumerate(taps3):
            rhs3[pl.ds(t * cp, cp), :] = bufB[:, pl.ds(dy * S + dx, N1)]
        y2 = (jnp.dot(w2_ref[...], rhs3[...],
                      preferred_element_type=f32) + b2_ref[...]) * m

        # ---- ConvTranspose2d(k=7, s=1, p=0) as correlation with the flipped,
        #      channel-swapped kernel over a pad-6 frame: 49 taps, ONE dot ----
        bufC[:, pl.ds(0, 6 * S + 6)] = jnp.zeros((cp, 6 * S + 6), f32)
        bufC[:, pl.ds(6 * S + 6 + N1, NC - (6 * S + 6 + N1))] = jnp.zeros(
            (cp, NC - (6 * S + 6 + N1)), f32)
        bufC[:, pl.ds(6 * S + 6, N1)] = y2
        for t, (sy, sx) in enumerate(taps7):
            rhs7[pl.ds(t * cp, cp), :] = bufC[:, pl.ds(sy * S + sx, N3p)]
        o_ref[0] = jnp.dot(wt_ref[...], rhs7[...],
                           preferred_element_type=f32) + bup_ref[...]

    return kernel


def _prep_params(params, cp):
    """Lane-dense, pre-concatenated matmul LHS tiles (zero padded to cp)."""
    w1, b1, g1, be1, w2, b2, wup, bup = params
    f32 = jnp.float32

    def taps_to_lhs(w):
        # (O, I, kh, kw) -> (cp, kh*kw*cp); tap t occupies columns
        # [t*cp, (t+1)*cp), matching the sublane-stacked RHS in the kernel.
        O, I, kh, kw = w.shape
        t = jnp.transpose(w, (2, 3, 0, 1)).reshape(kh * kw, O, I).astype(f32)
        full = jnp.zeros((kh * kw, cp, cp), f32).at[:, :O, :I].set(t)
        return jnp.transpose(full, (1, 0, 2)).reshape(cp, kh * kw * cp)

    def colvec(v):
        c = v.shape[0]
        return jnp.zeros((cp, 1), f32).at[:c, 0].set(v.astype(f32))

    # ConvTranspose2d(k, s=1, p=0) == correlation with the spatially flipped,
    # (in,out)-swapped kernel over an input zero-padded by k-1.
    wt_conv = jnp.transpose(jnp.flip(wup, axis=(2, 3)), (1, 0, 2, 3))
    return (taps_to_lhs(w1), colvec(b1), colvec(g1), colvec(be1),
            taps_to_lhs(w2), colvec(b2), taps_to_lhs(wt_conv), colvec(bup))


@jax.jit
def perfect_segmentation_head2d(x, params):
    """Pallas forward pass. x: (B, Cin, H, W) f32. Returns (B, Cout, H+6, W+6)."""
    w1, b1, g1, be1, w2, b2, wup, bup = params
    B, Cin, H, W = x.shape
    C1, Cout = w1.shape[0], w2.shape[0]
    Ho, Wo = H + 6, W + 6

    S = W + 12                                  # flat row stride (widest frame)
    cp = 8 * ((max(Cin, C1, Cout) + 7) // 8)    # channels padded to sublane tile
    N1 = H * S                                  # flat conv1/conv2 output length
    N3 = Ho * S                                 # flat convT output length
    N3p = 128 * ((N3 + 127) // 128)             # lane-padded output slab width
    NB = (H + 3) * S                            # pad-1 frame (+ spare row)
    NC = 6 * S + 6 + N3p                        # pad-6 frame sized for padded taps

    # Lane-dense input: zero-embed each (H, W) plane at offset (1, 1) of an
    # (H+3, S) frame and flatten.  Pure layout plumbing in the wrapper.
    xp = jnp.pad(x.astype(jnp.float32),
                 ((0, 0), (0, cp - Cin), (1, 2), (1, S - W - 1)))
    xp = xp.reshape(B, cp, NB)

    # 0/1 mask of valid columns (j < W) in the flat stride-S layout.
    mask = ((jnp.arange(N1, dtype=jnp.int32) % S) < W).astype(jnp.float32)
    mask = mask.reshape(1, N1)
    # TODO(synk): mask could be built in-kernel with broadcasted_iota; kept as
    # a tiny input to avoid relying on vector integer-mod lowering.

    w1t, b1p, g1p, be1p, w2t, b2p, wtt, bupp = _prep_params(params, cp)

    kernel = _make_kernel(H, W, S, cp, N1, N3p, NB, NC)
    rep2 = lambda b: (0, 0)

    out = pl.pallas_call(
        kernel,
        out_shape=jax.ShapeDtypeStruct((B, cp, N3p), jnp.float32),
        grid_spec=pltpu.PrefetchScalarGridSpec(
            num_scalar_prefetch=0,
            grid=(B,),
            in_specs=[
                pl.BlockSpec((1, cp, NB), lambda b: (b, 0, 0)),   # framed input
                pl.BlockSpec((1, N1), rep2),                      # valid-col mask
                pl.BlockSpec((cp, 9 * cp), rep2),                 # conv1 stacked LHS
                pl.BlockSpec((cp, 1), rep2),                      # b1
                pl.BlockSpec((cp, 1), rep2),                      # gamma1
                pl.BlockSpec((cp, 1), rep2),                      # beta1
                pl.BlockSpec((cp, 9 * cp), rep2),                 # conv2 stacked LHS
                pl.BlockSpec((cp, 1), rep2),                      # b2
                pl.BlockSpec((cp, 49 * cp), rep2),                # convT stacked LHS
                pl.BlockSpec((cp, 1), rep2),                      # b_up
            ],
            out_specs=pl.BlockSpec((1, cp, N3p), lambda b: (b, 0, 0)),
            scratch_shapes=[pltpu.VMEM((cp, NB), jnp.float32),       # pad-1 frame
                            pltpu.VMEM((cp, NC), jnp.float32),       # pad-6 frame
                            pltpu.VMEM((9 * cp, N1), jnp.float32),   # stacked RHS (3x3)
                            pltpu.VMEM((49 * cp, N3p), jnp.float32)],  # stacked RHS (7x7)
        ),
        # Batch elements are independent: "parallel" lets v7x's two
        # TensorCores each take one; harmless on single-TC v5e/v6e.
        compiler_params=pltpu.CompilerParams(
            dimension_semantics=("parallel",)),
    )(xp, mask, w1t, b1p, g1p, be1p, w2t, b2p, wtt, bupp)

    # Lane-dense output slab -> NCHW; pure layout plumbing.
    return out[:, :Cout, :N3].reshape(B, Cout, Ho, S)[:, :, :, :Wo]


def reference_forward(x, params):
    """Pure-JAX reference replicating the PyTorch module semantics (f32)."""
    w1, b1, g1, be1, w2, b2, wup, bup = params
    dn = ('NCHW', 'OIHW', 'NCHW')
    hi = lax.Precision.HIGHEST
    h = lax.conv_general_dilated(x, w1, (1, 1), ((1, 1), (1, 1)),
                                 dimension_numbers=dn, precision=hi)
    h = h + b1[None, :, None, None]
    mu = jnp.mean(h, axis=(2, 3), keepdims=True)
    var = jnp.mean((h - mu) ** 2, axis=(2, 3), keepdims=True)
    h = (h - mu) * lax.rsqrt(var + 1e-5)
    h = h * g1[None, :, None, None] + be1[None, :, None, None]
    h = 0.5 * h * (1.0 + jax.scipy.special.erf(h / jnp.sqrt(2.0)))
    h = lax.conv_general_dilated(h, w2, (1, 1), ((1, 1), (1, 1)),
                                 dimension_numbers=dn, precision=hi)
    h = h + b2[None, :, None, None]
    wc = jnp.transpose(jnp.flip(wup, axis=(2, 3)), (1, 0, 2, 3))
    y = lax.conv_general_dilated(h, wc, (1, 1), ((6, 6), (6, 6)),
                                 dimension_numbers=dn, precision=hi)
    return y + bup[None, :, None, None]


if __name__ == "__main__":
    B, Cin, H, W = 2, 4, 16, 16
    Cout = 3
    C1 = Cin // 2

    key = jax.random.PRNGKey(0)
    ks = jax.random.split(key, 9)
    x = jax.random.normal(ks[0], (B, Cin, H, W), jnp.float32)
    # deterministic synthetic parameters (shapes follow the PyTorch module)
    w1 = 0.2 * jax.random.normal(ks[1], (C1, Cin, 3, 3), jnp.float32)
    b1 = 0.1 * jax.random.normal(ks[2], (C1,), jnp.float32)
    g1 = 1.0 + 0.1 * jax.random.normal(ks[3], (C1,), jnp.float32)
    be1 = 0.1 * jax.random.normal(ks[4], (C1,), jnp.float32)
    w2 = 0.2 * jax.random.normal(ks[5], (Cout, C1, 3, 3), jnp.float32)
    b2 = 0.1 * jax.random.normal(ks[6], (Cout,), jnp.float32)
    wup = 0.1 * jax.random.normal(ks[7], (Cout, Cout, 7, 7), jnp.float32)
    bup = 0.1 * jax.random.normal(ks[8], (Cout,), jnp.float32)
    params = (w1, b1, g1, be1, w2, b2, wup, bup)

    out = jax.block_until_ready(perfect_segmentation_head2d(x, params))
    ref = jax.block_until_ready(reference_forward(x, params))

    assert out.shape == (B, Cout, H + 6, W + 6), out.shape
    err = float(jnp.max(jnp.abs(out - ref)))
    # Exact-divide erf + f32 matmuls: expected error ~1e-5; 2e-3 gives margin.
    if err > 2e-3:
        raise AssertionError(f"kernel/reference mismatch, max abs err = {err}")
    print("KERNEL_OK")
</pallas_src>

<mosaic_0001>
module attributes {stable_mosaic.version = 11 : i64} {
  func.func @kernel(%arg0: i32, %arg1: memref<1x8x532xf32, #tpu.memory_space<vmem>>, %arg2: memref<1x448xf32, #tpu.memory_space<vmem>>, %arg3: memref<8x72xf32, #tpu.memory_space<vmem>>, %arg4: memref<8x1xf32, #tpu.memory_space<vmem>>, %arg5: memref<8x1xf32, #tpu.memory_space<vmem>>, %arg6: memref<8x1xf32, #tpu.memory_space<vmem>>, %arg7: memref<8x72xf32, #tpu.memory_space<vmem>>, %arg8: memref<8x1xf32, #tpu.memory_space<vmem>>, %arg9: memref<8x392xf32, #tpu.memory_space<vmem>>, %arg10: memref<8x1xf32, #tpu.memory_space<vmem>>, %arg11: memref<1x8x640xf32, #tpu.memory_space<vmem>>, %arg12: memref<8x532xf32, #tpu.memory_space<vmem>>, %arg13: memref<8x814xf32, #tpu.memory_space<vmem>>, %arg14: memref<72x448xf32, #tpu.memory_space<vmem>>, %arg15: memref<392x640xf32, #tpu.memory_space<vmem>>) attributes {dimension_semantics = [#tpu.dimension_semantics<parallel>], iteration_bounds = array<i64: 2>, scalar_prefetch = 0 : i64, scratch_operands = 4 : i64, tpu.core_type = #tpu.core_type<tc>, window_params = [{transform_indices = @transform_0, window_bounds = array<i64: 1, 8, 532>}, {pipeline_mode = #tpu.pipeline_mode<synchronous>, transform_indices = @transform_1, window_bounds = array<i64: 1, 448>}, {pipeline_mode = #tpu.pipeline_mode<synchronous>, transform_indices = @transform_2, window_bounds = array<i64: 8, 72>}, {pipeline_mode = #tpu.pipeline_mode<synchronous>, transform_indices = @transform_3, window_bounds = array<i64: 8, 1>}, {pipeline_mode = #tpu.pipeline_mode<synchronous>, transform_indices = @transform_4, window_bounds = array<i64: 8, 1>}, {pipeline_mode = #tpu.pipeline_mode<synchronous>, transform_indices = @transform_5, window_bounds = array<i64: 8, 1>}, {pipeline_mode = #tpu.pipeline_mode<synchronous>, transform_indices = @transform_6, window_bounds = array<i64: 8, 72>}, {pipeline_mode = #tpu.pipeline_mode<synchronous>, transform_indices = @transform_7, window_bounds = array<i64: 8, 1>}, {pipeline_mode = #tpu.pipeline_mode<synchronous>, transform_indices = @transform_8, window_bounds = array<i64: 8, 392>}, {pipeline_mode = #tpu.pipeline_mode<synchronous>, transform_indices = @transform_9, window_bounds = array<i64: 8, 1>}, {transform_indices = @transform_10, window_bounds = array<i64: 1, 8, 640>}]} {
    %c0 = arith.constant 0 : index
    %c0_0 = arith.constant 0 : index
    %0 = vector.load %arg2[%c0, %c0_0] : memref<1x448xf32, #tpu.memory_space<vmem>>, vector<1x448xf32>
    %c0_1 = arith.constant 0 : index
    %c0_2 = arith.constant 0 : index
    %c0_3 = arith.constant 0 : index
    %1 = vector.load %arg1[%c0_1, %c0_2, %c0_3] : memref<1x8x532xf32, #tpu.memory_space<vmem>>, vector<1x8x448xf32>
    %2 = vector.shape_cast %1 : vector<1x8x448xf32> to vector<8x448xf32>
    %c0_4 = arith.constant 0 : index
    %c0_5 = arith.constant 0 : index
    %3 = vector.load %arg14[%c0_4, %c0_5] : memref<72x448xf32, #tpu.memory_space<vmem>>, vector<8x448xf32>
    tpu.vector_store %arg14[%c0_4, %c0_5], %2 {strides = array<i32>} : memref<72x448xf32, #tpu.memory_space<vmem>>, vector<8x448xf32>,
    %c0_6 = arith.constant 0 : index
    %c0_7 = arith.constant 0 : index
    %c1 = arith.constant 1 : index
    %4 = vector.load %arg1[%c0_6, %c0_7, %c1] : memref<1x8x532xf32, #tpu.memory_space<vmem>>, vector<1x8x448xf32>
    %5 = vector.shape_cast %4 : vector<1x8x448xf32> to vector<8x448xf32>
    %c8 = arith.constant 8 : index
    %c0_8 = arith.constant 0 : index
    %6 = vector.load %arg14[%c8, %c0_8] : memref<72x448xf32, #tpu.memory_space<vmem>>, vector<8x448xf32>
    tpu.vector_store %arg14[%c8, %c0_8], %5 {strides = array<i32>} : memref<72x448xf32, #tpu.memory_space<vmem>>, vector<8x448xf32>,
    %c0_9 = arith.constant 0 : index
    %c0_10 = arith.constant 0 : index
    %c2 = arith.constant 2 : index
    %7 = vector.load %arg1[%c0_9, %c0_10, %c2] : memref<1x8x532xf32, #tpu.memory_space<vmem>>, vector<1x8x448xf32>
    %8 = vector.shape_cast %7 : vector<1x8x448xf32> to vector<8x448xf32>
    %c16 = arith.constant 16 : index
    %c0_11 = arith.constant 0 : index
    %9 = vector.load %arg14[%c16, %c0_11] : memref<72x448xf32, #tpu.memory_space<vmem>>, vector<8x448xf32>
    tpu.vector_store %arg14[%c16, %c0_11], %8 {strides = array<i32>} : memref<72x448xf32, #tpu.memory_space<vmem>>, vector<8x448xf32>,
    %c0_12 = arith.constant 0 : index
    %c0_13 = arith.constant 0 : index
    %c28 = arith.constant 28 : index
    %10 = vector.load %arg1[%c0_12, %c0_13, %c28] : memref<1x8x532xf32, #tpu.memory_space<vmem>>, vector<1x8x448xf32>
    %11 = vector.shape_cast %10 : vector<1x8x448xf32> to vector<8x448xf32>
    %c24 = arith.constant 24 : index
    %c0_14 = arith.constant 0 : index
    %12 = vector.load %arg14[%c24, %c0_14] : memref<72x448xf32, #tpu.memory_space<vmem>>, vector<8x448xf32>
    tpu.vector_store %arg14[%c24, %c0_14], %11 {strides = array<i32>} : memref<72x448xf32, #tpu.memory_space<vmem>>, vector<8x448xf32>,
    %c0_15 = arith.constant 0 : index
    %c0_16 = arith.constant 0 : index
    %c29 = arith.constant 29 : index
    %13 = vector.load %arg1[%c0_15, %c0_16, %c29] : memref<1x8x532xf32, #tpu.memory_space<vmem>>, vector<1x8x448xf32>
    %14 = vector.shape_cast %13 : vector<1x8x448xf32> to vector<8x448xf32>
    %c32 = arith.constant 32 : index
    %c0_17 = arith.constant 0 : index
    %15 = vector.load %arg14[%c32, %c0_17] : memref<72x448xf32, #tpu.memory_space<vmem>>, vector<8x448xf32>
    tpu.vector_store %arg14[%c32, %c0_17], %14 {strides = array<i32>} : memref<72x448xf32, #tpu.memory_space<vmem>>, vector<8x448xf32>,
    %c0_18 = arith.constant 0 : index
    %c0_19 = arith.constant 0 : index
    %c30 = arith.constant 30 : index
    %16 = vector.load %arg1[%c0_18, %c0_19, %c30] : memref<1x8x532xf32, #tpu.memory_space<vmem>>, vector<1x8x448xf32>
    %17 = vector.shape_cast %16 : vector<1x8x448xf32> to vector<8x448xf32>
    %c40 = arith.constant 40 : index
    %c0_20 = arith.constant 0 : index
    %18 = vector.load %arg14[%c40, %c0_20] : memref<72x448xf32, #tpu.memory_space<vmem>>, vector<8x448xf32>
    tpu.vector_store %arg14[%c40, %c0_20], %17 {strides = array<i32>} : memref<72x448xf32, #tpu.memory_space<vmem>>, vector<8x448xf32>,
    %c0_21 = arith.constant 0 : index
    %c0_22 = arith.constant 0 : index
    %c56 = arith.constant 56 : index
    %19 = vector.load %arg1[%c0_21, %c0_22, %c56] : memref<1x8x532xf32, #tpu.memory_space<vmem>>, vector<1x8x448xf32>
    %20 = vector.shape_cast %19 : vector<1x8x448xf32> to vector<8x448xf32>
    %c48 = arith.constant 48 : index
    %c0_23 = arith.constant 0 : index
    %21 = vector.load %arg14[%c48, %c0_23] : memref<72x448xf32, #tpu.memory_space<vmem>>, vector<8x448xf32>
    tpu.vector_store %arg14[%c48, %c0_23], %20 {strides = array<i32>} : memref<72x448xf32, #tpu.memory_space<vmem>>, vector<8x448xf32>,
    %c0_24 = arith.constant 0 : index
    %c0_25 = arith.constant 0 : index
    %c57 = arith.constant 57 : index
    %22 = vector.load %arg1[%c0_24, %c0_25, %c57] : memref<1x8x532xf32, #tpu.memory_space<vmem>>, vector<1x8x448xf32>
    %23 = vector.shape_cast %22 : vector<1x8x448xf32> to vector<8x448xf32>
    %c56_26 = arith.constant 56 : index
    %c0_27 = arith.constant 0 : index
    %24 = vector.load %arg14[%c56_26, %c0_27] : memref<72x448xf32, #tpu.memory_space<vmem>>, vector<8x448xf32>
    tpu.vector_store %arg14[%c56_26, %c0_27], %23 {strides = array<i32>} : memref<72x448xf32, #tpu.memory_space<vmem>>, vector<8x448xf32>,
    %c0_28 = arith.constant 0 : index
    %c0_29 = arith.constant 0 : index
    %c58 = arith.constant 58 : index
    %25 = vector.load %arg1[%c0_28, %c0_29, %c58] : memref<1x8x532xf32, #tpu.memory_space<vmem>>, vector<1x8x448xf32>
    %26 = vector.shape_cast %25 : vector<1x8x448xf32> to vector<8x448xf32>
    %c64 = arith.constant 64 : index
    %c0_30 = arith.constant 0 : index
    %27 = vector.load %arg14[%c64, %c0_30] : memref<72x448xf32, #tpu.memory_space<vmem>>, vector<8x448xf32>
    tpu.vector_store %arg14[%c64, %c0_30], %26 {strides = array<i32>} : memref<72x448xf32, #tpu.memory_space<vmem>>, vector<8x448xf32>,
    %c0_31 = arith.constant 0 : index
    %c0_32 = arith.constant 0 : index
    %28 = vector.load %arg3[%c0_31, %c0_32] : memref<8x72xf32, #tpu.memory_space<vmem>>, vector<8x72xf32>
    %c0_33 = arith.constant 0 : index
    %c0_34 = arith.constant 0 : index
    %29 = vector.load %arg14[%c0_33, %c0_34] : memref<72x448xf32, #tpu.memory_space<vmem>>, vector<72x448xf32>
    %cst = arith.constant dense<0.000000e+00> : vector<8x448xf32>
    %30 = tpu.matmul %28, %29, %cst {dimension_numbers = #tpu.dot_dimension_numbers<[1], [0], [0], [1], [0, 0, 1, 1], [], []>} : vector<8x72xf32>, vector<72x448xf32>, vector<8x448xf32> -> vector<8x448xf32>
    %c0_35 = arith.constant 0 : index
    %c0_36 = arith.constant 0 : index
    %31 = vector.load %arg4[%c0_35, %c0_36] : memref<8x1xf32, #tpu.memory_space<vmem>>, vector<8x1xf32>
    %32 = vector.broadcast %31 : vector<8x1xf32> to vector<8x448xf32>
    %33 = arith.addf %30, %32 : vector<8x448xf32>
    %34 = vector.broadcast %0 : vector<1x448xf32> to vector<8x448xf32>
    %35 = arith.mulf %33, %34 : vector<8x448xf32>
    %cst_37 = arith.constant dense<0.000000e+00> : vector<8xf32>
    %36 = vector.multi_reduction <add>, %35, %cst_37 [1] : vector<8x448xf32> to vector<8xf32>
    %37 = vector.shape_cast %36 : vector<8xf32> to vector<8x1xf32>
    %cst_38 = arith.constant 3.906250e-03 : f32
    %38 = vector.broadcast %cst_38 : f32 to vector<8x1xf32>
    %39 = arith.mulf %37, %38 : vector<8x1xf32>
    %40 = vector.broadcast %39 : vector<8x1xf32> to vector<8x448xf32>
    %41 = arith.subf %33, %40 : vector<8x448xf32>
    %42 = vector.broadcast %0 : vector<1x448xf32> to vector<8x448xf32>
    %43 = arith.mulf %41, %42 : vector<8x448xf32>
    %44 = arith.mulf %43, %43 : vector<8x448xf32>
    %cst_39 = arith.constant dense<0.000000e+00> : vector<8xf32>
    %45 = vector.multi_reduction <add>, %44, %cst_39 [1] : vector<8x448xf32> to vector<8xf32>
    %46 = vector.shape_cast %45 : vector<8xf32> to vector<8x1xf32>
    %cst_40 = arith.constant 3.906250e-03 : f32
    %47 = vector.broadcast %cst_40 : f32 to vector<8x1xf32>
    %48 = arith.mulf %46, %47 : vector<8x1xf32>
    %c0_41 = arith.constant 0 : index
    %c0_42 = arith.constant 0 : index
    %49 = vector.load %arg5[%c0_41, %c0_42] : memref<8x1xf32, #tpu.memory_space<vmem>>, vector<8x1xf32>
    %cst_43 = arith.constant 9.99999974E-6 : f32
    %50 = vector.broadcast %cst_43 : f32 to vector<8x1xf32>
    %51 = arith.addf %48, %50 : vector<8x1xf32>
    %52 = math.rsqrt %51 : vector<8x1xf32>
    %53 = arith.mulf %49, %52 : vector<8x1xf32>
    %c0_44 = arith.constant 0 : index
    %c0_45 = arith.constant 0 : index
    %54 = vector.load %arg6[%c0_44, %c0_45] : memref<8x1xf32, #tpu.memory_space<vmem>>, vector<8x1xf32>
    %55 = arith.mulf %39, %53 : vector<8x1xf32>
    %56 = arith.subf %54, %55 : vector<8x1xf32>
    %57 = vector.broadcast %53 : vector<8x1xf32> to vector<8x448xf32>
    %58 = arith.mulf %33, %57 : vector<8x448xf32>
    %59 = vector.broadcast %56 : vector<8x1xf32> to vector<8x448xf32>
    %60 = arith.addf %58, %59 : vector<8x448xf32>
    %cst_46 = arith.constant 0.707106769 : f32
    %61 = vector.broadcast %cst_46 : f32 to vector<8x448xf32>
    %62 = arith.mulf %60, %61 : vector<8x448xf32>
    %cst_47 = arith.constant 0.000000e+00 : f32
    %63 = vector.broadcast %cst_47 : f32 to vector<8x448xf32>
    %64 = arith.cmpf oge, %62, %63 : vector<8x448xf32>
    %cst_48 = arith.constant 1.000000e+00 : f32
    %cst_49 = arith.constant -1.000000e+00 : f32
    %65 = vector.broadcast %cst_48 : f32 to vector<8x448xf32>
    %66 = vector.broadcast %cst_49 : f32 to vector<8x448xf32>
    %67 = arith.select %64, %65, %66 : vector<8x448xi1>, vector<8x448xf32>
    %68 = math.absf %62 : vector<8x448xf32>
    %cst_50 = arith.constant 0.327591091 : f32
    %69 = vector.broadcast %cst_50 : f32 to vector<8x448xf32>
    %70 = arith.mulf %69, %68 : vector<8x448xf32>
    %cst_51 = arith.constant 1.000000e+00 : f32
    %71 = vector.broadcast %cst_51 : f32 to vector<8x448xf32>
    %72 = arith.addf %71, %70 : vector<8x448xf32>
    %cst_52 = arith.constant 1.000000e+00 : f32
    %73 = vector.broadcast %cst_52 : f32 to vector<8x448xf32>
    %74 = arith.divf %73, %72 : vector<8x448xf32>
    %cst_53 = arith.constant 1.06140542 : f32
    %75 = vector.broadcast %cst_53 : f32 to vector<8x448xf32>
    %76 = arith.mulf %75, %74 : vector<8x448xf32>
    %cst_54 = arith.constant -1.45315206 : f32
    %77 = vector.broadcast %cst_54 : f32 to vector<8x448xf32>
    %78 = arith.addf %76, %77 : vector<8x448xf32>
    %79 = arith.mulf %78, %74 : vector<8x448xf32>
    %cst_55 = arith.constant 1.42141378 : f32
    %80 = vector.broadcast %cst_55 : f32 to vector<8x448xf32>
    %81 = arith.addf %79, %80 : vector<8x448xf32>
    %82 = arith.mulf %81, %74 : vector<8x448xf32>
    %cst_56 = arith.constant -0.284496725 : f32
    %83 = vector.broadcast %cst_56 : f32 to vector<8x448xf32>
    %84 = arith.addf %82, %83 : vector<8x448xf32>
    %85 = arith.mulf %84, %74 : vector<8x448xf32>
    %cst_57 = arith.constant 0.254829586 : f32
    %86 = vector.broadcast %cst_57 : f32 to vector<8x448xf32>
    %87 = arith.addf %85, %86 : vector<8x448xf32>
    %88 = arith.mulf %87, %74 : vector<8x448xf32>
    %cst_58 = arith.constant 0.000000e+00 : f32
    %89 = vector.broadcast %cst_58 : f32 to vector<8x448xf32>
    %90 = arith.subf %89, %68 : vector<8x448xf32>
    %91 = arith.mulf %90, %68 : vector<8x448xf32>
    %92 = math.exp %91 : vector<8x448xf32>
    %93 = arith.mulf %88, %92 : vector<8x448xf32>
    %cst_59 = arith.constant 1.000000e+00 : f32
    %94 = vector.broadcast %cst_59 : f32 to vector<8x448xf32>
    %95 = arith.subf %94, %93 : vector<8x448xf32>
    %96 = arith.mulf %67, %95 : vector<8x448xf32>
    %cst_60 = arith.constant 5.000000e-01 : f32
    %97 = vector.broadcast %cst_60 : f32 to vector<8x448xf32>
    %98 = arith.mulf %97, %60 : vector<8x448xf32>
    %cst_61 = arith.constant 1.000000e+00 : f32
    %99 = vector.broadcast %cst_61 : f32 to vector<8x448xf32>
    %100 = arith.addf %99, %96 : vector<8x448xf32>
    %101 = arith.mulf %98, %100 : vector<8x448xf32>
    %102 = vector.broadcast %0 : vector<1x448xf32> to vector<8x448xf32>
    %103 = arith.mulf %101, %102 : vector<8x448xf32>
    %cst_62 = arith.constant 0.000000e+00 : f32
    %104 = vector.broadcast %cst_62 : f32 to vector<8x29xf32>
    %c0_63 = arith.constant 0 : index
    %c0_64 = arith.constant 0 : index
    %105 = vector.load %arg12[%c0_63, %c0_64] : memref<8x532xf32, #tpu.memory_space<vmem>>, vector<8x29xf32>
    tpu.vector_store %arg12[%c0_63, %c0_64], %104 {strides = array<i32>} : memref<8x532xf32, #tpu.memory_space<vmem>>, vector<8x29xf32>,
    %cst_65 = arith.constant 0.000000e+00 : f32
    %106 = vector.broadcast %cst_65 : f32 to vector<8x55xf32>
    %c0_66 = arith.constant 0 : index
    %c477 = arith.constant 477 : index
    %107 = vector.load %arg12[%c0_66, %c477] : memref<8x532xf32, #tpu.memory_space<vmem>>, vector<8x55xf32>
    tpu.vector_store %arg12[%c0_66, %c477], %106 {strides = array<i32>} : memref<8x532xf32, #tpu.memory_space<vmem>>, vector<8x55xf32>,
    %c0_67 = arith.constant 0 : index
    %c29_68 = arith.constant 29 : index
    %108 = vector.load %arg12[%c0_67, %c29_68] : memref<8x532xf32, #tpu.memory_space<vmem>>, vector<8x448xf32>
    tpu.vector_store %arg12[%c0_67, %c29_68], %103 {strides = array<i32>} : memref<8x532xf32, #tpu.memory_space<vmem>>, vector<8x448xf32>,
    %c0_69 = arith.constant 0 : index
    %c0_70 = arith.constant 0 : index
    %109 = vector.load %arg12[%c0_69, %c0_70] : memref<8x532xf32, #tpu.memory_space<vmem>>, vector<8x448xf32>
    %c0_71 = arith.constant 0 : index
    %c0_72 = arith.constant 0 : index
    %110 = vector.load %arg14[%c0_71, %c0_72] : memref<72x448xf32, #tpu.memory_space<vmem>>, vector<8x448xf32>
    tpu.vector_store %arg14[%c0_71, %c0_72], %109 {strides = array<i32>} : memref<72x448xf32, #tpu.memory_space<vmem>>, vector<8x448xf32>,
    %c0_73 = arith.constant 0 : index
    %c1_74 = arith.constant 1 : index
    %111 = vector.load %arg12[%c0_73, %c1_74] : memref<8x532xf32, #tpu.memory_space<vmem>>, vector<8x448xf32>
    %c8_75 = arith.constant 8 : index
    %c0_76 = arith.constant 0 : index
    %112 = vector.load %arg14[%c8_75, %c0_76] : memref<72x448xf32, #tpu.memory_space<vmem>>, vector<8x448xf32>
    tpu.vector_store %arg14[%c8_75, %c0_76], %111 {strides = array<i32>} : memref<72x448xf32, #tpu.memory_space<vmem>>, vector<8x448xf32>,
    %c0_77 = arith.constant 0 : index
    %c2_78 = arith.constant 2 : index
    %113 = vector.load %arg12[%c0_77, %c2_78] : memref<8x532xf32, #tpu.memory_space<vmem>>, vector<8x448xf32>
    %c16_79 = arith.constant 16 : index
    %c0_80 = arith.constant 0 : index
    %114 = vector.load %arg14[%c16_79, %c0_80] : memref<72x448xf32, #tpu.memory_space<vmem>>, vector<8x448xf32>
    tpu.vector_store %arg14[%c16_79, %c0_80], %113 {strides = array<i32>} : memref<72x448xf32, #tpu.memory_space<vmem>>, vector<8x448xf32>,
    %c0_81 = arith.constant 0 : index
    %c28_82 = arith.constant 28 : index
    %115 = vector.load %arg12[%c0_81, %c28_82] : memref<8x532xf32, #tpu.memory_space<vmem>>, vector<8x448xf32>
    %c24_83 = arith.constant 24 : index
    %c0_84 = arith.constant 0 : index
    %116 = vector.load %arg14[%c24_83, %c0_84] : memref<72x448xf32, #tpu.memory_space<vmem>>, vector<8x448xf32>
    tpu.vector_store %arg14[%c24_83, %c0_84], %115 {strides = array<i32>} : memref<72x448xf32, #tpu.memory_space<vmem>>, vector<8x448xf32>,
    %c0_85 = arith.constant 0 : index
    %c29_86 = arith.constant 29 : index
    %117 = vector.load %arg12[%c0_85, %c29_86] : memref<8x532xf32, #tpu.memory_space<vmem>>, vector<8x448xf32>
    %c32_87 = arith.constant 32 : index
    %c0_88 = arith.constant 0 : index
    %118 = vector.load %arg14[%c32_87, %c0_88] : memref<72x448xf32, #tpu.memory_space<vmem>>, vector<8x448xf32>
    tpu.vector_store %arg14[%c32_87, %c0_88], %117 {strides = array<i32>} : memref<72x448xf32, #tpu.memory_space<vmem>>, vector<8x448xf32>,
    %c0_89 = arith.constant 0 : index
    %c30_90 = arith.constant 30 : index
    %119 = vector.load %arg12[%c0_89, %c30_90] : memref<8x532xf32, #tpu.memory_space<vmem>>, vector<8x448xf32>
    %c40_91 = arith.constant 40 : index
    %c0_92 = arith.constant 0 : index
    %120 = vector.load %arg14[%c40_91, %c0_92] : memref<72x448xf32, #tpu.memory_space<vmem>>, vector<8x448xf32>
    tpu.vector_store %arg14[%c40_91, %c0_92], %119 {strides = array<i32>} : memref<72x448xf32, #tpu.memory_space<vmem>>, vector<8x448xf32>,
    %c0_93 = arith.constant 0 : index
    %c56_94 = arith.constant 56 : index
    %121 = vector.load %arg12[%c0_93, %c56_94] : memref<8x532xf32, #tpu.memory_space<vmem>>, vector<8x448xf32>
    %c48_95 = arith.constant 48 : index
    %c0_96 = arith.constant 0 : index
    %122 = vector.load %arg14[%c48_95, %c0_96] : memref<72x448xf32, #tpu.memory_space<vmem>>, vector<8x448xf32>
    tpu.vector_store %arg14[%c48_95, %c0_96], %121 {strides = array<i32>} : memref<72x448xf32, #tpu.memory_space<vmem>>, vector<8x448xf32>,
    %c0_97 = arith.constant 0 : index
    %c57_98 = arith.constant 57 : index
    %123 = vector.load %arg12[%c0_97, %c57_98] : memref<8x532xf32, #tpu.memory_space<vmem>>, vector<8x448xf32>
    %c56_99 = arith.constant 56 : index
    %c0_100 = arith.constant 0 : index
    %124 = vector.load %arg14[%c56_99, %c0_100] : memref<72x448xf32, #tpu.memory_space<vmem>>, vector<8x448xf32>
    tpu.vector_store %arg14[%c56_99, %c0_100], %123 {strides = array<i32>} : memref<72x448xf32, #tpu.memory_space<vmem>>, vector<8x448xf32>,
    %c0_101 = arith.constant 0 : index
    %c58_102 = arith.constant 58 : index
    %125 = vector.load %arg12[%c0_101, %c58_102] : memref<8x532xf32, #tpu.memory_space<vmem>>, vector<8x448xf32>
    %c64_103 = arith.constant 64 : index
    %c0_104 = arith.constant 0 : index
    %126 = vector.load %arg14[%c64_103, %c0_104] : memref<72x448xf32, #tpu.memory_space<vmem>>, vector<8x448xf32>
    tpu.vector_store %arg14[%c64_103, %c0_104], %125 {strides = array<i32>} : memref<72x448xf32, #tpu.memory_space<vmem>>, vector<8x448xf32>,
    %c0_105 = arith.constant 0 : index
    %c0_106 = arith.constant 0 : index
    %127 = vector.load %arg7[%c0_105, %c0_106] : memref<8x72xf32, #tpu.memory_space<vmem>>, vector<8x72xf32>
    %c0_107 = arith.constant 0 : index
    %c0_108 = arith.constant 0 : index
    %128 = vector.load %arg14[%c0_107, %c0_108] : memref<72x448xf32, #tpu.memory_space<vmem>>, vector<72x448xf32>
    %cst_109 = arith.constant dense<0.000000e+00> : vector<8x448xf32>
    %129 = tpu.matmul %127, %128, %cst_109 {dimension_numbers = #tpu.dot_dimension_numbers<[1], [0], [0], [1], [0, 0, 1, 1], [], []>} : vector<8x72xf32>, vector<72x448xf32>, vector<8x448xf32> -> vector<8x448xf32>
    %c0_110 = arith.constant 0 : index
    %c0_111 = arith.constant 0 : index
    %130 = vector.load %arg8[%c0_110, %c0_111] : memref<8x1xf32, #tpu.memory_space<vmem>>, vector<8x1xf32>
    %131 = vector.broadcast %130 : vector<8x1xf32> to vector<8x448xf32>
    %132 = arith.addf %129, %131 : vector<8x448xf32>
    %133 = vector.broadcast %0 : vector<1x448xf32> to vector<8x448xf32>
    %134 = arith.mulf %132, %133 : vector<8x448xf32>
    %cst_112 = arith.constant 0.000000e+00 : f32
    %135 = vector.broadcast %cst_112 : f32 to vector<8x174xf32>
    %c0_113 = arith.constant 0 : index
    %c0_114 = arith.constant 0 : index
    %136 = vector.load %arg13[%c0_113, %c0_114] : memref<8x814xf32, #tpu.memory_space<vmem>>, vector<8x174xf32>
    tpu.vector_store %arg13[%c0_113, %c0_114], %135 {strides = array<i32>} : memref<8x814xf32, #tpu.memory_space<vmem>>, vector<8x174xf32>,
    %cst_115 = arith.constant 0.000000e+00 : f32
    %137 = vector.broadcast %cst_115 : f32 to vector<8x192xf32>
    %c0_116 = arith.constant 0 : index
    %c622 = arith.constant 622 : index
    %138 = vector.load %arg13[%c0_116, %c622] : memref<8x814xf32, #tpu.memory_space<vmem>>, vector<8x192xf32>
    tpu.vector_store %arg13[%c0_116, %c622], %137 {strides = array<i32>} : memref<8x814xf32, #tpu.memory_space<vmem>>, vector<8x192xf32>,
    %c0_117 = arith.constant 0 : index
    %c174 = arith.constant 174 : index
    %139 = vector.load %arg13[%c0_117, %c174] : memref<8x814xf32, #tpu.memory_space<vmem>>, vector<8x448xf32>
    tpu.vector_store %arg13[%c0_117, %c174], %134 {strides = array<i32>} : memref<8x814xf32, #tpu.memory_space<vmem>>, vector<8x448xf32>,
    %c0_118 = arith.constant 0 : index
    %c0_119 = arith.constant 0 : index
    %140 = vector.load %arg13[%c0_118, %c0_119] : memref<8x814xf32, #tpu.memory_space<vmem>>, vector<8x640xf32>
    %c0_120 = arith.constant 0 : index
    %c0_121 = arith.constant 0 : index
    %141 = vector.load %arg15[%c0_120, %c0_121] : memref<392x640xf32, #tpu.memory_space<vmem>>, vector<8x640xf32>
    tpu.vector_store %arg15[%c0_120, %c0_121], %140 {strides = array<i32>} : memref<392x640xf32, #tpu.memory_space<vmem>>, vector<8x640xf32>,
    %c0_122 = arith.constant 0 : index
    %c1_123 = arith.constant 1 : index
    %142 = vector.load %arg13[%c0_122, %c1_123] : memref<8x814xf32, #tpu.memory_space<vmem>>, vector<8x640xf32>
    %c8_124 = arith.constant 8 : index
    %c0_125 = arith.constant 0 : index
    %143 = vector.load %arg15[%c8_124, %c0_125] : memref<392x640xf32, #tpu.memory_space<vmem>>, vector<8x640xf32>
    tpu.vector_store %arg15[%c8_124, %c0_125], %142 {strides = array<i32>} : memref<392x640xf32, #tpu.memory_space<vmem>>, vector<8x640xf32>,
    %c0_126 = arith.constant 0 : index
    %c2_127 = arith.constant 2 : index
    %144 = vector.load %arg13[%c0_126, %c2_127] : memref<8x814xf32, #tpu.memory_space<vmem>>, vector<8x640xf32>
    %c16_128 = arith.constant 16 : index
    %c0_129 = arith.constant 0 : index
    %145 = vector.load %arg15[%c16_128, %c0_129] : memref<392x640xf32, #tpu.memory_space<vmem>>, vector<8x640xf32>
    tpu.vector_store %arg15[%c16_128, %c0_129], %144 {strides = array<i32>} : memref<392x640xf32, #tpu.memory_space<vmem>>, vector<8x640xf32>,
    %c0_130 = arith.constant 0 : index
    %c3 = arith.constant 3 : index
    %146 = vector.load %arg13[%c0_130, %c3] : memref<8x814xf32, #tpu.memory_space<vmem>>, vector<8x640xf32>
    %c24_131 = arith.constant 24 : index
    %c0_132 = arith.constant 0 : index
    %147 = vector.load %arg15[%c24_131, %c0_132] : memref<392x640xf32, #tpu.memory_space<vmem>>, vector<8x640xf32>
    tpu.vector_store %arg15[%c24_131, %c0_132], %146 {strides = array<i32>} : memref<392x640xf32, #tpu.memory_space<vmem>>, vector<8x640xf32>,
    %c0_133 = arith.constant 0 : index
    %c4 = arith.constant 4 : index
    %148 = vector.load %arg13[%c0_133, %c4] : memref<8x814xf32, #tpu.memory_space<vmem>>, vector<8x640xf32>
    %c32_134 = arith.constant 32 : index
    %c0_135 = arith.constant 0 : index
    %149 = vector.load %arg15[%c32_134, %c0_135] : memref<392x640xf32, #tpu.memory_space<vmem>>, vector<8x640xf32>
    tpu.vector_store %arg15[%c32_134, %c0_135], %148 {strides = array<i32>} : memref<392x640xf32, #tpu.memory_space<vmem>>, vector<8x640xf32>,
    %c0_136 = arith.constant 0 : index
    %c5 = arith.constant 5 : index
    %150 = vector.load %arg13[%c0_136, %c5] : memref<8x814xf32, #tpu.memory_space<vmem>>, vector<8x640xf32>
    %c40_137 = arith.constant 40 : index
    %c0_138 = arith.constant 0 : index
    %151 = vector.load %arg15[%c40_137, %c0_138] : memref<392x640xf32, #tpu.memory_space<vmem>>, vector<8x640xf32>
    tpu.vector_store %arg15[%c40_137, %c0_138], %150 {strides = array<i32>} : memref<392x640xf32, #tpu.memory_space<vmem>>, vector<8x640xf32>,
    %c0_139 = arith.constant 0 : index
    %c6 = arith.constant 6 : index
    %152 = vector.load %arg13[%c0_139, %c6] : memref<8x814xf32, #tpu.memory_space<vmem>>, vector<8x640xf32>
    %c48_140 = arith.constant 48 : index
    %c0_141 = arith.constant 0 : index
    %153 = vector.load %arg15[%c48_140, %c0_141] : memref<392x640xf32, #tpu.memory_space<vmem>>, vector<8x640xf32>
    tpu.vector_store %arg15[%c48_140, %c0_141], %152 {strides = array<i32>} : memref<392x640xf32, #tpu.memory_space<vmem>>, vector<8x640xf32>,
    %c0_142 = arith.constant 0 : index
    %c28_143 = arith.constant 28 : index
    %154 = vector.load %arg13[%c0_142, %c28_143] : memref<8x814xf32, #tpu.memory_space<vmem>>, vector<8x640xf32>
    %c56_144 = arith.constant 56 : index
    %c0_145 = arith.constant 0 : index
    %155 = vector.load %arg15[%c56_144, %c0_145] : memref<392x640xf32, #tpu.memory_space<vmem>>, vector<8x640xf32>
    tpu.vector_store %arg15[%c56_144, %c0_145], %154 {strides = array<i32>} : memref<392x640xf32, #tpu.memory_space<vmem>>, vector<8x640xf32>,
    %c0_146 = arith.constant 0 : index
    %c29_147 = arith.constant 29 : index
    %156 = vector.load %arg13[%c0_146, %c29_147] : memref<8x814xf32, #tpu.memory_space<vmem>>, vector<8x640xf32>
    %c64_148 = arith.constant 64 : index
    %c0_149 = arith.constant 0 : index
    %157 = vector.load %arg15[%c64_148, %c0_149] : memref<392x640xf32, #tpu.memory_space<vmem>>, vector<8x640xf32>
    tpu.vector_store %arg15[%c64_148, %c0_149], %156 {strides = array<i32>} : memref<392x640xf32, #tpu.memory_space<vmem>>, vector<8x640xf32>,
    %c0_150 = arith.constant 0 : index
    %c30_151 = arith.constant 30 : index
    %158 = vector.load %arg13[%c0_150, %c30_151] : memref<8x814xf32, #tpu.memory_space<vmem>>, vector<8x640xf32>
    %c72 = arith.constant 72 : index
    %c0_152 = arith.constant 0 : index
    %159 = vector.load %arg15[%c72, %c0_152] : memref<392x640xf32, #tpu.memory_space<vmem>>, vector<8x640xf32>
    tpu.vector_store %arg15[%c72, %c0_152], %158 {strides = array<i32>} : memref<392x640xf32, #tpu.memory_space<vmem>>, vector<8x640xf32>,
    %c0_153 = arith.constant 0 : index
    %c31 = arith.constant 31 : index
    %160 = vector.load %arg13[%c0_153, %c31] : memref<8x814xf32, #tpu.memory_space<vmem>>, vector<8x640xf32>
    %c80 = arith.constant 80 : index
    %c0_154 = arith.constant 0 : index
    %161 = vector.load %arg15[%c80, %c0_154] : memref<392x640xf32, #tpu.memory_space<vmem>>, vector<8x640xf32>
    tpu.vector_store %arg15[%c80, %c0_154], %160 {strides = array<i32>} : memref<392x640xf32, #tpu.memory_space<vmem>>, vector<8x640xf32>,
    %c0_155 = arith.constant 0 : index
    %c32_156 = arith.constant 32 : index
    %162 = vector.load %arg13[%c0_155, %c32_156] : memref<8x814xf32, #tpu.memory_space<vmem>>, vector<8x640xf32>
    %c88 = arith.constant 88 : index
    %c0_157 = arith.constant 0 : index
    %163 = vector.load %arg15[%c88, %c0_157] : memref<392x640xf32, #tpu.memory_space<vmem>>, vector<8x640xf32>
    tpu.vector_store %arg15[%c88, %c0_157], %162 {strides = array<i32>} : memref<392x640xf32, #tpu.memory_space<vmem>>, vector<8x640xf32>,
    %c0_158 = arith.constant 0 : index
    %c33 = arith.constant 33 : index
    %164 = vector.load %arg13[%c0_158, %c33] : memref<8x814xf32, #tpu.memory_space<vmem>>, vector<8x640xf32>
    %c96 = arith.constant 96 : index
    %c0_159 = arith.constant 0 : index
    %165 = vector.load %arg15[%c96, %c0_159] : memref<392x640xf32, #tpu.memory_space<vmem>>, vector<8x640xf32>
    tpu.vector_store %arg15[%c96, %c0_159], %164 {strides = array<i32>} : memref<392x640xf32, #tpu.memory_space<vmem>>, vector<8x640xf32>,
    %c0_160 = arith.constant 0 : index
    %c34 = arith.constant 34 : index
    %166 = vector.load %arg13[%c0_160, %c34] : memref<8x814xf32, #tpu.memory_space<vmem>>, vector<8x640xf32>
    %c104 = arith.constant 104 : index
    %c0_161 = arith.constant 0 : index
    %167 = vector.load %arg15[%c104, %c0_161] : memref<392x640xf32, #tpu.memory_space<vmem>>, vector<8x640xf32>
    tpu.vector_store %arg15[%c104, %c0_161], %166 {strides = array<i32>} : memref<392x640xf32, #tpu.memory_space<vmem>>, vector<8x640xf32>,
    %c0_162 = arith.constant 0 : index
    %c56_163 = arith.constant 56 : index
    %168 = vector.load %arg13[%c0_162, %c56_163] : memref<8x814xf32, #tpu.memory_space<vmem>>, vector<8x640xf32>
    %c112 = arith.constant 112 : index
    %c0_164 = arith.constant 0 : index
    %169 = vector.load %arg15[%c112, %c0_164] : memref<392x640xf32, #tpu.memory_space<vmem>>, vector<8x640xf32>
    tpu.vector_store %arg15[%c112, %c0_164], %168 {strides = array<i32>} : memref<392x640xf32, #tpu.memory_space<vmem>>, vector<8x640xf32>,
    %c0_165 = arith.constant 0 : index
    %c57_166 = arith.constant 57 : index
    %170 = vector.load %arg13[%c0_165, %c57_166] : memref<8x814xf32, #tpu.memory_space<vmem>>, vector<8x640xf32>
    %c120 = arith.constant 120 : index
    %c0_167 = arith.constant 0 : index
    %171 = vector.load %arg15[%c120, %c0_167] : memref<392x640xf32, #tpu.memory_space<vmem>>, vector<8x640xf32>
    tpu.vector_store %arg15[%c120, %c0_167], %170 {strides = array<i32>} : memref<392x640xf32, #tpu.memory_space<vmem>>, vector<8x640xf32>,
    %c0_168 = arith.constant 0 : index
    %c58_169 = arith.constant 58 : index
    %172 = vector.load %arg13[%c0_168, %c58_169] : memref<8x814xf32, #tpu.memory_space<vmem>>, vector<8x640xf32>
    %c128 = arith.constant 128 : index
    %c0_170 = arith.constant 0 : index
    %173 = vector.load %arg15[%c128, %c0_170] : memref<392x640xf32, #tpu.memory_space<vmem>>, vector<8x640xf32>
    tpu.vector_store %arg15[%c128, %c0_170], %172 {strides = array<i32>} : memref<392x640xf32, #tpu.memory_space<vmem>>, vector<8x640xf32>,
    %c0_171 = arith.constant 0 : index
    %c59 = arith.constant 59 : index
    %174 = vector.load %arg13[%c0_171, %c59] : memref<8x814xf32, #tpu.memory_space<vmem>>, vector<8x640xf32>
    %c136 = arith.constant 136 : index
    %c0_172 = arith.constant 0 : index
    %175 = vector.load %arg15[%c136, %c0_172] : memref<392x640xf32, #tpu.memory_space<vmem>>, vector<8x640xf32>
    tpu.vector_store %arg15[%c136, %c0_172], %174 {strides = array<i32>} : memref<392x640xf32, #tpu.memory_space<vmem>>, vector<8x640xf32>,
    %c0_173 = arith.constant 0 : index
    %c60 = arith.constant 60 : index
    %176 = vector.load %arg13[%c0_173, %c60] : memref<8x814xf32, #tpu.memory_space<vmem>>, vector<8x640xf32>
    %c144 = arith.constant 144 : index
    %c0_174 = arith.constant 0 : index
    %177 = vector.load %arg15[%c144, %c0_174] : memref<392x640xf32, #tpu.memory_space<vmem>>, vector<8x640xf32>
    tpu.vector_store %arg15[%c144, %c0_174], %176 {strides = array<i32>} : memref<392x640xf32, #tpu.memory_space<vmem>>, vector<8x640xf32>,
    %c0_175 = arith.constant 0 : index
    %c61 = arith.constant 61 : index
    %178 = vector.load %arg13[%c0_175, %c61] : memref<8x814xf32, #tpu.memory_space<vmem>>, vector<8x640xf32>
    %c152 = arith.constant 152 : index
    %c0_176 = arith.constant 0 : index
    %179 = vector.load %arg15[%c152, %c0_176] : memref<392x640xf32, #tpu.memory_space<vmem>>, vector<8x640xf32>
    tpu.vector_store %arg15[%c152, %c0_176], %178 {strides = array<i32>} : memref<392x640xf32, #tpu.memory_space<vmem>>, vector<8x640xf32>,
    %c0_177 = arith.constant 0 : index
    %c62 = arith.constant 62 : index
    %180 = vector.load %arg13[%c0_177, %c62] : memref<8x814xf32, #tpu.memory_space<vmem>>, vector<8x640xf32>
    %c160 = arith.constant 160 : index
    %c0_178 = arith.constant 0 : index
    %181 = vector.load %arg15[%c160, %c0_178] : memref<392x640xf32, #tpu.memory_space<vmem>>, vector<8x640xf32>
    tpu.vector_store %arg15[%c160, %c0_178], %180 {strides = array<i32>} : memref<392x640xf32, #tpu.memory_space<vmem>>, vector<8x640xf32>,
    %c0_179 = arith.constant 0 : index
    %c84 = arith.constant 84 : index
    %182 = vector.load %arg13[%c0_179, %c84] : memref<8x814xf32, #tpu.memory_space<vmem>>, vector<8x640xf32>
    %c168 = arith.constant 168 : index
    %c0_180 = arith.constant 0 : index
    %183 = vector.load %arg15[%c168, %c0_180] : memref<392x640xf32, #tpu.memory_space<vmem>>, vector<8x640xf32>
    tpu.vector_store %arg15[%c168, %c0_180], %182 {strides = array<i32>} : memref<392x640xf32, #tpu.memory_space<vmem>>, vector<8x640xf32>,
    %c0_181 = arith.constant 0 : index
    %c85 = arith.constant 85 : index
    %184 = vector.load %arg13[%c0_181, %c85] : memref<8x814xf32, #tpu.memory_space<vmem>>, vector<8x640xf32>
    %c176 = arith.constant 176 : index
    %c0_182 = arith.constant 0 : index
    %185 = vector.load %arg15[%c176, %c0_182] : memref<392x640xf32, #tpu.memory_space<vmem>>, vector<8x640xf32>
    tpu.vector_store %arg15[%c176, %c0_182], %184 {strides = array<i32>} : memref<392x640xf32, #tpu.memory_space<vmem>>, vector<8x640xf32>,
    %c0_183 = arith.constant 0 : index
    %c86 = arith.constant 86 : index
    %186 = vector.load %arg13[%c0_183, %c86] : memref<8x814xf32, #tpu.memory_space<vmem>>, vector<8x640xf32>
    %c184 = arith.constant 184 : index
    %c0_184 = arith.constant 0 : index
    %187 = vector.load %arg15[%c184, %c0_184] : memref<392x640xf32, #tpu.memory_space<vmem>>, vector<8x640xf32>
    tpu.vector_store %arg15[%c184, %c0_184], %186 {strides = array<i32>} : memref<392x640xf32, #tpu.memory_space<vmem>>, vector<8x640xf32>,
    %c0_185 = arith.constant 0 : index
    %c87 = arith.constant 87 : index
    %188 = vector.load %arg13[%c0_185, %c87] : memref<8x814xf32, #tpu.memory_space<vmem>>, vector<8x640xf32>
    %c192 = arith.constant 192 : index
    %c0_186 = arith.constant 0 : index
    %189 = vector.load %arg15[%c192, %c0_186] : memref<392x640xf32, #tpu.memory_space<vmem>>, vector<8x640xf32>
    tpu.vector_store %arg15[%c192, %c0_186], %188 {strides = array<i32>} : memref<392x640xf32, #tpu.memory_space<vmem>>, vector<8x640xf32>,
    %c0_187 = arith.constant 0 : index
    %c88_188 = arith.constant 88 : index
    %190 = vector.load %arg13[%c0_187, %c88_188] : memref<8x814xf32, #tpu.memory_space<vmem>>, vector<8x640xf32>
    %c200 = arith.constant 200 : index
    %c0_189 = arith.constant 0 : index
    %191 = vector.load %arg15[%c200, %c0_189] : memref<392x640xf32, #tpu.memory_space<vmem>>, vector<8x640xf32>
    tpu.vector_store %arg15[%c200, %c0_189], %190 {strides = array<i32>} : memref<392x640xf32, #tpu.memory_space<vmem>>, vector<8x640xf32>,
    %c0_190 = arith.constant 0 : index
    %c89 = arith.constant 89 : index
    %192 = vector.load %arg13[%c0_190, %c89] : memref<8x814xf32, #tpu.memory_space<vmem>>, vector<8x640xf32>
    %c208 = arith.constant 208 : index
    %c0_191 = arith.constant 0 : index
    %193 = vector.load %arg15[%c208, %c0_191] : memref<392x640xf32, #tpu.memory_space<vmem>>, vector<8x640xf32>
    tpu.vector_store %arg15[%c208, %c0_191], %192 {strides = array<i32>} : memref<392x640xf32, #tpu.memory_space<vmem>>, vector<8x640xf32>,
    %c0_192 = arith.constant 0 : index
    %c90 = arith.constant 90 : index
    %194 = vector.load %arg13[%c0_192, %c90] : memref<8x814xf32, #tpu.memory_space<vmem>>, vector<8x640xf32>
    %c216 = arith.constant 216 : index
    %c0_193 = arith.constant 0 : index
    %195 = vector.load %arg15[%c216, %c0_193] : memref<392x640xf32, #tpu.memory_space<vmem>>, vector<8x640xf32>
    tpu.vector_store %arg15[%c216, %c0_193], %194 {strides = array<i32>} : memref<392x640xf32, #tpu.memory_space<vmem>>, vector<8x640xf32>,
    %c0_194 = arith.constant 0 : index
    %c112_195 = arith.constant 112 : index
    %196 = vector.load %arg13[%c0_194, %c112_195] : memref<8x814xf32, #tpu.memory_space<vmem>>, vector<8x640xf32>
    %c224 = arith.constant 224 : index
    %c0_196 = arith.constant 0 : index
    %197 = vector.load %arg15[%c224, %c0_196] : memref<392x640xf32, #tpu.memory_space<vmem>>, vector<8x640xf32>
    tpu.vector_store %arg15[%c224, %c0_196], %196 {strides = array<i32>} : memref<392x640xf32, #tpu.memory_space<vmem>>, vector<8x640xf32>,
    %c0_197 = arith.constant 0 : index
    %c113 = arith.constant 113 : index
    %198 = vector.load %arg13[%c0_197, %c113] : memref<8x814xf32, #tpu.memory_space<vmem>>, vector<8x640xf32>
    %c232 = arith.constant 232 : index
    %c0_198 = arith.constant 0 : index
    %199 = vector.load %arg15[%c232, %c0_198] : memref<392x640xf32, #tpu.memory_space<vmem>>, vector<8x640xf32>
    tpu.vector_store %arg15[%c232, %c0_198], %198 {strides = array<i32>} : memref<392x640xf32, #tpu.memory_space<vmem>>, vector<8x640xf32>,
    %c0_199 = arith.constant 0 : index
    %c114 = arith.constant 114 : index
    %200 = vector.load %arg13[%c0_199, %c114] : memref<8x814xf32, #tpu.memory_space<vmem>>, vector<8x640xf32>
    %c240 = arith.constant 240 : index
    %c0_200 = arith.constant 0 : index
    %201 = vector.load %arg15[%c240, %c0_200] : memref<392x640xf32, #tpu.memory_space<vmem>>, vector<8x640xf32>
    tpu.vector_store %arg15[%c240, %c0_200], %200 {strides = array<i32>} : memref<392x640xf32, #tpu.memory_space<vmem>>, vector<8x640xf32>,
    %c0_201 = arith.constant 0 : index
    %c115 = arith.constant 115 : index
    %202 = vector.load %arg13[%c0_201, %c115] : memref<8x814xf32, #tpu.memory_space<vmem>>, vector<8x640xf32>
    %c248 = arith.constant 248 : index
    %c0_202 = arith.constant 0 : index
    %203 = vector.load %arg15[%c248, %c0_202] : memref<392x640xf32, #tpu.memory_space<vmem>>, vector<8x640xf32>
    tpu.vector_store %arg15[%c248, %c0_202], %202 {strides = array<i32>} : memref<392x640xf32, #tpu.memory_space<vmem>>, vector<8x640xf32>,
    %c0_203 = arith.constant 0 : index
    %c116 = arith.constant 116 : index
    %204 = vector.load %arg13[%c0_203, %c116] : memref<8x814xf32, #tpu.memory_space<vmem>>, vector<8x640xf32>
    %c256 = arith.constant 256 : index
    %c0_204 = arith.constant 0 : index
    %205 = vector.load %arg15[%c256, %c0_204] : memref<392x640xf32, #tpu.memory_space<vmem>>, vector<8x640xf32>
    tpu.vector_store %arg15[%c256, %c0_204], %204 {strides = array<i32>} : memref<392x640xf32, #tpu.memory_space<vmem>>, vector<8x640xf32>,
    %c0_205 = arith.constant 0 : index
    %c117 = arith.constant 117 : index
    %206 = vector.load %arg13[%c0_205, %c117] : memref<8x814xf32, #tpu.memory_space<vmem>>, vector<8x640xf32>
    %c264 = arith.constant 264 : index
    %c0_206 = arith.constant 0 : index
    %207 = vector.load %arg15[%c264, %c0_206] : memref<392x640xf32, #tpu.memory_space<vmem>>, vector<8x640xf32>
    tpu.vector_store %arg15[%c264, %c0_206], %206 {strides = array<i32>} : memref<392x640xf32, #tpu.memory_space<vmem>>, vector<8x640xf32>,
    %c0_207 = arith.constant 0 : index
    %c118 = arith.constant 118 : index
    %208 = vector.load %arg13[%c0_207, %c118] : memref<8x814xf32, #tpu.memory_space<vmem>>, vector<8x640xf32>
    %c272 = arith.constant 272 : index
    %c0_208 = arith.constant 0 : index
    %209 = vector.load %arg15[%c272, %c0_208] : memref<392x640xf32, #tpu.memory_space<vmem>>, vector<8x640xf32>
    tpu.vector_store %arg15[%c272, %c0_208], %208 {strides = array<i32>} : memref<392x640xf32, #tpu.memory_space<vmem>>, vector<8x640xf32>,
    %c0_209 = arith.constant 0 : index
    %c140 = arith.constant 140 : index
    %210 = vector.load %arg13[%c0_209, %c140] : memref<8x814xf32, #tpu.memory_space<vmem>>, vector<8x640xf32>
    %c280 = arith.constant 280 : index
    %c0_210 = arith.constant 0 : index
    %211 = vector.load %arg15[%c280, %c0_210] : memref<392x640xf32, #tpu.memory_space<vmem>>, vector<8x640xf32>
    tpu.vector_store %arg15[%c280, %c0_210], %210 {strides = array<i32>} : memref<392x640xf32, #tpu.memory_space<vmem>>, vector<8x640xf32>,
    %c0_211 = arith.constant 0 : index
    %c141 = arith.constant 141 : index
    %212 = vector.load %arg13[%c0_211, %c141] : memref<8x814xf32, #tpu.memory_space<vmem>>, vector<8x640xf32>
    %c288 = arith.constant 288 : index
    %c0_212 = arith.constant 0 : index
    %213 = vector.load %arg15[%c288, %c0_212] : memref<392x640xf32, #tpu.memory_space<vmem>>, vector<8x640xf32>
    tpu.vector_store %arg15[%c288, %c0_212], %212 {strides = array<i32>} : memref<392x640xf32, #tpu.memory_space<vmem>>, vector<8x640xf32>,
    %c0_213 = arith.constant 0 : index
    %c142 = arith.constant 142 : index
    %214 = vector.load %arg13[%c0_213, %c142] : memref<8x814xf32, #tpu.memory_space<vmem>>, vector<8x640xf32>
    %c296 = arith.constant 296 : index
    %c0_214 = arith.constant 0 : index
    %215 = vector.load %arg15[%c296, %c0_214] : memref<392x640xf32, #tpu.memory_space<vmem>>, vector<8x640xf32>
    tpu.vector_store %arg15[%c296, %c0_214], %214 {strides = array<i32>} : memref<392x640xf32, #tpu.memory_space<vmem>>, vector<8x640xf32>,
    %c0_215 = arith.constant 0 : index
    %c143 = arith.constant 143 : index
    %216 = vector.load %arg13[%c0_215, %c143] : memref<8x814xf32, #tpu.memory_space<vmem>>, vector<8x640xf32>
    %c304 = arith.constant 304 : index
    %c0_216 = arith.constant 0 : index
    %217 = vector.load %arg15[%c304, %c0_216] : memref<392x640xf32, #tpu.memory_space<vmem>>, vector<8x640xf32>
    tpu.vector_store %arg15[%c304, %c0_216], %216 {strides = array<i32>} : memref<392x640xf32, #tpu.memory_space<vmem>>, vector<8x640xf32>,
    %c0_217 = arith.constant 0 : index
    %c144_218 = arith.constant 144 : index
    %218 = vector.load %arg13[%c0_217, %c144_218] : memref<8x814xf32, #tpu.memory_space<vmem>>, vector<8x640xf32>
    %c312 = arith.constant 312 : index
    %c0_219 = arith.constant 0 : index
    %219 = vector.load %arg15[%c312, %c0_219] : memref<392x640xf32, #tpu.memory_space<vmem>>, vector<8x640xf32>
    tpu.vector_store %arg15[%c312, %c0_219], %218 {strides = array<i32>} : memref<392x640xf32, #tpu.memory_space<vmem>>, vector<8x640xf32>,
    %c0_220 = arith.constant 0 : index
    %c145 = arith.constant 145 : index
    %220 = vector.load %arg13[%c0_220, %c145] : memref<8x814xf32, #tpu.memory_space<vmem>>, vector<8x640xf32>
    %c320 = arith.constant 320 : index
    %c0_221 = arith.constant 0 : index
    %221 = vector.load %arg15[%c320, %c0_221] : memref<392x640xf32, #tpu.memory_space<vmem>>, vector<8x640xf32>
    tpu.vector_store %arg15[%c320, %c0_221], %220 {strides = array<i32>} : memref<392x640xf32, #tpu.memory_space<vmem>>, vector<8x640xf32>,
    %c0_222 = arith.constant 0 : index
    %c146 = arith.constant 146 : index
    %222 = vector.load %arg13[%c0_222, %c146] : memref<8x814xf32, #tpu.memory_space<vmem>>, vector<8x640xf32>
    %c328 = arith.constant 328 : index
    %c0_223 = arith.constant 0 : index
    %223 = vector.load %arg15[%c328, %c0_223] : memref<392x640xf32, #tpu.memory_space<vmem>>, vector<8x640xf32>
    tpu.vector_store %arg15[%c328, %c0_223], %222 {strides = array<i32>} : memref<392x640xf32, #tpu.memory_space<vmem>>, vector<8x640xf32>,
    %c0_224 = arith.constant 0 : index
    %c168_225 = arith.constant 168 : index
    %224 = vector.load %arg13[%c0_224, %c168_225] : memref<8x814xf32, #tpu.memory_space<vmem>>, vector<8x640xf32>
    %c336 = arith.constant 336 : index
    %c0_226 = arith.constant 0 : index
    %225 = vector.load %arg15[%c336, %c0_226] : memref<392x640xf32, #tpu.memory_space<vmem>>, vector<8x640xf32>
    tpu.vector_store %arg15[%c336, %c0_226], %224 {strides = array<i32>} : memref<392x640xf32, #tpu.memory_space<vmem>>, vector<8x640xf32>,
    %c0_227 = arith.constant 0 : index
    %c169 = arith.constant 169 : index
    %226 = vector.load %arg13[%c0_227, %c169] : memref<8x814xf32, #tpu.memory_space<vmem>>, vector<8x640xf32>
    %c344 = arith.constant 344 : index
    %c0_228 = arith.constant 0 : index
    %227 = vector.load %arg15[%c344, %c0_228] : memref<392x640xf32, #tpu.memory_space<vmem>>, vector<8x640xf32>
    tpu.vector_store %arg15[%c344, %c0_228], %226 {strides = array<i32>} : memref<392x640xf32, #tpu.memory_space<vmem>>, vector<8x640xf32>,
    %c0_229 = arith.constant 0 : index
    %c170 = arith.constant 170 : index
    %228 = vector.load %arg13[%c0_229, %c170] : memref<8x814xf32, #tpu.memory_space<vmem>>, vector<8x640xf32>
    %c352 = arith.constant 352 : index
    %c0_230 = arith.constant 0 : index
    %229 = vector.load %arg15[%c352, %c0_230] : memref<392x640xf32, #tpu.memory_space<vmem>>, vector<8x640xf32>
    tpu.vector_store %arg15[%c352, %c0_230], %228 {strides = array<i32>} : memref<392x640xf32, #tpu.memory_space<vmem>>, vector<8x640xf32>,
    %c0_231 = arith.constant 0 : index
    %c171 = arith.constant 171 : index
    %230 = vector.load %arg13[%c0_231, %c171] : memref<8x814xf32, #tpu.memory_space<vmem>>, vector<8x640xf32>
    %c360 = arith.constant 360 : index
    %c0_232 = arith.constant 0 : index
    %231 = vector.load %arg15[%c360, %c0_232] : memref<392x640xf32, #tpu.memory_space<vmem>>, vector<8x640xf32>
    tpu.vector_store %arg15[%c360, %c0_232], %230 {strides = array<i32>} : memref<392x640xf32, #tpu.memory_space<vmem>>, vector<8x640xf32>,
    %c0_233 = arith.constant 0 : index
    %c172 = arith.constant 172 : index
    %232 = vector.load %arg13[%c0_233, %c172] : memref<8x814xf32, #tpu.memory_space<vmem>>, vector<8x640xf32>
    %c368 = arith.constant 368 : index
    %c0_234 = arith.constant 0 : index
    %233 = vector.load %arg15[%c368, %c0_234] : memref<392x640xf32, #tpu.memory_space<vmem>>, vector<8x640xf32>
    tpu.vector_store %arg15[%c368, %c0_234], %232 {strides = array<i32>} : memref<392x640xf32, #tpu.memory_space<vmem>>, vector<8x640xf32>,
    %c0_235 = arith.constant 0 : index
    %c173 = arith.constant 173 : index
    %234 = vector.load %arg13[%c0_235, %c173] : memref<8x814xf32, #tpu.memory_space<vmem>>, vector<8x640xf32>
    %c376 = arith.constant 376 : index
    %c0_236 = arith.constant 0 : index
    %235 = vector.load %arg15[%c376, %c0_236] : memref<392x640xf32, #tpu.memory_space<vmem>>, vector<8x640xf32>
    tpu.vector_store %arg15[%c376, %c0_236], %234 {strides = array<i32>} : memref<392x640xf32, #tpu.memory_space<vmem>>, vector<8x640xf32>,
    %c0_237 = arith.constant 0 : index
    %c174_238 = arith.constant 174 : index
    %236 = vector.load %arg13[%c0_237, %c174_238] : memref<8x814xf32, #tpu.memory_space<vmem>>, vector<8x640xf32>
    %c384 = arith.constant 384 : index
    %c0_239 = arith.constant 0 : index
    %237 = vector.load %arg15[%c384, %c0_239] : memref<392x640xf32, #tpu.memory_space<vmem>>, vector<8x640xf32>
    tpu.vector_store %arg15[%c384, %c0_239], %236 {strides = array<i32>} : memref<392x640xf32, #tpu.memory_space<vmem>>, vector<8x640xf32>,
    %c0_240 = arith.constant 0 : index
    %c0_241 = arith.constant 0 : index
    %238 = vector.load %arg9[%c0_240, %c0_241] : memref<8x392xf32, #tpu.memory_space<vmem>>, vector<8x392xf32>
    %c0_242 = arith.constant 0 : index
    %c0_243 = arith.constant 0 : index
    %239 = vector.load %arg15[%c0_242, %c0_243] : memref<392x640xf32, #tpu.memory_space<vmem>>, vector<392x640xf32>
    %cst_244 = arith.constant dense<0.000000e+00> : vector<8x640xf32>
    %240 = tpu.matmul %238, %239, %cst_244 {dimension_numbers = #tpu.dot_dimension_numbers<[1], [0], [0], [1], [0, 0, 1, 1], [], []>} : vector<8x392xf32>, vector<392x640xf32>, vector<8x640xf32> -> vector<8x640xf32>
    %c0_245 = arith.constant 0 : index
    %c0_246 = arith.constant 0 : index
    %241 = vector.load %arg10[%c0_245, %c0_246] : memref<8x1xf32, #tpu.memory_space<vmem>>, vector<8x1xf32>
    %242 = vector.broadcast %241 : vector<8x1xf32> to vector<8x640xf32>
    %243 = arith.addf %240, %242 : vector<8x640xf32>
    %c0_247 = arith.constant 0 : index
    %c0_248 = arith.constant 0 : index
    %c0_249 = arith.constant 0 : index
    %244 = vector.load %arg11[%c0_247, %c0_248, %c0_249] : memref<1x8x640xf32, #tpu.memory_space<vmem>>, vector<1x8x640xf32>
    %245 = vector.shape_cast %244 : vector<1x8x640xf32> to vector<8x640xf32>
    %246 = vector.shape_cast %243 : vector<8x640xf32> to vector<1x8x640xf32>
    tpu.vector_store %arg11[%c0_247, %c0_248, %c0_249], %246 {strides = array<i32>} : memref<1x8x640xf32, #tpu.memory_space<vmem>>, vector<1x8x640xf32>,
    return
  }
  func.func @transform_0(%arg0: i32) -> (i32, i32, i32) {
    %c0_i32 = arith.constant 0 : i32
    %c0_i32_0 = arith.constant 0 : i32
    %c0_i32_1 = arith.constant 0 : i32
    return %arg0, %c0_i32, %c0_i32_0 : i32, i32, i32
  }
  func.func @transform_1(%arg0: i32) -> (i32, i32) {
    %c0_i32 = arith.constant 0 : i32
    %c0_i32_0 = arith.constant 0 : i32
    %c0_i32_1 = arith.constant 0 : i32
    return %c0_i32, %c0_i32_0 : i32, i32
  }
  func.func @transform_2(%arg0: i32) -> (i32, i32) {
    %c0_i32 = arith.constant 0 : i32
    %c0_i32_0 = arith.constant 0 : i32
    %c0_i32_1 = arith.constant 0 : i32
    return %c0_i32, %c0_i32_0 : i32, i32
  }
  func.func @transform_3(%arg0: i32) -> (i32, i32) {
    %c0_i32 = arith.constant 0 : i32
    %c0_i32_0 = arith.constant 0 : i32
    %c0_i32_1 = arith.constant 0 : i32
    return %c0_i32, %c0_i32_0 : i32, i32
  }
  func.func @transform_4(%arg0: i32) -> (i32, i32) {
    %c0_i32 = arith.constant 0 : i32
    %c0_i32_0 = arith.constant 0 : i32
    %c0_i32_1 = arith.constant 0 : i32
    return %c0_i32, %c0_i32_0 : i32, i32
  }
  func.func @transform_5(%arg0: i32) -> (i32, i32) {
    %c0_i32 = arith.constant 0 : i32
    %c0_i32_0 = arith.constant 0 : i32
    %c0_i32_1 = arith.constant 0 : i32
    return %c0_i32, %c0_i32_0 : i32, i32
  }
  func.func @transform_6(%arg0: i32) -> (i32, i32) {
    %c0_i32 = arith.constant 0 : i32
    %c0_i32_0 = arith.constant 0 : i32
    %c0_i32_1 = arith.constant 0 : i32
    return %c0_i32, %c0_i32_0 : i32, i32
  }
  func.func @transform_7(%arg0: i32) -> (i32, i32) {
    %c0_i32 = arith.constant 0 : i32
    %c0_i32_0 = arith.constant 0 : i32
    %c0_i32_1 = arith.constant 0 : i32
    return %c0_i32, %c0_i32_0 : i32, i32
  }
  func.func @transform_8(%arg0: i32) -> (i32, i32) {
    %c0_i32 = arith.constant 0 : i32
    %c0_i32_0 = arith.constant 0 : i32
    %c0_i32_1 = arith.constant 0 : i32
    return %c0_i32, %c0_i32_0 : i32, i32
  }
  func.func @transform_9(%arg0: i32) -> (i32, i32) {
    %c0_i32 = arith.constant 0 : i32
    %c0_i32_0 = arith.constant 0 : i32
    %c0_i32_1 = arith.constant 0 : i32
    return %c0_i32, %c0_i32_0 : i32, i32
  }
  func.func @transform_10(%arg0: i32) -> (i32, i32, i32) {
    %c0_i32 = arith.constant 0 : i32
    %c0_i32_0 = arith.constant 0 : i32
    %c0_i32_1 = arith.constant 0 : i32
    return %arg0, %c0_i32, %c0_i32_0 : i32, i32, i32
  }
}

</mosaic_0001>

<bundles_post_ra>
// kernel: perfect_segmentation_head2d.1
= control target key start
LH: loop header
LB: loop body
LE: loop exit
PB: predicated region body
PF: predicated region fallthrough
CT: control target
= control target key end

     0   :  { %s5243_s13 = smov 0   ;;  %s6867_s0 = inlined_call_operand.vmem [shape: f32[2,8,532], index: 0, kind: input, shape index: {}]   ;;  %s6868_s1 = inlined_call_operand.vmem [shape: f32[1,448], index: 1, kind: input, shape index: {}]   ;;  %s6869_s2 = inlined_call_operand.vmem [shape: f32[8,72], index: 2, kind: input, shape index: {}]   ;;  %s6870_s3 = inlined_call_operand.vmem [shape: f32[8,1], index: 3, kind: input, shape index: {}]   ;;  %s6871_s4 = inlined_call_operand.vmem [shape: f32[8,1], index: 4, kind: input, shape index: {}]   ;;  %s6872_s5 = inlined_call_operand.vmem [shape: f32[8,1], index: 5, kind: input, shape index: {}]   ;;  %s6873_s6 = inlined_call_operand.vmem [shape: f32[8,72], index: 6, kind: input, shape index: {}]   ;;  %s6874_s7 = inlined_call_operand.vmem [shape: f32[8,1], index: 7, kind: input, shape index: {}]   ;;  %s6875_s8 = inlined_call_operand.vmem [shape: f32[8,392], index: 8, kind: input, shape index: {}]   ;;  %s6876_s9 = inlined_call_operand.vmem [shape: f32[8,1], index: 9, kind: input, shape index: {}]   ;;  %s6877_s10 = inlined_call_operand.vmem [shape: f32[2,8,640], index: 10, kind: output, shape index: {}]  }
   0x1   :  { %7105 = sst [smem:[#allocation86_spill]] %s6867_s0 }
   0x2   :  { %7106 = sst [smem:[#allocation87_spill]] %s6868_s1 }
   0x3   :  { %7107 = sst [smem:[#allocation88_spill]] %s6869_s2 }
   0x4   :  { %7108 = sst [smem:[#allocation89_spill]] %s6870_s3 }
   0x5   :  { %7109 = sst [smem:[#allocation90_spill]] %s6871_s4 }
   0x6   :  { %7110 = sst [smem:[#allocation91_spill]] %s6872_s5 }
   0x7   :  { %7111 = sst [smem:[#allocation92_spill]] %s6873_s6 }
   0x8   :  { %7112 = sst [smem:[#allocation93_spill]] %s6874_s7 }
   0x9   :  { %7113 = sst [smem:[#allocation94_spill]] %s6877_s10 }
   0xa LB: > { %7114 = sst [smem:[#allocation6_spill]] %s5132_s13  ;;  %s4113_s14 = sadd.s32 4294967295, %s5132_s13   ;;  %s5132_s13 = sphi %s5243_s13, %s20_s13  }
   0xb   : > { %p4117_p0 = scmp.ge.s32.totalorder %s5132_s13, 1  ;;  %p312_p1 = scmp.lt.s32.totalorder %s5132_s13, 3 }
   0xd   : > { %p313_p2 = pnand %p4117_p0, %p312_p1 }
   0xf   : > { %316 = sbr.rel (%p313_p2) target bundleno = 2233 (0x8b9), region = 60 }
  0x16   : > { %p350_p3 = scmp.lt.s32.totalorder %s4113_s14, 1  ;;  %s7115_s0 = sld [smem:[#allocation86_spill]]  ;;  %vm368_vm0 = vcmask 523264   ;;  %v5141_v4 = vmov 0.0   ;;  %v5143_v5 = vmov 0   ;;  %vm7063_vm1 = vcmask 1039360  }
  0x17   : > { %s6925_s19 = smov 127   ;;  %s6957_s20 = smov 126   ;;  %1417 = vst [vmem:[#allocation3] sm:$0xff] %v5141_v4  ;;  %704 = vmatprep.mubr.f32.mxu0 %v5141_v4  ;;  %775 = vmatprep.mubr.f32.mxu1 %v5141_v4  ;;  %vm7064_vm2 = vcmask 1031168   ;;  %vm7097_vm3 = vcmask 818176   ;;  %vm7074_vm4 = vcmask 809984  }
  0x18   : > { %s7494_s14 = smov (!%p350_p3, %s4113_s14), 1  ;;  %s6936_s21 = smov 100   ;;  %4547 = vset.pattern.permute.xlu0 %v5143_v5  ;;  %4548 = vset.pattern.permute.xlu1 %v5143_v5  ;;  %vm7073_vm5 = vcmask 801792   ;;  %vm7068_vm6 = vcmask 588800   ;;  %vm7014_vm7 = vcmask 580608   ;;  %vm7003_vm8 = vcmask 572416  }
  0x19   : > { %s6878_s15 = smul.u32 40, %s7494_s14  ;;  %s6935_s22 = smov 99   ;;  %vm970_vm10 = vcmask 236544   ;;  %vm972_vm14 = vcmask 1048296   ;;  %vm995_vm15 = vcmask 1047784  }
  0x1a   : > { %s6926_s23 = smov 98   ;;  %s6934_s24 = smov 72   ;;  %971 = vst.msk [vmem:[#allocation2] sm:$0xff] %vm970_vm10, %v5141_v4 }
  0x1b   : > { %s6930_s25 = smov 71   ;;  %s6931_s26 = smov 70   ;;  %973 = vst.msk [vmem:[#allocation2 + $0x18] sm:$0xff] %vm972_vm14, %v5141_v4  ;;  %vm6985_vm14 = vcmask 941056  }
  0x1c   : > { %s354_s18 = scalar_lea.vmem %s7115_s0, %s6878_s15  ;;  %s7116_s3 = sld [smem:[#allocation89_spill]] }
  0x1d   : > { %v5259_v0 = vld [vmem:[%s354_s18 + $0x8] sm:$0xff]  ;;  %v5261_v1 = vld [vmem:[%s354_s18] sm:$0xff]  ;;  %v373_v2 = vld [vmem:[%s354_s18 + $0x18] sm:$0xff]  ;;  %s7117_s2 = sld [smem:[#allocation88_spill]]  ;;  %s7118_s1 = sld [smem:[#allocation87_spill]] }
  0x1e   : > { %380 = vrot.lane.b32.xlu0 %v5259_v0, %s6925_s19  ;;  %378 = vrot.lane.b32.xlu1 %v5261_v1, %s6925_s19  ;;  %v5267_v3 = vld [vmem:[%s354_s18 + $0x10] sm:$0xff]  ;;  %369 = vst.msk [vmem:[#allocation4 + $0x18] sm:$0xff] %vm368_vm0, %v373_v2  ;;  %s7119_s4 = sld [smem:[#allocation90_spill]]  ;;  %s7120_s5 = sld [smem:[#allocation91_spill]] }
  0x1f   : > { %s5145_s28 = smov 29   ;;  %s7121_s7 = sld [smem:[#allocation93_spill]] }
  0x20   : > { %s6909_s11 = smov 116   ;;  %s6907_s12 = smov 115  }
  0x21   : > { %s6905_s16 = smov 114   ;;  %s6897_s17 = smov 113  }
  0x22   : > { %382 = vrot.lane.b32.xlu0 %v5267_v3, %s6925_s19  ;;  %384 = vrot.lane.b32.xlu1 %v373_v2, %s6925_s19  ;;  %v631_v6 = vld [vmem:[%s7116_s3] sm:$0xff]  ;;  %s6879_s18 = smov 112   ;;  %s6881_s27 = smov 111  }
  0x23   : > { %s6885_s29 = smov 88   ;;  %s6887_s30 = smov 87  }
  0x24   : > { %s6889_s15 = smov 86   ;;  %s7122_s6 = sld [smem:[#allocation92_spill]] }
  0x25   : > { %v598_v17 = vld [vmem:[#allocation4 + $0x18] sm:$0xff]  ;;  %s7167_s0 = smov 87   ;;  %s7170_s3 = smov 84  }
  0x26   : > { %408 = vrot.lane.b32.xlu0 %v5259_v0, %s6957_s20  ;;  %410 = vrot.lane.b32.xlu1 %v5267_v3, %s6957_s20  ;;  %s7176_s13 = smov 124   ;;  %s7177_s10 = smov 123  }
  0x2a   : > { %436 = vrot.lane.b32.xlu0 %v5259_v0, %s6936_s21  ;;  %438 = vrot.lane.b32.xlu1 %v5267_v3, %s6936_s21 }
  0x2e   : > { %406 = vrot.lane.b32.xlu0 %v5261_v1, %s6957_s20  ;;  %434 = vrot.lane.b32.xlu1 %v5261_v1, %s6936_s21 }
  0x32   : > { %412 = vrot.lane.b32.xlu0 %v373_v2, %s6957_s20  ;;  %440 = vrot.lane.b32.xlu1 %v373_v2, %s6936_s21 }
  0x36   : > { %464 = vrot.lane.b32.xlu0 %v5259_v0, %s6935_s22  ;;  %466 = vrot.lane.b32.xlu1 %v5267_v3, %s6935_s22 }
  0x3a   : > { %492 = vrot.lane.b32.xlu0 %v5259_v0, %s6926_s23  ;;  %494 = vrot.lane.b32.xlu1 %v5267_v3, %s6926_s23 }
  0x3e   : > { %462 = vrot.lane.b32.xlu0 %v5261_v1, %s6935_s22  ;;  %490 = vrot.lane.b32.xlu1 %v5261_v1, %s6926_s23 }
  0x42   : > { %468 = vrot.lane.b32.xlu0 %v373_v2, %s6935_s22  ;;  %496 = vrot.lane.b32.xlu1 %v373_v2, %s6926_s23 }
  0x46   : > { %520 = vrot.lane.b32.xlu0 %v5259_v0, %s6934_s24  ;;  %522 = vrot.lane.b32.xlu1 %v5267_v3, %s6934_s24 }
  0x4a   : > { %548 = vrot.lane.b32.xlu0 %v5259_v0, %s6930_s25  ;;  %550 = vrot.lane.b32.xlu1 %v5267_v3, %s6930_s25 }
  0x4e   : > { %518 = vrot.lane.b32.xlu0 %v5261_v1, %s6934_s24  ;;  %546 = vrot.lane.b32.xlu1 %v5261_v1, %s6930_s25 }
  0x52   : > { %524 = vrot.lane.b32.xlu0 %v373_v2, %s6934_s24  ;;  %552 = vrot.lane.b32.xlu1 %v373_v2, %s6930_s25 }
  0x56   : > { %576 = vrot.lane.b32.xlu0 %v5259_v0, %s6931_s26  ;;  %578 = vrot.lane.b32.xlu1 %v5267_v3, %s6931_s26 }
  0x5a   : > { %574 = vrot.lane.b32.xlu0 %v5261_v1, %s6931_s26  ;;  %580 = vrot.lane.b32.xlu1 %v373_v2, %s6931_s26 }
  0x5e   : > { %634 = vperm.xlu0 %4547, %v631_v6  }
  0x90   : > { %v381_v7 = vpop.permute.xlu0 %380  ;;  %v379_v8 = vpop.permute.xlu1 %378 }
  0x91   : > { %v387_v9 = vsel %vm7063_vm1, %v379_v8, %v381_v7 }
  0x92   : > { %v4166_v14 = vpack.c.bf16 %v387_v9, %v5261_v1 }
  0x94   : > { %v383_v10 = vpop.permute.xlu0 %382  ;;  %v385_v11 = vpop.permute.xlu1 %384 }
  0x95   : > { %v388_v12 = vsel %vm7063_vm1, %v381_v7, %v383_v10  ;;  %397 = vst.msk [vmem:[#allocation4 + $0x38] sm:$0xff] %vm368_vm0, %v385_v11  ;;  %v389_v18 = vsel %vm7063_vm1, %v383_v10, %v385_v11 }
  0x96   : > { %v4164_v13 = vpack.c.bf16 %v388_v12, %v5259_v0  ;;  %v4182_v25 = vpack.c.bf16 %v389_v18, %v5267_v3 }
  0x98   : > { %v409_v15 = vpop.permute.xlu0 %408  ;;  %v411_v16 = vpop.permute.xlu1 %410  ;;  %4165 = vmatprep.subr.bf16.mxu0 %v4164_v13 }
  0x99   : > { %4167 = vmatpush1.bf16.msra.mxu0 %v4166_v14  ;;  %v416_v22 = vsel %vm7064_vm2, %v409_v15, %v411_v16 }
  0x9c   : > { %v437_v19 = vpop.permute.xlu0 %436  ;;  %v439_v20 = vpop.permute.xlu1 %438  ;;  %v602_v21 = vld [vmem:[#allocation4 + $0x38] sm:$0xff] }
  0x9d   : > { %v444_v23 = vsel %vm7097_vm3, %v437_v19, %v439_v20  ;;  %v4180_v24 = vpack.c.bf16 %v602_v21, %v598_v17 }
  0x9e   : > { %v4168_v26 = vpack.c.bf16 %v444_v23, %v416_v22 }
  0x9f   : > { %4181 = vmatprep.subr.bf16.mxu1 %v4180_v24 }
  0xa0   : > { %v407_v27 = vpop.permute.xlu0 %406  ;;  %v435_v28 = vpop.permute.xlu1 %434  ;;  %4183 = vmatpush1.bf16.msra.mxu1 %v4182_v25  ;;  %4169 = vmatprep.subr.bf16.mxu0 %v4168_v26  ;;  %v783_v26 = vlaneseq }
  0xa1   : > { %v415_v29 = vsel %vm7064_vm2, %v407_v27, %v409_v15  ;;  %v443_v30 = vsel %vm7097_vm3, %v435_v28, %v437_v19 }
  0xa2   : > { %v4170_v31 = vpack.c.bf16 %v443_v30, %v415_v29  ;;  %v784_v27 = vshrl.u32 %v783_v26, 7 }
  0xa4   : > { %v413_v32 = vpop.permute.xlu0 %412  ;;  %v441_v33 = vpop.permute.xlu1 %440  ;;  %4171 = vmatpush1.bf16.msra.mxu0 %v4170_v31  ;;  %v785_v28 = vsub.s32 0, %v784_v27  ;;  %v789_v29 = vsub.s32 1, %v784_v27  ;;  %v360_v31 = vld [vmem:[%s7118_s1] sm:$0xf]  ;;  %s7168_s1 = smov 86  }
  0xa5   : > { %425 = vst.msk [vmem:[#allocation4 + $0x58] sm:$0xff] %vm368_vm0, %v413_v32  ;;  %453 = vst.msk [vmem:[#allocation4 + $0x78] sm:$0xff] %vm368_vm0, %v441_v33  ;;  %v417_v36 = vsel %vm7064_vm2, %v411_v16, %v413_v32  ;;  %v445_v37 = vsel %vm7097_vm3, %v439_v20, %v441_v33  ;;  %v594_v20 = vld [vmem:[%s7117_s2] sm:$0xff]  ;;  %s7169_s2 = smov 85  }
  0xa6   : > { %v4186_v45 = vpack.c.bf16 %v445_v37, %v417_v36  ;;  %v5375_v36 = vrot.slane %v360_v31, %v789_v29 }
  0xa8   : > { %v465_v34 = vpop.permute.xlu0 %464  ;;  %v467_v35 = vpop.permute.xlu1 %466 }
  0xa9   : > { %v472_v42 = vsel %vm7074_vm4, %v465_v34, %v467_v35 }
  0xac   : > { %v493_v38 = vpop.permute.xlu0 %492  ;;  %v495_v39 = vpop.permute.xlu1 %494  ;;  %v606_v40 = vld [vmem:[#allocation4 + $0x58] sm:$0xff] }
  0xad   : > { %v610_v41 = vld [vmem:[#allocation4 + $0x78] sm:$0xff]  ;;  %v500_v43 = vsel %vm7073_vm5, %v493_v38, %v495_v39 }
  0xae   : > { %v4184_v44 = vpack.c.bf16 %v610_v41, %v606_v40  ;;  %v4172_v46 = vpack.c.bf16 %v500_v43, %v472_v42 }
  0xb0   : > { %4185 = vmatprep.subr.bf16.mxu1 %v4184_v44  ;;  %v463_v47 = vpop.permute.xlu0 %462  ;;  %v491_v48 = vpop.permute.xlu1 %490  ;;  %4173 = vmatprep.subr.bf16.mxu0 %v4172_v46 }
  0xb1   : > { %4187 = vmatpush1.bf16.msra.mxu1 %v4186_v45  ;;  %v471_v49 = vsel %vm7074_vm4, %v463_v47, %v465_v34  ;;  %v499_v50 = vsel %vm7073_vm5, %v491_v48, %v493_v38  ;;  %v5373_v34 = vrot.slane %v360_v31, %v785_v28  ;;  %v793_v38 = vsub.s32 2, %v784_v27 }
  0xb2   : > { %v4174_v51 = vpack.c.bf16 %v499_v50, %v471_v49 }
  0xb3   : > { %v5379_v42 = vrot.slane %v360_v31, %v793_v38 }
  0xb4   : > { %v469_v52 = vpop.permute.xlu0 %468  ;;  %v497_v53 = vpop.permute.xlu1 %496  ;;  %4175 = vmatpush1.bf16.msra.mxu0 %v4174_v51 }
  0xb5   : > { %481 = vst.msk [vmem:[#allocation4 + $0x98] sm:$0xff] %vm368_vm0, %v469_v52  ;;  %509 = vst.msk [vmem:[#allocation4 + $0xb8] sm:$0xff] %vm368_vm0, %v497_v53  ;;  %v473_v56 = vsel %vm7074_vm4, %v467_v35, %v469_v52  ;;  %v501_v57 = vsel %vm7073_vm5, %v495_v39, %v497_v53  ;;  %v797_v39 = vsub.s32 3, %v784_v27 }
  0xb6   : > { %v4190_v1 = vpack.c.bf16 %v501_v57, %v473_v56 }
  0xb7   : > { %v5381_v44 = vrot.slane %v360_v31, %v797_v39 }
  0xb8   : > { %v521_v54 = vpop.permute.xlu0 %520  ;;  %v523_v55 = vpop.permute.xlu1 %522 }
  0xb9   : > { %v528_v62 = vsel %vm7068_vm6, %v521_v54, %v523_v55 }
  0xbc   : > { %v549_v58 = vpop.permute.xlu0 %548  ;;  %v551_v59 = vpop.permute.xlu1 %550  ;;  %v614_v60 = vld [vmem:[#allocation4 + $0x98] sm:$0xff] }
  0xbd   : > { %v618_v61 = vld [vmem:[#allocation4 + $0xb8] sm:$0xff]  ;;  %v556_v63 = vsel %vm7014_vm7, %v549_v58, %v551_v59 }
  0xbe   : > { %v4188_v0 = vpack.c.bf16 %v618_v61, %v614_v60  ;;  %v4176_v2 = vpack.c.bf16 %v556_v63, %v528_v62 }
  0xc0   : > { %4189 = vmatprep.subr.bf16.mxu1 %v4188_v0  ;;  %v519_v3 = vpop.permute.xlu0 %518  ;;  %v547_v5 = vpop.permute.xlu1 %546  ;;  %4177 = vmatprep.subr.bf16.mxu0 %v4176_v2 }
  0xc1   : > { %4191 = vmatpush1.bf16.msra.mxu1 %v4190_v1  ;;  %v527_v6 = vsel %vm7068_vm6, %v519_v3, %v521_v54  ;;  %v555_v7 = vsel %vm7014_vm7, %v547_v5, %v549_v58 }
  0xc2   : > { %v4178_v8 = vpack.c.bf16 %v555_v7, %v527_v6 }
  0xc4   : > { %v525_v9 = vpop.permute.xlu0 %524  ;;  %v553_v10 = vpop.permute.xlu1 %552  ;;  %4179 = vmatpush1.bf16.msra.mxu0 %v4178_v8 }
  0xc5   : > { %537 = vst.msk [vmem:[#allocation4 + $0xd8] sm:$0xff] %vm368_vm0, %v525_v9  ;;  %565 = vst.msk [vmem:[#allocation4 + $0xf8] sm:$0xff] %vm368_vm0, %v553_v10  ;;  %v529_v14 = vsel %vm7068_vm6, %v523_v55, %v525_v9  ;;  %v557_v15 = vsel %vm7014_vm7, %v551_v59, %v553_v10 }
  0xc6   : > { %v4194_v23 = vpack.c.bf16 %v557_v15, %v529_v14  ;;  %v837_v15 = vld [vmem:[%s7120_s5] sm:$0xff]  ;;  %s7172_s5 = smov 127  }
  0xc8   : > { %v577_v11 = vpop.permute.xlu0 %576  ;;  %v579_v12 = vpop.permute.xlu1 %578 }
  0xc9   : > { %v584_v13 = vsel %vm7003_vm8, %v577_v11, %v579_v12 }
  0xca   : > { %656 = vmatprep.subr.mxu0 %v584_v13 }
  0xcc   : > { %v575_v16 = vpop.permute.xlu0 %574  ;;  %v581_v17 = vpop.permute.xlu1 %580  ;;  %v622_v18 = vld [vmem:[#allocation4 + $0xd8] sm:$0xff] }
  0xcd   : > { %v626_v19 = vld [vmem:[#allocation4 + $0xf8] sm:$0xff]  ;;  %v583_v21 = vsel %vm7003_vm8, %v575_v16, %v577_v11  ;;  %593 = vst.msk [vmem:[#allocation4 + $0x118] sm:$0xff] %vm368_vm0, %v581_v17  ;;  %v585_v25 = vsel %vm7003_vm8, %v579_v12, %v581_v17  ;;  %v833_v12 = vld [vmem:[%s7119_s4] sm:$0xff]  ;;  %s7171_s4 = smov 83  }
  0xce   : > { %v4192_v22 = vpack.c.bf16 %v626_v19, %v622_v18  ;;  %657 = vmatpush1.msra.mxu0 %v583_v21 }
  0xcf   : > { %4120 = vmatmul.mubr.msk.f32.vlgmr.msra.gmra.mrb[0].mxu0 %vm7068_vm6, %v594_v20 }
  0xd0   : > { %4193 = vmatprep.subr.bf16.mxu1 %v4192_v22  ;;  %1335 = vmatprep.mubr.f32.mxu0 %v5141_v4 }
  0xd1   : > { %4195 = vmatpush1.bf16.msra.mxu1 %v4194_v23 }
  0xd4   : > { %v630_v24 = vld [vmem:[#allocation4 + $0x118] sm:$0xff] }
  0xd5   : > { %727 = vmatprep.subr.mxu1 %v630_v24 }
  0xd6   : > { %728 = vmatpush1.msra.mxu1 %v585_v25 }
  0xd7   : > { %4121 = vmatmul.mubr.msk.f32.vlgmr.msra.gmra.mrb[0].mxu1 %vm7068_vm6, %v594_v20 }
  0xd8   : > { %1406 = vmatprep.mubr.f32.mxu1 %v5141_v4 }
  0xdd   : > { %v635_v30 = vpop.permute.xlu0 %634 }
 0x1a2   : > { %v706_v32 = vpop.f32.mrb[0].mxu0 }
 0x1a3   : > { %v707_v33 = vadd.f32 %v706_v32, %v635_v30  ;;  %v708_v35 = vpop.f32.mrb[1].mxu0 }
 0x1a4   : > { %v709_v37 = vadd.f32 %v708_v35, %v635_v30 }
 0x1a5   : > { %v803_v40 = vmul.f32 %v5373_v34, %v707_v33 }
 0x1a6   : > { %v804_v41 = vmul.f32 %v5375_v36, %v709_v37 }
 0x1a8   : > { %v807_v47 = vadd.f32 %v804_v41, %v803_v40 }
 0x1aa   : > { %v777_v43 = vpop.f32.mrb[0].mxu1 }
 0x1ab   : > { %v778_v45 = vadd.f32 %v777_v43, %v635_v30  ;;  %v779_v46 = vpop.f32.mrb[1].mxu1 }
 0x1ac   : > { %v780_v48 = vadd.f32 %v779_v46, %v635_v30 }
 0x1ad   : > { %v805_v49 = vmul.f32 %v5379_v42, %v778_v45 }
 0x1ae   : > { %v806_v50 = vmul.f32 %v5381_v44, %v780_v48 }
 0x1af   : > { %v808_v51 = vadd.f32 %v807_v47, %v805_v49 }
 0x1b0   : > { %v809_v52 = vsel %vm368_vm0, %v806_v50, 0.0 }
 0x1b1   : > { %v810_v53 = vadd.f32 %v809_v52, %v808_v51 }
 0x1b3   : > { %811 = vadd.xlane.f32.xlu1 %v810_v53 }
 0x240   : > { %v812_v54 = vpop.xlane.xlu1 %811 }
 0x241   : > { %v813_v55 = vmul.f32 0.00390625, %v812_v54 }
 0x243   : > { %v814_v56 = vsub.f32 %v707_v33, %v813_v55  ;;  %v815_v57 = vsub.f32 %v709_v37, %v813_v55  ;;  %v816_v58 = vsub.f32 %v778_v45, %v813_v55  ;;  %v817_v59 = vsub.f32 %v780_v48, %v813_v55 }
 0x245   : > { %v818_v60 = vmul.f32 %v814_v56, %v5373_v34  ;;  %v819_v61 = vmul.f32 %v815_v57, %v5375_v36  ;;  %v820_v62 = vmul.f32 %v816_v58, %v5379_v42  ;;  %v821_v63 = vmul.f32 %v817_v59, %v5381_v44 }
 0x247   : > { %v822_v0 = vmul.f32 %v818_v60, %v818_v60  ;;  %v823_v1 = vmul.f32 %v819_v61, %v819_v61  ;;  %v825_v2 = vmul.f32 %v821_v63, %v821_v63  ;;  %v824_v3 = vmul.f32 %v820_v62, %v820_v62 }
 0x249   : > { %v826_v5 = vadd.f32 %v823_v1, %v822_v0  ;;  %v828_v7 = vsel %vm368_vm0, %v825_v2, 0.0 }
 0x24b   : > { %v827_v6 = vadd.f32 %v826_v5, %v824_v3 }
 0x24d   : > { %v829_v8 = vadd.f32 %v828_v7, %v827_v6 }
 0x24f   : > { %830 = vadd.xlane.f32.xlu0 %v829_v8 }
 0x2dc   : > { %v831_v9 = vpop.xlane.xlu0 %830 }
 0x2dd   : > { %v832_v10 = vmul.f32 0.00390625, %v831_v9 }
 0x2df   : > { %v834_v11 = vadd.f32 1e-05, %v832_v10 }
 0x2e1   : > { %5104 = vrsqrt.f32 %v834_v11 }
 0x2eb   : > { %v5105_v13 = vpop.eup %5104 }
 0x2ec   : > { %v836_v14 = vmul.f32 %v5105_v13, %v833_v12 }
 0x2ee   : > { %842 = vperm.xlu1 %4548, %v836_v14   ;;  %v838_v16 = vmul.f32 %v836_v14, %v813_v55 }
 0x2f0   : > { %v839_v17 = vsub.f32 %v837_v15, %v838_v16 }
 0x2f2   : > { %851 = vperm.xlu0 %4547, %v839_v17  }
 0x36d   : > { %v843_v18 = vpop.permute.xlu1 %842 }
 0x36e   : > { %v845_v19 = vmul.f32 %v843_v18, %v707_v33  ;;  %v846_v20 = vmul.f32 %v843_v18, %v709_v37  ;;  %v847_v21 = vmul.f32 %v843_v18, %v778_v45  ;;  %v848_v22 = vmul.f32 %v843_v18, %v780_v48 }
 0x371   : > { %v852_v23 = vpop.permute.xlu0 %851 }
 0x372   : > { %v5397_v24 = vadd.f32 %v852_v23, %v845_v19  ;;  %v5399_v25 = vadd.f32 %v852_v23, %v846_v20  ;;  %v5401_v26 = vadd.f32 %v852_v23, %v847_v21  ;;  %v5403_v27 = vadd.f32 %v852_v23, %v848_v22 }
 0x374   : > { %v5406_v28 = vmul.f32 0.70710677, %v5397_v24  ;;  %v5409_v29 = vmul.f32 0.70710677, %v5399_v25  ;;  %v5412_v30 = vmul.f32 0.70710677, %v5401_v26 }
 0x375   : > { %v5415_v31 = vmul.f32 0.70710677, %v5403_v27 }
 0x376   : > { %v870_v32 = vand.u32 2147483647, %v5406_v28  ;;  %v871_v33 = vand.u32 2147483647, %v5409_v29  ;;  %v872_v35 = vand.u32 2147483647, %v5412_v30 }
 0x377   : > { %v873_v37 = vand.u32 2147483647, %v5415_v31  ;;  %vm862_vm9 = vcmp.ge.f32.partialorder %v5406_v28, 0.0  ;;  %vm863_vm11 = vcmp.ge.f32.partialorder %v5409_v29, 0.0  ;;  %vm864_vm12 = vcmp.ge.f32.partialorder %v5412_v30, 0.0 }
 0x378   : > { %v874_v38 = vmul.f32 0.3275911, %v870_v32  ;;  %v875_v39 = vmul.f32 0.3275911, %v871_v33  ;;  %v876_v40 = vmul.f32 0.3275911, %v872_v35 }
 0x379   : > { %v877_v41 = vmul.f32 0.3275911, %v873_v37  ;;  %v926_v48 = vsub.f32 0.0, %v870_v32  ;;  %v927_v49 = vsub.f32 0.0, %v871_v33  ;;  %v928_v50 = vsub.f32 0.0, %v872_v35 }
 0x37a   : > { %v878_v43 = vadd.f32 1.0, %v874_v38  ;;  %v879_v45 = vadd.f32 1.0, %v875_v39  ;;  %v880_v46 = vadd.f32 1.0, %v876_v40  ;;  %v929_v51 = vsub.f32 0.0, %v873_v37 }
 0x37b   : > { %v881_v47 = vadd.f32 1.0, %v877_v41  ;;  %v930_v53 = vmul.f32 %v926_v48, %v870_v32  ;;  %v931_v55 = vmul.f32 %v927_v49, %v871_v33  ;;  %v932_v58 = vmul.f32 %v928_v50, %v872_v35 }
 0x37c   : > { %5106 = vrcp.f32 %v878_v43  ;;  %v933_v61 = vmul.f32 %v929_v51, %v873_v37  ;;  %vm865_vm13 = vcmp.ge.f32.partialorder %v5415_v31, 0.0  ;;  %v955_v31 = vmul.f32 0.5, %v5399_v25 }
 0x37d   : > { %5108 = vrcp.f32 %v879_v45  ;;  %v934_v0 = vmul.f32 1.442695, %v930_v53  ;;  %v936_v3 = vmul.f32 1.442695, %v931_v55  ;;  %v938_v7 = vmul.f32 1.442695, %v932_v58 }
 0x37e   : > { %5110 = vrcp.f32 %v880_v46  ;;  %v940_v10 = vmul.f32 1.442695, %v933_v61  ;;  %v5144_v58 = vmov -1.0  }
 0x37f   : > { %5112 = vrcp.f32 %v881_v47  ;;  %v868_v29 = vsel %vm864_vm12, 1.0, %v5144_v58  ;;  %vm1443_vm12 = vcmask 1047920  }
 0x380   : > { %5114 = vpow2.f32 %v934_v0 }
 0x381   : > { %5116 = vpow2.f32 %v936_v3 }
 0x382   : > { %5118 = vpow2.f32 %v938_v7  ;;  %v956_v7 = vmul.f32 0.5, %v5401_v26 }
 0x383   : > { %5120 = vpow2.f32 %v940_v10 }
 0x386   : > { %v5107_v52 = vpop.eup %5106 }
 0x387   : > { %v5109_v54 = vpop.eup %5108  ;;  %v890_v56 = vmul.f32 1.0614054, %v5107_v52 }
 0x388   : > { %v5111_v57 = vpop.eup %5110  ;;  %v891_v59 = vmul.f32 1.0614054, %v5109_v54 }
 0x389   : > { %v5113_v60 = vpop.eup %5112  ;;  %v892_v62 = vmul.f32 1.0614054, %v5111_v57  ;;  %v894_v63 = vadd.f32 -1.4531521, %v890_v56 }
 0x38a   : > { %v895_v1 = vadd.f32 -1.4531521, %v891_v59  ;;  %v893_v2 = vmul.f32 1.0614054, %v5113_v60  ;;  %v5115_v45 = vpop.eup %5114  ;;  %v866_v59 = vsel %vm862_vm9, 1.0, %v5144_v58  ;;  %vm999_vm9 = vcmask 760832  }
 0x38b   : > { %v896_v5 = vadd.f32 -1.4531521, %v892_v62  ;;  %v898_v6 = vmul.f32 %v5107_v52, %v894_v63  ;;  %v5117_v48 = vpop.eup %5116  ;;  %v867_v63 = vsel %vm863_vm11, 1.0, %v5144_v58  ;;  %vm1420_vm11 = vcmask 1048432  }
 0x38c   : > { %v899_v8 = vmul.f32 %v5109_v54, %v895_v1  ;;  %v897_v9 = vadd.f32 -1.4531521, %v893_v2  ;;  %v5119_v51 = vpop.eup %5118  ;;  %v954_v2 = vmul.f32 0.5, %v5397_v24 }
 0x38d   : > { %v900_v11 = vmul.f32 %v5111_v57, %v896_v5  ;;  %v902_v12 = vadd.f32 1.4214138, %v898_v6  ;;  %v5121_v56 = vpop.eup %5120  ;;  %v869_v5 = vsel %vm865_vm13, 1.0, %v5144_v58  ;;  %vm6989_vm13 = vcmask 932864  }
 0x38e   : > { %v903_v13 = vadd.f32 1.4214138, %v899_v8  ;;  %v901_v14 = vmul.f32 %v5113_v60, %v897_v9 }
 0x38f   : > { %v904_v15 = vadd.f32 1.4214138, %v900_v11  ;;  %v906_v16 = vmul.f32 %v5107_v52, %v902_v12 }
 0x390   : > { %v907_v17 = vmul.f32 %v5109_v54, %v903_v13  ;;  %v905_v18 = vadd.f32 1.4214138, %v901_v14  ;;  %v957_v14 = vmul.f32 0.5, %v5403_v27 }
 0x391   : > { %v908_v19 = vmul.f32 %v5111_v57, %v904_v15  ;;  %v910_v20 = vadd.f32 -0.28449672, %v906_v16 }
 0x392   : > { %v911_v21 = vadd.f32 -0.28449672, %v907_v17  ;;  %v909_v22 = vmul.f32 %v5113_v60, %v905_v18 }
 0x393   : > { %v912_v23 = vadd.f32 -0.28449672, %v908_v19  ;;  %v914_v32 = vmul.f32 %v5107_v52, %v910_v20 }
 0x394   : > { %v915_v33 = vmul.f32 %v5109_v54, %v911_v21  ;;  %v913_v35 = vadd.f32 -0.28449672, %v909_v22 }
 0x395   : > { %v916_v37 = vmul.f32 %v5111_v57, %v912_v23  ;;  %v918_v38 = vadd.f32 0.2548296, %v914_v32  ;;  %v1262_v32 = vld [vmem:[%s7121_s7] sm:$0xff]  ;;  %s7174_s7 = smov 125  }
 0x396   : > { %v919_v39 = vadd.f32 0.2548296, %v915_v33  ;;  %v917_v40 = vmul.f32 %v5113_v60, %v913_v35 }
 0x397   : > { %v920_v41 = vadd.f32 0.2548296, %v916_v37  ;;  %v922_v43 = vmul.f32 %v5107_v52, %v918_v38 }
 0x398   : > { %v923_v46 = vmul.f32 %v5109_v54, %v919_v39  ;;  %v921_v47 = vadd.f32 0.2548296, %v917_v40 }
 0x399   : > { %v924_v49 = vmul.f32 %v5111_v57, %v920_v41  ;;  %v942_v50 = vmul.f32 %v5115_v45, %v922_v43 }
 0x39a   : > { %v943_v53 = vmul.f32 %v5117_v48, %v923_v46  ;;  %v925_v55 = vmul.f32 %v5113_v60, %v921_v47 }
 0x39b   : > { %v944_v52 = vmul.f32 %v5119_v51, %v924_v49  ;;  %v946_v54 = vsub.f32 1.0, %v942_v50 }
 0x39c   : > { %v947_v57 = vsub.f32 1.0, %v943_v53  ;;  %v945_v28 = vmul.f32 %v5121_v56, %v925_v55 }
 0x39d   : > { %v948_v61 = vsub.f32 1.0, %v944_v52  ;;  %v950_v62 = vmul.f32 %v946_v54, %v866_v59 }
 0x39e   : > { %v951_v0 = vmul.f32 %v947_v57, %v867_v63  ;;  %v949_v60 = vsub.f32 1.0, %v945_v28 }
 0x39f   : > { %v952_v1 = vmul.f32 %v948_v61, %v868_v29  ;;  %v958_v3 = vadd.f32 1.0, %v950_v62 }
 0x3a0   : > { %v959_v30 = vadd.f32 1.0, %v951_v0  ;;  %v953_v6 = vmul.f32 %v949_v60, %v869_v5 }
 0x3a1   : > { %v960_v8 = vadd.f32 1.0, %v952_v1  ;;  %v962_v9 = vmul.f32 %v958_v3, %v954_v2 }
 0x3a2   : > { %v963_v12 = vmul.f32 %v959_v30, %v955_v31  ;;  %v961_v13 = vadd.f32 1.0, %v953_v6 }
 0x3a3   : > { %v964_v10 = vmul.f32 %v960_v8, %v956_v7  ;;  %v966_v11 = vmul.f32 %v962_v9, %v5373_v34 }
 0x3a4   : > { %v967_v26 = vmul.f32 %v963_v12, %v5375_v36  ;;  %v965_v15 = vmul.f32 %v961_v13, %v957_v14 }
 0x3a5   : > { %v968_v24 = vmul.f32 %v964_v10, %v5379_v42  ;;  %980 = vrot.lane.b32.xlu1 %v966_v11, %s5145_s28 }
 0x3a6   : > { %v969_v25 = vmul.f32 %v965_v15, %v5381_v44 }
 0x3a7   : > { %984 = vrot.lane.b32.xlu0 %v968_v24, %s5145_s28 }
 0x3a9   : > { %982 = vrot.lane.b32.xlu1 %v967_v26, %s5145_s28 }
 0x3ad   : > { %986 = vrot.lane.b32.xlu1 %v969_v25, %s5145_s28  ;;  %s6883_s28 = smov 110  }
 0x417   : > { %v981_v16 = vpop.permute.xlu1 %980 }
 0x418   : > { %996 = vst.msk [vmem:[#allocation2] sm:$0xff] %vm995_vm15, %v981_v16  ;;  %vm7016_vm15 = vcmask 1014784  }
 0x419   : > { %v985_v17 = vpop.permute.xlu0 %984 }
 0x41b   : > { %v983_v18 = vpop.permute.xlu1 %982 }
 0x41c   : > { %v5437_v19 = vsel %vm970_vm10, %v981_v16, %v983_v18  ;;  %v5440_v20 = vsel %vm970_vm10, %v983_v18, %v985_v17 }
 0x41f   : > { %v5442_v27 = vld [vmem:[#allocation2] sm:$0xff]  ;;  %v987_v21 = vpop.permute.xlu1 %986 }
 0x420   : > { %v990_v22 = vsel %vm970_vm10, %v985_v17, %v987_v21  ;;  %1071 = vrot.lane.b32.xlu1 %v5442_v27, %s6936_s21  ;;  %1017 = vrot.lane.b32.xlu0 %v5442_v27, %s6925_s19  ;;  %vm1418_vm10 = vcmask 375808  }
 0x421   : > { %1000 = vst.msk [vmem:[#allocation2 + $0x18] sm:$0xff] %vm999_vm9, %v990_v22  ;;  %vm7002_vm9 = vcmask 916480  }
 0x422   : > { %1423 = vst.msk [vmem:[#allocation3 + $0x30] sm:$0xff] %vm1418_vm10, %v5141_v4  ;;  %1419 = vst.msk [vmem:[#allocation3 + $0x8] sm:$0xff] %vm1418_vm10, %v5141_v4 }
 0x424   : > { %1125 = vrot.lane.b32.xlu1 %v5442_v27, %s6926_s23  ;;  %1044 = vrot.lane.b32.xlu0 %v5442_v27, %s6957_s20 }
 0x428   : > { %v1004_v23 = vld [vmem:[#allocation2 + $0x18] sm:$0xff]  ;;  %1179 = vrot.lane.b32.xlu1 %v5442_v27, %s6930_s25  ;;  %1098 = vrot.lane.b32.xlu0 %v5442_v27, %s6935_s22 }
 0x429   : > { %1008 = vst.msk [vmem:[#allocation4 + $0x18] sm:$0xff] %vm368_vm0, %v1004_v23  ;;  %v2816_v33 = vld [vmem:[#allocation3 + $0x30] sm:$0xff] }
 0x42c   : > { %1152 = vrot.lane.b32.xlu0 %v5442_v27, %s6934_s24  ;;  %1021 = vrot.lane.b32.xlu1 %v5440_v20, %s6925_s19 }
 0x430   : > { %1019 = vrot.lane.b32.xlu0 %v5437_v19, %s6925_s19  ;;  %1023 = vrot.lane.b32.xlu1 %v1004_v23, %s6925_s19  ;;  %v1229_v59 = vld [vmem:[#allocation4 + $0x18] sm:$0xff] }
 0x434   : > { %1046 = vrot.lane.b32.xlu0 %v5437_v19, %s6957_s20  ;;  %1048 = vrot.lane.b32.xlu1 %v5440_v20, %s6957_s20 }
 0x438   : > { %1073 = vrot.lane.b32.xlu0 %v5437_v19, %s6936_s21  ;;  %1075 = vrot.lane.b32.xlu1 %v5440_v20, %s6936_s21 }
 0x43c   : > { %1050 = vrot.lane.b32.xlu0 %v1004_v23, %s6957_s20  ;;  %1077 = vrot.lane.b32.xlu1 %v1004_v23, %s6936_s21 }
 0x440   : > { %1100 = vrot.lane.b32.xlu0 %v5437_v19, %s6935_s22  ;;  %1102 = vrot.lane.b32.xlu1 %v5440_v20, %s6935_s22 }
 0x444   : > { %1127 = vrot.lane.b32.xlu0 %v5437_v19, %s6926_s23  ;;  %1129 = vrot.lane.b32.xlu1 %v5440_v20, %s6926_s23 }
 0x448   : > { %1104 = vrot.lane.b32.xlu0 %v1004_v23, %s6935_s22  ;;  %1131 = vrot.lane.b32.xlu1 %v1004_v23, %s6926_s23 }
 0x44c   : > { %1154 = vrot.lane.b32.xlu0 %v5437_v19, %s6934_s24  ;;  %1156 = vrot.lane.b32.xlu1 %v5440_v20, %s6934_s24 }
 0x450   : > { %1181 = vrot.lane.b32.xlu0 %v5437_v19, %s6930_s25  ;;  %1183 = vrot.lane.b32.xlu1 %v5440_v20, %s6930_s25 }
 0x454   : > { %1158 = vrot.lane.b32.xlu0 %v1004_v23, %s6934_s24  ;;  %1185 = vrot.lane.b32.xlu1 %v1004_v23, %s6930_s25 }
 0x458   : > { %1208 = vrot.lane.b32.xlu0 %v5437_v19, %s6931_s26  ;;  %1210 = vrot.lane.b32.xlu1 %v5440_v20, %s6931_s26 }
 0x45c   : > { %1206 = vrot.lane.b32.xlu0 %v5442_v27, %s6931_s26  ;;  %1212 = vrot.lane.b32.xlu1 %v1004_v23, %s6931_s26 }
 0x460   : > { %1265 = vperm.xlu0 %4547, %v1262_v32   ;;  %2831 = vrot.lane.b32.xlu1 %v5141_v4, %s6909_s11 }
 0x464   : > { %2871 = vrot.lane.b32.xlu0 %v5141_v4, %s6907_s12  ;;  %2911 = vrot.lane.b32.xlu1 %v5141_v4, %s6905_s16 }
 0x468   : > { %2951 = vrot.lane.b32.xlu0 %v5141_v4, %s6897_s17  ;;  %2991 = vrot.lane.b32.xlu1 %v5141_v4, %s6879_s18  ;;  %s6891_s18 = smov 85   ;;  %s6917_s17 = smov 44  }
 0x46c   : > { %3031 = vrot.lane.b32.xlu0 %v5141_v4, %s6881_s27  ;;  %3071 = vrot.lane.b32.xlu1 %v5141_v4, %s6883_s28  ;;  %s6893_s27 = smov 84   ;;  %s6895_s28 = smov 83  }
 0x470   : > { %3110 = vrot.lane.b32.xlu0 %v5141_v4, %s6885_s29  ;;  %3150 = vrot.lane.b32.xlu1 %v5141_v4, %s6887_s30  ;;  %s6899_s29 = smov 82   ;;  %s6932_s30 = smov 68  }
 0x474   : > { %3190 = vrot.lane.b32.xlu0 %v5141_v4, %s6889_s15  ;;  %3230 = vrot.lane.b32.xlu1 %v5141_v4, %s6891_s18  ;;  %s6921_s15 = smov 67   ;;  %s6901_s18 = smov 12  }
 0x478   : > { %3270 = vrot.lane.b32.xlu0 %v5141_v4, %s6893_s27  ;;  %3310 = vrot.lane.b32.xlu1 %v5141_v4, %s6895_s28  ;;  %s6903_s27 = smov 11   ;;  %s6919_s28 = smov 66  }
 0x47c   : > { %3350 = vrot.lane.b32.xlu0 %v5141_v4, %s6899_s29  ;;  %2153 = vrot.lane.b32.xlu1 %v5141_v4, %s6932_s30  ;;  %s6911_s29 = smov 10  }
 0x480   : > { %2193 = vrot.lane.b32.xlu0 %v5141_v4, %s6921_s15  ;;  %2713 = vrot.lane.b32.xlu1 %v5141_v4, %s6901_s18  ;;  %s6915_s18 = smov 43   ;;  %s6933_s15 = smov 69  }
 0x484   : > { %2753 = vrot.lane.b32.xlu0 %v5141_v4, %s6903_s27  ;;  %2233 = vrot.lane.b32.xlu1 %v5141_v4, %s6919_s28  ;;  %s6913_s27 = smov 42   ;;  %s6929_s28 = smov 94  }
 0x488   : > { %2273 = vrot.lane.b32.xlu0 %v5141_v4, %s6917_s17  ;;  %2793 = vrot.lane.b32.xlu1 %v5141_v4, %s6911_s29  ;;  %s6952_s29 = smov 123   ;;  %s6928_s17 = smov 96  }
 0x48c   : > { %2833 = vrot.lane.b32.xlu0 %v2816_v33, %s6909_s11  ;;  %2313 = vrot.lane.b32.xlu1 %v5141_v4, %s6915_s18  ;;  %s6949_s11 = smov 122   ;;  %s6923_s18 = smov 95  }
 0x490   : > { %2353 = vrot.lane.b32.xlu0 %v5141_v4, %s6913_s27  ;;  %2873 = vrot.lane.b32.xlu1 %v2816_v33, %s6907_s12  ;;  %s5169_s12 = smov 46   ;;  %s6927_s27 = smov 97  }
 0x492   : > { %v1018_v35 = vpop.permute.xlu0 %1017  ;;  %v1072_v37 = vpop.permute.xlu1 %1071 }
 0x494   : > { %2913 = vrot.lane.b32.xlu0 %v2816_v33, %s6905_s16  ;;  %s6955_s16 = smov 124  }
 0x496   : > { %v1045_v38 = vpop.permute.xlu0 %1044  ;;  %v1126_v39 = vpop.permute.xlu1 %1125 }
 0x49a   : > { %v1099_v40 = vpop.permute.xlu0 %1098  ;;  %v5558_v41 = vpop.permute.xlu1 %1179 }
 0x49e   : > { %v5560_v43 = vpop.permute.xlu0 %1152  ;;  %v1022_v45 = vpop.permute.xlu1 %1021 }
 0x4a2   : > { %v1020_v46 = vpop.permute.xlu0 %1019  ;;  %v1024_v47 = vpop.permute.xlu1 %1023 }
 0x4a3   : > { %v1025_v48 = vsel %vm7063_vm1, %v1018_v35, %v1020_v46  ;;  %v1026_v4 = vsel %vm7063_vm1, %v1020_v46, %v1022_v45  ;;  %v1027_v49 = vsel %vm7063_vm1, %v1022_v45, %v1024_v47  ;;  %1035 = vst.msk [vmem:[#allocation4 + $0x38] sm:$0xff] %vm368_vm0, %v1024_v47 }
 0x4a4   : > { %v4196_v50 = vpack.c.bf16 %v1026_v4, %v5437_v19  ;;  %v4198_v51 = vpack.c.bf16 %v1025_v48, %v5442_v27  ;;  %v4214_v63 = vpack.c.bf16 %v1027_v49, %v5440_v20 }
 0x4a6   : > { %v1047_v53 = vpop.permute.xlu0 %1046  ;;  %v1049_v55 = vpop.permute.xlu1 %1048  ;;  %4197 = vmatprep.subr.bf16.mxu0 %v4196_v50 }
 0x4a7   : > { %v1052_v56 = vsel %vm7064_vm2, %v1045_v38, %v1047_v53  ;;  %v1053_v52 = vsel %vm7064_vm2, %v1047_v53, %v1049_v55  ;;  %4199 = vmatpush1.bf16.msra.mxu0 %v4198_v51 }
 0x4aa   : > { %v1074_v54 = vpop.permute.xlu0 %1073  ;;  %v1076_v58 = vpop.permute.xlu1 %1075  ;;  %v1233_v57 = vld [vmem:[#allocation4 + $0x38] sm:$0xff] }
 0x4ab   : > { %v1079_v28 = vsel %vm7097_vm3, %v1072_v37, %v1074_v54  ;;  %v1080_v61 = vsel %vm7097_vm3, %v1074_v54, %v1076_v58  ;;  %v4212_v62 = vpack.c.bf16 %v1233_v57, %v1229_v59 }
 0x4ac   : > { %v4200_v29 = vpack.c.bf16 %v1080_v61, %v1053_v52  ;;  %v4202_v0 = vpack.c.bf16 %v1079_v28, %v1052_v56  ;;  %v5604_v28 = vld [vmem:[#allocation3] sm:$0xff] }
 0x4ad   : > { %4213 = vmatprep.subr.bf16.mxu1 %v4212_v62  ;;  %1421 = vst.msk [vmem:[#allocation3 + $0x20] sm:$0xff] %vm1420_vm11, %v5604_v28  ;;  %vm7067_vm11 = vcmask 1022976  }
 0x4ae   : > { %v1051_v60 = vpop.permute.xlu0 %1050  ;;  %4215 = vmatpush1.bf16.msra.mxu1 %v4214_v63  ;;  %v1078_v1 = vpop.permute.xlu1 %1077  ;;  %4201 = vmatprep.subr.bf16.mxu0 %v4200_v29 }
 0x4af   : > { %v1054_v2 = vsel %vm7064_vm2, %v1049_v55, %v1051_v60  ;;  %1062 = vst.msk [vmem:[#allocation4 + $0x58] sm:$0xff] %vm368_vm0, %v1051_v60  ;;  %v1081_v3 = vsel %vm7097_vm3, %v1076_v58, %v1078_v1  ;;  %1089 = vst.msk [vmem:[#allocation4 + $0x78] sm:$0xff] %vm368_vm0, %v1078_v1  ;;  %4203 = vmatpush1.bf16.msra.mxu0 %v4202_v0  ;;  %v1225_v55 = vld [vmem:[%s7122_s6] sm:$0xff]  ;;  %s7173_s6 = smov 126  }
 0x4b0   : > { %v4218_v24 = vpack.c.bf16 %v1081_v3, %v1054_v2 }
 0x4b2   : > { %v1101_v5 = vpop.permute.xlu0 %1100  ;;  %v1103_v30 = vpop.permute.xlu1 %1102 }
 0x4b3   : > { %v1106_v6 = vsel %vm7074_vm4, %v1099_v40, %v1101_v5  ;;  %v1107_v7 = vsel %vm7074_vm4, %v1101_v5, %v1103_v30 }
 0x4b6   : > { %v1128_v8 = vpop.permute.xlu0 %1127  ;;  %v1130_v9 = vpop.permute.xlu1 %1129  ;;  %v1237_v31 = vld [vmem:[#allocation4 + $0x58] sm:$0xff] }
 0x4b7   : > { %v1241_v10 = vld [vmem:[#allocation4 + $0x78] sm:$0xff]  ;;  %v1133_v11 = vsel %vm7073_vm5, %v1126_v39, %v1128_v8  ;;  %v1134_v12 = vsel %vm7073_vm5, %v1128_v8, %v1130_v9 }
 0x4b8   : > { %v4216_v13 = vpack.c.bf16 %v1241_v10, %v1237_v31  ;;  %v4204_v14 = vpack.c.bf16 %v1134_v12, %v1107_v7  ;;  %v4206_v26 = vpack.c.bf16 %v1133_v11, %v1106_v6 }
 0x4ba   : > { %4217 = vmatprep.subr.bf16.mxu1 %v4216_v13  ;;  %v1105_v15 = vpop.permute.xlu0 %1104  ;;  %v1132_v25 = vpop.permute.xlu1 %1131  ;;  %4205 = vmatprep.subr.bf16.mxu0 %v4204_v14 }
 0x4bb   : > { %4219 = vmatpush1.bf16.msra.mxu1 %v4218_v24  ;;  %v1108_v16 = vsel %vm7074_vm4, %v1103_v30, %v1105_v15  ;;  %1116 = vst.msk [vmem:[#allocation4 + $0x98] sm:$0xff] %vm368_vm0, %v1105_v15  ;;  %v1135_v17 = vsel %vm7073_vm5, %v1130_v9, %v1132_v25  ;;  %1143 = vst.msk [vmem:[#allocation4 + $0xb8] sm:$0xff] %vm368_vm0, %v1132_v25  ;;  %4207 = vmatpush1.bf16.msra.mxu0 %v4206_v26 }
 0x4bc   : > { %v4222_v38 = vpack.c.bf16 %v1135_v17, %v1108_v16 }
 0x4be   : > { %v1155_v18 = vpop.permute.xlu0 %1154  ;;  %v1157_v19 = vpop.permute.xlu1 %1156 }
 0x4bf   : > { %v1160_v20 = vsel %vm7068_vm6, %v5560_v43, %v1155_v18  ;;  %v1161_v27 = vsel %vm7068_vm6, %v1155_v18, %v1157_v19 }
 0x4c2   : > { %v1182_v21 = vpop.permute.xlu0 %1181  ;;  %v1184_v22 = vpop.permute.xlu1 %1183  ;;  %v1245_v23 = vld [vmem:[#allocation4 + $0x98] sm:$0xff] }
 0x4c3   : > { %v1249_v32 = vld [vmem:[#allocation4 + $0xb8] sm:$0xff]  ;;  %v1187_v33 = vsel %vm7014_vm7, %v5558_v41, %v1182_v21  ;;  %v1188_v35 = vsel %vm7014_vm7, %v1182_v21, %v1184_v22 }
 0x4c4   : > { %v4220_v37 = vpack.c.bf16 %v1249_v32, %v1245_v23  ;;  %v4208_v39 = vpack.c.bf16 %v1188_v35, %v1161_v27  ;;  %v4210_v40 = vpack.c.bf16 %v1187_v33, %v1160_v20 }
 0x4c6   : > { %4221 = vmatprep.subr.bf16.mxu1 %v4220_v37  ;;  %v1159_v45 = vpop.permute.xlu0 %1158  ;;  %v1186_v46 = vpop.permute.xlu1 %1185  ;;  %4209 = vmatprep.subr.bf16.mxu0 %v4208_v39 }
 0x4c7   : > { %4223 = vmatpush1.bf16.msra.mxu1 %v4222_v38  ;;  %v1162_v43 = vsel %vm7068_vm6, %v1157_v19, %v1159_v45  ;;  %1170 = vst.msk [vmem:[#allocation4 + $0xd8] sm:$0xff] %vm368_vm0, %v1159_v45  ;;  %v1189_v47 = vsel %vm7014_vm7, %v1184_v22, %v1186_v46  ;;  %1197 = vst.msk [vmem:[#allocation4 + $0xf8] sm:$0xff] %vm368_vm0, %v1186_v46  ;;  %4211 = vmatpush1.bf16.msra.mxu0 %v4210_v40  ;;  %vm3234_vm7 = vcmask 695296  }
 0x4c8   : > { %v4226_v58 = vpack.c.bf16 %v1189_v47, %v1162_v43 }
 0x4ca   : > { %v1209_v41 = vpop.permute.xlu0 %1208  ;;  %v1211_v48 = vpop.permute.xlu1 %1210 }
 0x4cb   : > { %v1215_v4 = vsel %vm7003_vm8, %v1209_v41, %v1211_v48 }
 0x4cc   : > { %1287 = vmatprep.subr.mxu0 %v1215_v4 }
 0x4ce   : > { %v1207_v49 = vpop.permute.xlu0 %1206  ;;  %v1213_v50 = vpop.permute.xlu1 %1212  ;;  %v1253_v51 = vld [vmem:[#allocation4 + $0xd8] sm:$0xff] }
 0x4cf   : > { %v1257_v53 = vld [vmem:[#allocation4 + $0xf8] sm:$0xff]  ;;  %v1214_v56 = vsel %vm7003_vm8, %v1207_v49, %v1209_v41  ;;  %v1216_v52 = vsel %vm7003_vm8, %v1211_v48, %v1213_v50  ;;  %1224 = vst.msk [vmem:[#allocation4 + $0x118] sm:$0xff] %vm368_vm0, %v1213_v50  ;;  %vm7013_vm0 = vcmask 900096   ;;  %vm7027_vm8 = vcmask 719872  }
 0x4d0   : > { %v4224_v54 = vpack.c.bf16 %v1257_v53, %v1253_v51  ;;  %1288 = vmatpush1.msra.mxu0 %v1214_v56 }
 0x4d1   : > { %4122 = vmatmul.mubr.msk.f32.vlgmr.msra.gmra.mrb[2].mxu0 %vm7068_vm6, %v1225_v55 }
 0x4d2   : > { %4225 = vmatprep.subr.bf16.mxu1 %v4224_v54  ;;  %v5611_v7 = vpop.permute.xlu1 %2831 }
 0x4d3   : > { %4227 = vmatpush1.bf16.msra.mxu1 %v4226_v58  ;;  %7123 = vst [vmem:[#allocation7_spill] sm:$0xff] %v5611_v7 }
 0x4d6   : > { %v1261_v59 = vld [vmem:[#allocation4 + $0x118] sm:$0xff]  ;;  %v5615_v9 = vpop.permute.xlu1 %2911 }
 0x4d7   : > { %1358 = vmatprep.subr.mxu1 %v1261_v59  ;;  %7125 = vst [vmem:[#allocation9_spill] sm:$0xff] %v5615_v9 }
 0x4d8   : > { %1359 = vmatpush1.msra.mxu1 %v1216_v52 }
 0x4d9   : > { %4123 = vmatmul.mubr.msk.f32.vlgmr.msra.gmra.mrb[2].mxu1 %vm7068_vm6, %v1225_v55 }
 0x4df   : > { %v1266_v62 = vpop.permute.xlu0 %1265 }
 0x4e3   : > { %v5613_v8 = vpop.permute.xlu0 %2871 }
 0x4e4   : > { %7124 = vst [vmem:[#allocation8_spill] sm:$0xff] %v5613_v8 }
 0x4e7   : > { %v5617_v31 = vpop.permute.xlu0 %2951 }
 0x4e8   : > { %7126 = vst [vmem:[#allocation10_spill] sm:$0xff] %v5617_v31 }
 0x5a4   : > { %v1337_v57 = vpop.f32.mrb[2].mxu0 }
 0x5a5   : > { %v1339_v61 = vpop.f32.mrb[3].mxu0  ;;  %v1338_v1 = vadd.f32 %v1337_v57, %v1266_v62 }
 0x5a6   : > { %v1340_v3 = vadd.f32 %v1339_v61, %v1266_v62 }
 0x5a7   : > { %v1413_v30 = vmul.f32 %v1338_v1, %v5373_v34 }
 0x5a8   : > { %v1414_v6 = vmul.f32 %v1340_v3, %v5375_v36 }
 0x5ac   : > { %v1408_v63 = vpop.f32.mrb[2].mxu1 }
 0x5ad   : > { %v1409_v29 = vadd.f32 %v1408_v63, %v1266_v62  ;;  %v1410_v0 = vpop.f32.mrb[3].mxu1 }
 0x5ae   : > { %v1411_v60 = vadd.f32 %v1410_v0, %v1266_v62 }
 0x5af   : > { %v1415_v2 = vmul.f32 %v1409_v29, %v5379_v42  ;;  %v5619_v42 = vpop.permute.xlu1 %2991 }
 0x5b0   : > { %v1416_v5 = vmul.f32 %v1411_v60, %v5381_v44  ;;  %7127 = vst [vmem:[#allocation11_spill] sm:$0xff] %v5619_v42  ;;  %v5621_v44 = vpop.permute.xlu0 %3031 }
 0x5b1   : > { %1432 = vrot.lane.b32.xlu1 %v1415_v2, %s5169_s12  ;;  %7128 = vst [vmem:[#allocation12_spill] sm:$0xff] %v5621_v44 }
 0x5b2   : > { %1434 = vrot.lane.b32.xlu0 %v1416_v5, %s5169_s12 }
 0x5b3   : > { %v5623_v10 = vpop.permute.xlu1 %3071 }
 0x5b4   : > { %7129 = vst [vmem:[#allocation13_spill] sm:$0xff] %v5623_v10  ;;  %v5625_v11 = vpop.permute.xlu0 %3110 }
 0x5b5   : > { %1428 = vrot.lane.b32.xlu1 %v1413_v30, %s5169_s12  ;;  %7130 = vst [vmem:[#allocation14_spill] sm:$0xff] %v5625_v11 }
 0x5b6   : > { %1430 = vrot.lane.b32.xlu0 %v1414_v6, %s5169_s12  ;;  %s6956_s12 = smov 125  }
 0x5b7   : > { %v5627_v34 = vpop.permute.xlu1 %3150 }
 0x5b8   : > { %7131 = vst [vmem:[#allocation15_spill] sm:$0xff] %v5627_v34  ;;  %v5629_v36 = vpop.permute.xlu0 %3190 }
 0x5b9   : > { %7132 = vst [vmem:[#allocation16_spill] sm:$0xff] %v5629_v36 }
 0x5bb   : > { %v5631_v12 = vpop.permute.xlu1 %3230 }
 0x5bc   : > { %7133 = vst [vmem:[#allocation17_spill] sm:$0xff] %v5631_v12  ;;  %v5633_v13 = vpop.permute.xlu0 %3270 }
 0x5bd   : > { %7134 = vst [vmem:[#allocation18_spill] sm:$0xff] %v5633_v13 }
 0x5bf   : > { %v5635_v24 = vpop.permute.xlu1 %3310 }
 0x5c0   : > { %7135 = vst [vmem:[#allocation19_spill] sm:$0xff] %v5635_v24  ;;  %v5637_v14 = vpop.permute.xlu0 %3350 }
 0x5c1   : > { %7136 = vst [vmem:[#allocation20_spill] sm:$0xff] %v5637_v14 }
 0x5c3   : > { %v5639_v26 = vpop.permute.xlu1 %2153 }
 0x5c4   : > { %7137 = vst [vmem:[#allocation21_spill] sm:$0xff] %v5639_v26  ;;  %v5641_v15 = vpop.permute.xlu0 %2193 }
 0x5c5   : > { %7138 = vst [vmem:[#allocation22_spill] sm:$0xff] %v5641_v15 }
 0x5c7   : > { %v5643_v25 = vpop.permute.xlu1 %2713 }
 0x5c8   : > { %7139 = vst [vmem:[#allocation23_spill] sm:$0xff] %v5643_v25  ;;  %v5645_v16 = vpop.permute.xlu0 %2753 }
 0x5c9   : > { %7140 = vst [vmem:[#allocation24_spill] sm:$0xff] %v5645_v16 }
 0x5cb   : > { %v5647_v17 = vpop.permute.xlu1 %2233 }
 0x5cc   : > { %7141 = vst [vmem:[#allocation25_spill] sm:$0xff] %v5647_v17  ;;  %v5649_v18 = vpop.permute.xlu0 %2273 }
 0x5cd   : > { %7142 = vst [vmem:[#allocation26_spill] sm:$0xff] %v5649_v18 }
 0x5cf   : > { %v5651_v19 = vpop.permute.xlu1 %2793 }
 0x5d0   : > { %7143 = vst [vmem:[#allocation27_spill] sm:$0xff] %v5651_v19  ;;  %v5653_v20 = vpop.permute.xlu0 %2833 }
 0x5d1   : > { %7144 = vst [vmem:[#allocation28_spill] sm:$0xff] %v5653_v20 }
 0x5d3   : > { %v5655_v27 = vpop.permute.xlu1 %2313 }
 0x5d4   : > { %7145 = vst [vmem:[#allocation29_spill] sm:$0xff] %v5655_v27  ;;  %v5657_v21 = vpop.permute.xlu0 %2353 }
 0x5d5   : > { %7146 = vst [vmem:[#allocation30_spill] sm:$0xff] %v5657_v21 }
 0x5d7   : > { %v5659_v22 = vpop.permute.xlu1 %2873 }
 0x5d8   : > { %7147 = vst [vmem:[#allocation31_spill] sm:$0xff] %v5659_v22  ;;  %v5661_v23 = vpop.permute.xlu0 %2913 }
 0x5d9   : > { %7148 = vst [vmem:[#allocation32_spill] sm:$0xff] %v5661_v23 }
 0x623   : > { %v1433_v32 = vpop.permute.xlu1 %1432 }
 0x624   : > { %v1435_v33 = vpop.permute.xlu0 %1434 }
 0x625   : > { %v1438_v35 = vsel %vm1418_vm10, %v1433_v32, %v1435_v33 }
 0x626   : > { %1448 = vst.msk [vmem:[#allocation3 + $0x20] sm:$0xff] %vm7013_vm0, %v1438_v35 }
 0x627   : > { %v1429_v37 = vpop.permute.xlu1 %1428 }
 0x628   : > { %1444 = vst.msk [vmem:[#allocation3 + $0x8] sm:$0xff] %vm1443_vm12, %v1429_v37  ;;  %v1431_v38 = vpop.permute.xlu0 %1430  ;;  %vm7098_vm12 = vcmask 998400  }
 0x629   : > { %v1436_v39 = vsel %vm1418_vm10, %v1429_v37, %v1431_v38  ;;  %v5667_v40 = vsel %vm1418_vm10, %v1431_v38, %v1433_v32  ;;  %vm7001_vm10 = vcmask 924672  }
 0x62a   : > { %1445 = vst [vmem:[#allocation3 + $0x10] sm:$0xff] %v1436_v39  ;;  %1446 = vst [vmem:[#allocation3 + $0x18] sm:$0xff] %v5667_v40  ;;  %v5671_v45 = vpack.i.bf16 %v5667_v40, %v1436_v39 }
 0x62d   : > { %v5696_v41 = vld [vmem:[#allocation3 + $0x20] sm:$0xff] }
 0x62e   : > { %v4639_v48 = vpack.i.bf16 %v5604_v28, %v5696_v41 }
 0x62f   : > { %v5673_v46 = vld [vmem:[#allocation3 + $0x8] sm:$0xff] }
 0x630   : > { %v4554_v43 = vpack.i.bf16 %v5673_v46, %v5604_v28  ;;  %v5678_v47 = vpack.i.bf16 %v1436_v39, %v5673_v46  ;;  %v4724_v4 = vpack.i.bf16 %v5696_v41, %v5673_v46  ;;  %v5908_v19 = vld [vmem:[#allocation3 + $0x8] sm:$0xff] }
 0x631   : > { %v5893_v22 = vld [vmem:[#allocation3 + $0x10] sm:$0xff]  ;;  %v5904_v20 = vld [vmem:[#allocation3 + $0x18] sm:$0xff] }
 0x632   : > { %4555 = vrot.lane.b32.xlu0 %v4554_v43, %s6957_s20  ;;  %4550 = vrot.lane.b32.xlu1 %v4554_v43, %s6925_s19  ;;  %v4929_v17 = vpack.i.bf16 %v5893_v22, %v5673_v46  ;;  %v4934_v26 = vpack.i.bf16 %v5893_v22, %v5908_v19 }
 0x636   : > { %4565 = vrot.lane.b32.xlu0 %v4554_v43, %s6955_s16  ;;  %4560 = vrot.lane.b32.xlu1 %v4554_v43, %s6956_s12 }
 0x63a   : > { %4575 = vrot.lane.b32.xlu0 %v4554_v43, %s6949_s11  ;;  %4570 = vrot.lane.b32.xlu1 %v4554_v43, %s6952_s29 }
 0x63e   : > { %4585 = vrot.lane.b32.xlu0 %v4554_v43, %s6935_s22  ;;  %4580 = vrot.lane.b32.xlu1 %v4554_v43, %s6936_s21 }
 0x642   : > { %4595 = vrot.lane.b32.xlu0 %v4554_v43, %s6927_s27  ;;  %4590 = vrot.lane.b32.xlu1 %v4554_v43, %s6926_s23 }
 0x646   : > { %4605 = vrot.lane.b32.xlu0 %v4554_v43, %s6923_s18  ;;  %4600 = vrot.lane.b32.xlu1 %v4554_v43, %s6928_s17  ;;  %s7149_s18 = smov 82  }
 0x64a   : > { %4615 = vrot.lane.b32.xlu0 %v4554_v43, %s6934_s24  ;;  %4610 = vrot.lane.b32.xlu1 %v4554_v43, %s6929_s28 }
 0x64e   : > { %4625 = vrot.lane.b32.xlu0 %v4554_v43, %s6931_s26  ;;  %4620 = vrot.lane.b32.xlu1 %v4554_v43, %s6930_s25 }
 0x652   : > { %4635 = vrot.lane.b32.xlu0 %v4554_v43, %s6932_s30  ;;  %4630 = vrot.lane.b32.xlu1 %v4554_v43, %s6933_s15 }
 0x656   : > { %3342 = vrot.lane.b32.xlu0 %v5673_v46, %s7149_s18  ;;  %4640 = vrot.lane.b32.xlu1 %v4639_v48, %s6925_s19  ;;  %s7150_s19 = smov 95  }
 0x65a   : > { %4645 = vrot.lane.b32.xlu0 %v4639_v48, %s6957_s20  ;;  %4650 = vrot.lane.b32.xlu1 %v4639_v48, %s6956_s12  ;;  %s7165_s12 = smov 110   ;;  %s7166_s20 = smov 88  }
 0x65e   : > { %4655 = vrot.lane.b32.xlu0 %v4639_v48, %s6955_s16  ;;  %4660 = vrot.lane.b32.xlu1 %v4639_v48, %s6952_s29  ;;  %s7162_s29 = smov 113   ;;  %s7164_s16 = smov 111  }
 0x662   : > { %4665 = vrot.lane.b32.xlu0 %v4639_v48, %s6949_s11  ;;  %4670 = vrot.lane.b32.xlu1 %v4639_v48, %s6936_s21  ;;  %s6947_s21 = smov 15   ;;  %s7160_s11 = smov 115  }
 0x666   : > { %4675 = vrot.lane.b32.xlu0 %v4639_v48, %s6935_s22  ;;  %4680 = vrot.lane.b32.xlu1 %v4639_v48, %s6926_s23  ;;  %s7151_s23 = smov 67   ;;  %s6945_s22 = smov 16  }
 0x66a   : > { %4685 = vrot.lane.b32.xlu0 %v4639_v48, %s6927_s27  ;;  %4690 = vrot.lane.b32.xlu1 %v4639_v48, %s6928_s17  ;;  %s7152_s27 = smov 66   ;;  %s7153_s17 = smov 44  }
 0x66e   : > { %4695 = vrot.lane.b32.xlu0 %v4639_v48, %s7150_s19  ;;  %4700 = vrot.lane.b32.xlu1 %v4639_v48, %s6929_s28  ;;  %s7154_s28 = smov 43  }
 0x672   : > { %4705 = vrot.lane.b32.xlu0 %v4639_v48, %s6934_s24  ;;  %4710 = vrot.lane.b32.xlu1 %v4639_v48, %s6930_s25  ;;  %s7155_s25 = smov 42   ;;  %s6943_s24 = smov 38  }
 0x676   : > { %4715 = vrot.lane.b32.xlu0 %v4639_v48, %s6931_s26  ;;  %4720 = vrot.lane.b32.xlu1 %v4639_v48, %s6933_s15  ;;  %s6937_s26 = smov 41   ;;  %s6941_s15 = smov 39  }
 0x67a   : > { %2151 = vrot.lane.b32.xlu0 %v5696_v41, %s6932_s30  ;;  %2191 = vrot.lane.b32.xlu1 %v5696_v41, %s7151_s23  ;;  %s6939_s30 = smov 40  }
 0x67e   : > { %2231 = vrot.lane.b32.xlu0 %v5696_v41, %s7152_s27  ;;  %2271 = vrot.lane.b32.xlu1 %v5696_v41, %s7153_s17 }
 0x682   : > { %2311 = vrot.lane.b32.xlu0 %v5696_v41, %s7154_s28  ;;  %2351 = vrot.lane.b32.xlu1 %v5696_v41, %s7155_s25 }
 0x686   : > { %2391 = vrot.lane.b32.xlu0 %v5696_v41, %s6937_s26  ;;  %2431 = vrot.lane.b32.xlu1 %v5696_v41, %s6939_s30  ;;  %s6950_s26 = smov 14   ;;  %s6953_s30 = smov 13  }
 0x68a   : > { %2471 = vrot.lane.b32.xlu0 %v5696_v41, %s6941_s15  ;;  %2511 = vrot.lane.b32.xlu1 %v5696_v41, %s6943_s24  ;;  %s7156_s15 = smov 12   ;;  %s7157_s24 = smov 11  }
 0x68e   : > { %2551 = vrot.lane.b32.xlu0 %v5696_v41, %s6945_s22  ;;  %2591 = vrot.lane.b32.xlu1 %v5696_v41, %s6947_s21  ;;  %s7158_s22 = smov 10   ;;  %s7159_s21 = smov 116  }
 0x692   : > { %2631 = vrot.lane.b32.xlu0 %v5696_v41, %s6950_s26  ;;  %2671 = vrot.lane.b32.xlu1 %v5696_v41, %s6953_s30  ;;  %s7161_s26 = smov 114   ;;  %s7163_s30 = smov 112  }
 0x696   : > { %2711 = vrot.lane.b32.xlu0 %v5696_v41, %s7156_s15  ;;  %2751 = vrot.lane.b32.xlu1 %v5696_v41, %s7157_s24 }
 0x69a   : > { %2791 = vrot.lane.b32.xlu0 %v5696_v41, %s7158_s22  ;;  %4725 = vrot.lane.b32.xlu1 %v4724_v4, %s7159_s21 }
 0x69e   : > { %4730 = vrot.lane.b32.xlu0 %v4724_v4, %s7160_s11  ;;  %4735 = vrot.lane.b32.xlu1 %v4724_v4, %s7161_s26 }
 0x6a2   : > { %4740 = vrot.lane.b32.xlu0 %v4724_v4, %s7162_s29  ;;  %4745 = vrot.lane.b32.xlu1 %v4724_v4, %s7163_s30 }
 0x6a4   : > { %v5762_v49 = vpop.permute.xlu0 %4555  ;;  %v5764_v50 = vpop.permute.xlu1 %4550 }
 0x6a6   : > { %4750 = vrot.lane.b32.xlu0 %v4724_v4, %s7164_s16  ;;  %4755 = vrot.lane.b32.xlu1 %v4724_v4, %s7165_s12 }
 0x6a8   : > { %v5768_v51 = vpop.permute.xlu0 %4565  ;;  %v5770_v53 = vpop.permute.xlu1 %4560 }
 0x6aa   : > { %4760 = vrot.lane.b32.xlu0 %v4724_v4, %s7166_s20  ;;  %4765 = vrot.lane.b32.xlu1 %v4724_v4, %s7167_s0 }
 0x6ac   : > { %v5774_v55 = vpop.permute.xlu0 %4575  ;;  %v5776_v56 = vpop.permute.xlu1 %4570 }
 0x6ae   : > { %4770 = vrot.lane.b32.xlu0 %v4724_v4, %s7168_s1  ;;  %4775 = vrot.lane.b32.xlu1 %v4724_v4, %s7169_s2 }
 0x6b0   : > { %v5780_v52 = vpop.permute.xlu0 %4585  ;;  %v5782_v54 = vpop.permute.xlu1 %4580 }
 0x6b2   : > { %4780 = vrot.lane.b32.xlu0 %v4724_v4, %s7170_s3  ;;  %4785 = vrot.lane.b32.xlu1 %v4724_v4, %s7171_s4 }
 0x6b4   : > { %v5786_v58 = vpop.permute.xlu0 %4595  ;;  %v5788_v59 = vpop.permute.xlu1 %4590 }
 0x6b6   : > { %3348 = vrot.lane.b32.xlu1 %v5696_v41, %s7149_s18  ;;  %4790 = vrot.lane.b32.xlu0 %v5671_v45, %s7172_s5  ;;  %s7178_s5 = smov 122   ;;  %v4884_v41 = vpack.i.bf16 %v5667_v40, %v5604_v28 }
 0x6b8   : > { %v5794_v57 = vpop.permute.xlu0 %4605  ;;  %v5796_v61 = vpop.permute.xlu1 %4600 }
 0x6ba   : > { %4795 = vrot.lane.b32.xlu1 %v5671_v45, %s7173_s6  ;;  %4800 = vrot.lane.b32.xlu0 %v5671_v45, %s7174_s7  ;;  %s7179_s6 = smov 100   ;;  %s7180_s7 = smov 99  }
 0x6bc   : > { %v5802_v62 = vpop.permute.xlu0 %4615  ;;  %v5804_v63 = vpop.permute.xlu1 %4610 }
 0x6bd   : > { %7175 = vst [vmem:[#allocation33_spill] sm:$0xff] %v5802_v62 }
 0x6be   : > { %4805 = vrot.lane.b32.xlu1 %v5671_v45, %s7176_s13  ;;  %4810 = vrot.lane.b32.xlu0 %v5671_v45, %s7177_s10  ;;  %s7181_s13 = smov 98   ;;  %s7184_s10 = smov 97  }
 0x6c0   : > { %v5810_v29 = vpop.permute.xlu0 %4625  ;;  %v5812_v0 = vpop.permute.xlu1 %4620 }
 0x6c2   : > { %4815 = vrot.lane.b32.xlu1 %v5671_v45, %s7178_s5  ;;  %4820 = vrot.lane.b32.xlu0 %v5671_v45, %s7179_s6  ;;  %s7185_s5 = smov 96   ;;  %s7186_s6 = smov 94  }
 0x6c4   : > { %v5818_v60 = vpop.permute.xlu0 %4635  ;;  %v5820_v1 = vpop.permute.xlu1 %4630 }
 0x6c6   : > { %4825 = vrot.lane.b32.xlu1 %v5671_v45, %s7180_s7  ;;  %4830 = vrot.lane.b32.xlu0 %v5671_v45, %s7181_s13  ;;  %s7187_s7 = smov 72   ;;  %s7188_s13 = smov 71  }
 0x6c8   : > { %v5826_v2 = vpop.permute.xlu0 %3342  ;;  %v5828_v3 = vpop.permute.xlu1 %4640 }
 0x6c9   : > { %7182 = vst [vmem:[#allocation34_spill] sm:$0xff] %v5826_v2  ;;  %7183 = vst [vmem:[#allocation35_spill] sm:$0xff] %v5828_v3  ;;  %v5918_v2 = vpack.i.bf16 %v5904_v20, %v5604_v28 }
 0x6ca   : > { %4835 = vrot.lane.b32.xlu1 %v5671_v45, %s7184_s10  ;;  %4840 = vrot.lane.b32.xlu0 %v5671_v45, %s7185_s5  ;;  %s7189_s10 = smov 70   ;;  %s7191_s5 = smov 68  }
 0x6cc   : > { %v5834_v5 = vpop.permute.xlu0 %4645  ;;  %v5836_v30 = vpop.permute.xlu1 %4650 }
 0x6ce   : > { %4845 = vrot.lane.b32.xlu1 %v5671_v45, %s7150_s19  ;;  %4850 = vrot.lane.b32.xlu0 %v5671_v45, %s7186_s6  ;;  %s7190_s19 = smov 69   ;;  %s7213_s6 = smov 15  }
 0x6d0   : > { %v5842_v6 = vpop.permute.xlu0 %4655  ;;  %v5844_v32 = vpop.permute.xlu1 %4660 }
 0x6d2   : > { %4855 = vrot.lane.b32.xlu1 %v5671_v45, %s7187_s7  ;;  %4860 = vrot.lane.b32.xlu0 %v5671_v45, %s7188_s13  ;;  %s7216_s7 = smov 14   ;;  %s7219_s13 = smov 13  }
 0x6d4   : > { %v5850_v33 = vpop.permute.xlu0 %4665  ;;  %v5852_v35 = vpop.permute.xlu1 %4670 }
 0x6d6   : > { %4865 = vrot.lane.b32.xlu1 %v5671_v45, %s7189_s10  ;;  %4870 = vrot.lane.b32.xlu0 %v5671_v45, %s7190_s19 }
 0x6d8   : > { %v5858_v37 = vpop.permute.xlu0 %4675  ;;  %v5860_v38 = vpop.permute.xlu1 %4680 }
 0x6da   : > { %4875 = vrot.lane.b32.xlu1 %v5671_v45, %s7191_s5  ;;  %4880 = vrot.lane.b32.xlu0 %v5678_v47, %s7151_s23 }
 0x6dc   : > { %v5866_v39 = vpop.permute.xlu0 %4685  ;;  %v5868_v43 = vpop.permute.xlu1 %4690 }
 0x6de   : > { %4885 = vrot.lane.b32.xlu1 %v4884_v41, %s7151_s23  ;;  %4890 = vrot.lane.b32.xlu0 %v5678_v47, %s7152_s27  ;;  %s7198_s23 = smov 41  }
 0x6e0   : > { %v5875_v48 = vpop.permute.xlu0 %4695  ;;  %v5877_v4 = vpop.permute.xlu1 %4700 }
 0x6e2   : > { %4895 = vrot.lane.b32.xlu1 %v5678_v47, %s7153_s17  ;;  %4900 = vrot.lane.b32.xlu0 %v4884_v41, %s7152_s27  ;;  %s7207_s27 = smov 38  }
 0x6e4   : > { %v5882_v45 = vpop.permute.xlu0 %4705  ;;  %v5884_v21 = vpop.permute.xlu1 %4710 }
 0x6e5   : > { %7192 = vst [vmem:[#allocation36_spill] sm:$0xff] %v5882_v45  ;;  %7193 = vst [vmem:[#allocation37_spill] sm:$0xff] %v5884_v21  ;;  %v7252_v21 = vunpack.i.h.bf16 %v5796_v61 }
 0x6e6   : > { %4905 = vrot.lane.b32.xlu1 %v4884_v41, %s7153_s17  ;;  %4910 = vrot.lane.b32.xlu0 %v5678_v47, %s7154_s28  ;;  %s7201_s17 = smov 40  }
 0x6e8   : > { %v5889_v40 = vpop.permute.xlu0 %4715  ;;  %v5891_v27 = vpop.permute.xlu1 %4720 }
 0x6e9   : > { %7194 = vst [vmem:[#allocation38_spill] sm:$0xff] %v5889_v40  ;;  %7195 = vst [vmem:[#allocation39_spill] sm:$0xff] %v5891_v27  ;;  %v4567_v27 = vunpack.i.l.bf16 %v5768_v51  ;;  %v7233_v40 = vunpack.i.h.bf16 %v5770_v53 }
 0x6ea   : > { %4915 = vrot.lane.b32.xlu1 %v5678_v47, %s7155_s25  ;;  %4920 = vrot.lane.b32.xlu0 %v4884_v41, %s7154_s28  ;;  %s7210_s28 = smov 16  }
 0x6ec   : > { %v5898_v23 = vpop.permute.xlu0 %2151  ;;  %v5900_v18 = vpop.permute.xlu1 %2191 }
 0x6ed   : > { %7196 = vst [vmem:[#allocation40_spill] sm:$0xff] %v5898_v23  ;;  %7197 = vst [vmem:[#allocation41_spill] sm:$0xff] %v5900_v18  ;;  %v7238_v23 = vunpack.i.h.bf16 %v5762_v49 }
 0x6ee   : > { %4925 = vrot.lane.b32.xlu1 %v4884_v41, %s7155_s25  ;;  %4930 = vrot.lane.b32.xlu0 %v4929_v17, %s7198_s23  ;;  %s7204_s25 = smov 39  }
 0x6f0   : > { %v5910_v15 = vpop.permute.xlu0 %2231  ;;  %v5912_v47 = vpop.permute.xlu1 %2271 }
 0x6f1   : > { %7199 = vst [vmem:[#allocation42_spill] sm:$0xff] %v5910_v15  ;;  %7200 = vst [vmem:[#allocation43_spill] sm:$0xff] %v5912_v47  ;;  %v6013_v15 = vpack.i.bf16 %v5904_v20, %v5893_v22 }
 0x6f2   : > { %4935 = vrot.lane.b32.xlu1 %v4934_v26, %s7201_s17  ;;  %4940 = vrot.lane.b32.xlu0 %v5918_v2, %s7198_s23 }
 0x6f4   : > { %v5923_v46 = vpop.permute.xlu0 %2311  ;;  %v5925_v17 = vpop.permute.xlu1 %2351 }
 0x6f5   : > { %7202 = vst [vmem:[#allocation44_spill] sm:$0xff] %v5923_v46  ;;  %7203 = vst [vmem:[#allocation45_spill] sm:$0xff] %v5925_v17 }
 0x6f6   : > { %4945 = vrot.lane.b32.xlu1 %v5918_v2, %s7201_s17  ;;  %4950 = vrot.lane.b32.xlu0 %v4934_v26, %s7204_s25 }
 0x6f8   : > { %v5930_v41 = vpop.permute.xlu0 %2391  ;;  %v5932_v16 = vpop.permute.xlu1 %2431 }
 0x6f9   : > { %7205 = vst [vmem:[#allocation46_spill] sm:$0xff] %v5930_v41  ;;  %7206 = vst [vmem:[#allocation47_spill] sm:$0xff] %v5932_v16 }
 0x6fa   : > { %4955 = vrot.lane.b32.xlu1 %v4934_v26, %s7207_s27  ;;  %4960 = vrot.lane.b32.xlu0 %v5918_v2, %s7204_s25 }
 0x6fc   : > { %v5937_v25 = vpop.permute.xlu0 %2471  ;;  %v5939_v14 = vpop.permute.xlu1 %2511 }
 0x6fd   : > { %7208 = vst [vmem:[#allocation48_spill] sm:$0xff] %v5937_v25  ;;  %7209 = vst [vmem:[#allocation49_spill] sm:$0xff] %v5939_v14 }
 0x6fe   : > { %4965 = vrot.lane.b32.xlu1 %v5918_v2, %s7207_s27  ;;  %4970 = vrot.lane.b32.xlu0 %v4934_v26, %s7210_s28 }
 0x700   : > { %v5944_v7 = vpop.permute.xlu0 %2551  ;;  %v5946_v17 = vpop.permute.xlu1 %2591 }
 0x701   : > { %7211 = vst [vmem:[#allocation50_spill] sm:$0xff] %v5944_v7  ;;  %7212 = vst [vmem:[#allocation51_spill] sm:$0xff] %v5946_v17 }
 0x702   : > { %4975 = vrot.lane.b32.xlu1 %v4934_v26, %s7213_s6  ;;  %4980 = vrot.lane.b32.xlu0 %v5918_v2, %s7210_s28 }
 0x704   : > { %v5951_v16 = vpop.permute.xlu0 %2631  ;;  %v5953_v41 = vpop.permute.xlu1 %2671 }
 0x705   : > { %7214 = vst [vmem:[#allocation52_spill] sm:$0xff] %v5951_v16  ;;  %7215 = vst [vmem:[#allocation53_spill] sm:$0xff] %v5953_v41 }
 0x706   : > { %4985 = vrot.lane.b32.xlu1 %v5918_v2, %s7213_s6  ;;  %4990 = vrot.lane.b32.xlu0 %v4934_v26, %s7216_s7 }
 0x708   : > { %v5958_v14 = vpop.permute.xlu0 %2711  ;;  %v5960_v25 = vpop.permute.xlu1 %2751 }
 0x709   : > { %7217 = vst [vmem:[#allocation54_spill] sm:$0xff] %v5958_v14  ;;  %7218 = vst [vmem:[#allocation55_spill] sm:$0xff] %v5960_v25  ;;  %v3371_v25 = vld [vmem:[%s6875_s8 + $0x8] sm:$0xff] }
 0x70a   : > { %4995 = vrot.lane.b32.xlu1 %v4934_v26, %s7219_s13  ;;  %5000 = vrot.lane.b32.xlu0 %v5918_v2, %s7216_s7 }
 0x70b   : > { %3693 = vmatprep.mubr.f32.mxu0 %v3371_v25  ;;  %3835 = vmatprep.mubr.f32.mxu1 %v3371_v25 }
 0x70c   : > { %v5965_v17 = vpop.permute.xlu0 %2791  ;;  %v5967_v7 = vpop.permute.xlu1 %4725 }
 0x70d   : > { %7220 = vst [vmem:[#allocation56_spill] sm:$0xff] %v5965_v17  ;;  %7221 = vst [vmem:[#allocation57_spill] sm:$0xff] %v5967_v7 }
 0x70e   : > { %5005 = vrot.lane.b32.xlu1 %v5918_v2, %s7219_s13  ;;  %5010 = vrot.lane.b32.xlu0 %v4934_v26, %s7156_s15 }
 0x710   : > { %v5972_v41 = vpop.permute.xlu0 %4730  ;;  %v5974_v16 = vpop.permute.xlu1 %4735 }
 0x711   : > { %7222 = vst [vmem:[#allocation58_spill] sm:$0xff] %v5972_v41  ;;  %7223 = vst [vmem:[#allocation59_spill] sm:$0xff] %v5974_v16  ;;  %v6977_v14 = vunpack.i.h.bf16 %v5972_v41  ;;  %v6981_v46 = vunpack.i.h.bf16 %v5974_v16  ;;  %v4562_v41 = vunpack.i.l.bf16 %v5770_v53 }
 0x712   : > { %5015 = vrot.lane.b32.xlu1 %v4934_v26, %s7157_s24  ;;  %5020 = vrot.lane.b32.xlu0 %v5918_v2, %s7156_s15 }
 0x713   : > { %v5988_v17 = vsel %vm6985_vm14, %v6977_v14, %v5613_v8  ;;  %v5994_v7 = vsel %vm6989_vm13, %v6981_v46, %v5615_v9  ;;  %v4552_v46 = vunpack.i.l.bf16 %v5764_v50  ;;  %vm7015_vm14 = vcmask 1006592  }
 0x714   : > { %7224 = vst [vmem:[#allocation60_spill] sm:$0xff] %v5988_v17  ;;  %7225 = vst [vmem:[#allocation61_spill] sm:$0xff] %v5994_v7  ;;  %v5996_v25 = vpop.permute.xlu0 %4740  ;;  %v5998_v47 = vpop.permute.xlu1 %4745  ;;  %vm7007_vm13 = vcmask 908288   ;;  %v7232_v17 = vunpack.i.h.bf16 %v5764_v50 }
 0x715   : > { %7226 = vst [vmem:[#allocation62_spill] sm:$0xff] %v5996_v25  ;;  %7227 = vst [vmem:[#allocation63_spill] sm:$0xff] %v5998_v47  ;;  %v6992_v14 = vunpack.i.h.bf16 %v5996_v25  ;;  %v6996_v8 = vunpack.i.h.bf16 %v5998_v47  ;;  %v6049_v25 = vsel %vm7067_vm11, %v4562_v41, %v7233_v40 }
 0x716   : > { %5025 = vrot.lane.b32.xlu1 %v5918_v2, %s7157_s24  ;;  %5030 = vrot.lane.b32.xlu0 %v4934_v26, %s7158_s22  ;;  %v4557_v26 = vunpack.i.l.bf16 %v5762_v49 }
 0x717   : > { %v6019_v16 = vsel %vm7001_vm10, %v6992_v14, %v5617_v31  ;;  %v6025_v9 = vsel %vm7002_vm9, %v6996_v8, %v5619_v42  ;;  %v4572_v31 = vunpack.i.l.bf16 %v5776_v56  ;;  %v6042_v42 = vsel %vm7063_vm1, %v4552_v46, %v7232_v17 }
 0x718   : > { %7228 = vst [vmem:[#allocation64_spill] sm:$0xff] %v6019_v16  ;;  %7229 = vst [vmem:[#allocation65_spill] sm:$0xff] %v6025_v9  ;;  %v6029_v7 = vpop.permute.xlu0 %4750  ;;  %v6031_v18 = vpop.permute.xlu1 %4755  ;;  %v4577_v46 = vunpack.i.l.bf16 %v5774_v55  ;;  %vm7071_vm10 = vcmask 785408   ;;  %vm7028_vm9 = vcmask 711680   ;;  %v7240_v9 = vunpack.i.h.bf16 %v5768_v51 }
 0x719   : > { %7230 = vst [vmem:[#allocation66_spill] sm:$0xff] %v6029_v7  ;;  %7231 = vst [vmem:[#allocation67_spill] sm:$0xff] %v6031_v18  ;;  %v7004_v47 = vunpack.i.h.bf16 %v6029_v7  ;;  %v7006_v8 = vunpack.i.h.bf16 %v6031_v18  ;;  %v4607_v7 = vunpack.i.l.bf16 %v5794_v57 }
 0x71a   : > { %5035 = vrot.lane.b32.xlu1 %v6013_v15, %s7159_s21  ;;  %5040 = vrot.lane.b32.xlu0 %v5918_v2, %s7158_s22  ;;  %v6090_v18 = vsel %vm7016_vm15, %v4567_v27, %v7240_v9  ;;  %vm3194_vm15 = vcmask 703488  }
 0x71b   : > { %v6061_v17 = vsel %vm7007_vm13, %v7004_v47, %v5621_v44  ;;  %v6067_v40 = vsel %vm7013_vm0, %v7006_v8, %v5623_v10  ;;  %v6078_v47 = vsel %vm7064_vm2, %v4557_v26, %v7238_v23  ;;  %v7239_v44 = vunpack.i.h.bf16 %v5776_v56 }
 0x71c   : > { %7234 = vst [vmem:[#allocation68_spill] sm:$0xff] %v6061_v17  ;;  %7235 = vst [vmem:[#allocation69_spill] sm:$0xff] %v6067_v40  ;;  %v6069_v41 = vpop.permute.xlu0 %4760  ;;  %v6071_v2 = vpop.permute.xlu1 %4765  ;;  %vm7072_vm13 = vcmask 793600   ;;  %vm7069_vm0 = vcmask 769024   ;;  %v7241_v23 = vunpack.i.h.bf16 %v5774_v55  ;;  %v4587_v17 = vunpack.i.l.bf16 %v5780_v52 }
 0x71d   : > { %7236 = vst [vmem:[#allocation70_spill] sm:$0xff] %v6069_v41  ;;  %7237 = vst [vmem:[#allocation71_spill] sm:$0xff] %v6071_v2  ;;  %v6083_v8 = vsel %vm7015_vm14, %v4572_v31, %v7239_v44  ;;  %v7017_v10 = vunpack.i.h.bf16 %v6069_v41  ;;  %v7020_v16 = vunpack.i.h.bf16 %v6071_v2  ;;  %vm7070_vm14 = vcmask 777216  }
 0x71e   : > { %5050 = vrot.lane.b32.xlu1 %v6013_v15, %s7161_s26  ;;  %5045 = vrot.lane.b32.xlu0 %v6013_v15, %s7160_s11  ;;  %v6103_v26 = vsel %vm7098_vm12, %v4577_v46, %v7241_v23  ;;  %v4582_v44 = vunpack.i.l.bf16 %v5782_v54  ;;  %v4592_v40 = vunpack.i.l.bf16 %v5788_v59  ;;  %v4602_v41 = vunpack.i.l.bf16 %v5796_v61  ;;  %s7490_s26 = smul.u32 40, %s7494_s14 }
 0x71f   : > { %v6109_v9 = vsel %vm7027_vm8, %v7017_v10, %v5625_v11  ;;  %v6115_v27 = vsel %vm7028_vm9, %v7020_v16, %v5627_v34  ;;  %vm7066_vm8 = vcmask 678912   ;;  %vm7065_vm9 = vcmask 687104  }
 0x720   : > { %7242 = vst [vmem:[#allocation72_spill] sm:$0xff] %v6109_v9  ;;  %7243 = vst [vmem:[#allocation73_spill] sm:$0xff] %v6115_v27  ;;  %v6119_v46 = vpop.permute.xlu0 %4770  ;;  %v6121_v23 = vpop.permute.xlu1 %4775  ;;  %v7248_v11 = vunpack.i.h.bf16 %v5782_v54  ;;  %v4597_v9 = vunpack.i.l.bf16 %v5786_v58 }
 0x721   : > { %7244 = vst [vmem:[#allocation74_spill] sm:$0xff] %v6119_v46  ;;  %7245 = vst [vmem:[#allocation75_spill] sm:$0xff] %v6121_v23  ;;  %v7033_v16 = vunpack.i.h.bf16 %v6119_v46  ;;  %v7035_v14 = vunpack.i.h.bf16 %v6121_v23 }
 0x722   : > { %5060 = vrot.lane.b32.xlu1 %v6013_v15, %s7163_s30  ;;  %5055 = vrot.lane.b32.xlu0 %v6013_v15, %s7162_s29  ;;  %v6154_v2 = vsel %vm7097_vm3, %v4582_v44, %v7248_v11  ;;  %v7251_v44 = vunpack.i.h.bf16 %v5788_v59 }
 0x723   : > { %v6143_v10 = vsel %vm3194_vm15, %v7033_v16, %v5629_v36  ;;  %v6149_v31 = vsel %vm3234_vm7, %v7035_v14, %v5631_v12  ;;  %v4612_v14 = vunpack.i.l.bf16 %v5804_v63  ;;  %v6178_v16 = vsel %vm7071_vm10, %v4602_v41, %v7252_v21 }
 0x724   : > { %7246 = vst [vmem:[#allocation76_spill] sm:$0xff] %v6143_v10  ;;  %7247 = vst [vmem:[#allocation77_spill] sm:$0xff] %v6149_v31  ;;  %v6158_v27 = vpop.permute.xlu0 %4780  ;;  %v6160_v46 = vpop.permute.xlu1 %4785  ;;  %v6171_v34 = vsel %vm7073_vm5, %v4592_v40, %v7251_v44  ;;  %v4617_v40 = vunpack.i.l.bf16 %v5802_v62  ;;  %v7255_v41 = vunpack.i.h.bf16 %v5780_v52  ;;  %v7256_v36 = vunpack.i.h.bf16 %v5786_v58 }
 0x725   : > { %7249 = vst [vmem:[#allocation78_spill] sm:$0xff] %v6158_v27  ;;  %7250 = vst [vmem:[#allocation79_spill] sm:$0xff] %v6160_v46  ;;  %v7044_v12 = vunpack.i.h.bf16 %v6158_v27  ;;  %v7046_v11 = vunpack.i.h.bf16 %v6160_v46 }
 0x726   : > { %5070 = vrot.lane.b32.xlu1 %v6013_v15, %s7165_s12  ;;  %5065 = vrot.lane.b32.xlu0 %v6013_v15, %s7164_s16  ;;  %v6201_v23 = vsel %vm7074_vm4, %v4587_v17, %v7255_v41  ;;  %v6206_v10 = vsel %vm7072_vm13, %v4597_v9, %v7256_v36  ;;  %v7058_v17 = vunpack.i.l.bf16 %v5828_v3  ;;  %v7261_v36 = vunpack.i.h.bf16 %v5794_v57 }
 0x727   : > { %v6190_v44 = vsel %vm7065_vm9, %v7044_v12, %v5633_v13  ;;  %v6196_v21 = vsel %vm7066_vm8, %v7046_v11, %v5635_v24  ;;  %7257 = vst [vmem:[#allocation82_spill] sm:$0xff] %v6206_v10  ;;  %v7259_v24 = vunpack.i.h.bf16 %v5804_v63  ;;  %v7267_v3 = vunpack.i.h.bf16 %v5770_v53 }
 0x728   : > { %7253 = vst [vmem:[#allocation80_spill] sm:$0xff] %v6190_v44  ;;  %7254 = vst [vmem:[#allocation81_spill] sm:$0xff] %v6196_v21  ;;  %v6208_v31 = vpop.permute.xlu1 %3348  ;;  %v4791_v12 = vpop.permute.xlu0 %4790  ;;  %v6223_v9 = vsel %vm7070_vm14, %v4607_v7, %v7261_v36  ;;  %v7264_v36 = vunpack.i.h.bf16 %v5764_v50  ;;  %vm7275_vm8 = vcmask 580608  }
 0x729   : > { %7258 = vst [vmem:[#allocation83_spill] sm:$0xff] %v6208_v31  ;;  %v6217_v46 = vsel %vm7069_vm0, %v4612_v14, %v7259_v24  ;;  %v4793_v41 = vunpack.i.h.bf16 %v4791_v12  ;;  %v4792_v27 = vunpack.i.l.bf16 %v4791_v12  ;;  %7262 = vst [vmem:[#allocation85_spill] sm:$0xff] %v6223_v9  ;;  %v7263_v14 = vunpack.i.h.bf16 %v5802_v62 }
 0x72a   : > { %7260 = vst [vmem:[#allocation84_spill] sm:$0xff] %v6217_v46  ;;  %5080 = vrot.lane.b32.xlu1 %v6013_v15, %s7167_s0  ;;  %5075 = vrot.lane.b32.xlu0 %v6013_v15, %s7166_s20 }
 0x72b   : > { %v6236_v12 = vsel %vm7068_vm6, %v4617_v40, %v7263_v14  ;;  %v1485_v7 = vsel %vm7063_vm1, %v4792_v27, %v4793_v41  ;;  %v1484_v13 = vsel %vm7063_vm1, %v7264_v36, %v4792_v27  ;;  %v1486_v31 = vsel %vm7063_vm1, %v4793_v41, %v7058_v17 }
 0x72c   : > { %v4326_v11 = vpack.c.bf16 %v1485_v7, %v5893_v22  ;;  %v4796_v44 = vpop.permute.xlu1 %4795  ;;  %v4801_v21 = vpop.permute.xlu0 %4800  ;;  %v4228_v24 = vpack.c.bf16 %v1484_v13, %v5908_v19  ;;  %v4324_v62 = vpack.c.bf16 %v1486_v31, %v5904_v20  ;;  %v4627_v36 = vunpack.i.l.bf16 %v5810_v29 }
 0x72d   : > { %v4798_v14 = vunpack.i.h.bf16 %v4796_v44  ;;  %v4797_v45 = vunpack.i.l.bf16 %v4796_v44  ;;  %v4803_v50 = vunpack.i.h.bf16 %v4801_v21  ;;  %v4802_v10 = vunpack.i.l.bf16 %v4801_v21 }
 0x72e   : > { %5090 = vrot.lane.b32.xlu1 %v6013_v15, %s7169_s2  ;;  %5085 = vrot.lane.b32.xlu0 %v6013_v15, %s7168_s1  ;;  %v4622_v13 = vunpack.i.l.bf16 %v5812_v0  ;;  %v7265_v44 = vunpack.i.h.bf16 %v5762_v49  ;;  %v7266_v27 = vpack.c.bf16 %v6042_v42, %v5604_v28  ;;  %v7093_v40 = vunpack.i.l.bf16 %v5844_v32 }
 0x72f   : > { %v1524_v19 = vsel %vm7064_vm2, %v4797_v45, %v4798_v14  ;;  %v1564_v31 = vsel %vm7067_vm11, %v4802_v10, %v4803_v50  ;;  %4229 = vmatprep.subr.bf16.mxu0 %v4228_v24  ;;  %4325 = vmatprep.subr.bf16.mxu1 %v4324_v62  ;;  %v1563_v24 = vsel %vm7067_vm11, %v7267_v3, %v4802_v10  ;;  %v7268_v62 = vunpack.i.l.bf16 %v5834_v5 }
 0x730   : > { %v1523_v21 = vsel %vm7064_vm2, %v7265_v44, %v4797_v45  ;;  %4231 = vmatpush1.bf16.msra.mxu0 %v7266_v27  ;;  %4327 = vmatpush1.bf16.msra.mxu1 %v4326_v11  ;;  %v4806_v41 = vpop.permute.xlu1 %4805  ;;  %v4811_v7 = vpop.permute.xlu0 %4810  ;;  %v4330_v46 = vpack.c.bf16 %v1564_v31, %v1524_v19  ;;  %v7269_v10 = vunpack.i.l.bf16 %v5836_v30  ;;  %vm7270_vm1 = vcmask 1014784  }
 0x731   : > { %v1525_v49 = vsel %vm7064_vm2, %v4798_v14, %v7268_v62  ;;  %v4808_v45 = vunpack.i.h.bf16 %v4806_v41  ;;  %v4807_v44 = vunpack.i.l.bf16 %v4806_v41  ;;  %v4813_v17 = vunpack.i.h.bf16 %v4811_v7  ;;  %vm7273_vm9 = vmmov %vm7270_vm1 }
 0x732   : > { %v4812_v9 = vunpack.i.l.bf16 %v4811_v7  ;;  %5100 = vrot.lane.b32.xlu1 %v6013_v15, %s7171_s4  ;;  %5095 = vrot.lane.b32.xlu0 %v6013_v15, %s7170_s3  ;;  %v4232_v42 = vpack.c.bf16 %v1563_v24, %v1523_v21  ;;  %v1565_v53 = vsel %vm7067_vm11, %v4803_v50, %v7269_v10  ;;  %vm7271_vm2 = vcmask 1006592  }
 0x733   : > { %v1604_v3 = vsel %vm7270_vm1, %v4807_v44, %v4808_v45  ;;  %v4328_v14 = vpack.c.bf16 %v1565_v53, %v1525_v49  ;;  %v7272_v27 = vunpack.i.h.bf16 %v5768_v51  ;;  %v7274_v7 = vunpack.i.h.bf16 %v5812_v0  ;;  %vm7277_vm11 = vmmov %vm7271_vm2 }
 0x734   : > { %v1644_v11 = vsel %vm7271_vm2, %v4812_v9, %v4813_v17  ;;  %4233 = vmatprep.subr.bf16.mxu0 %v4232_v42  ;;  %v4816_v15 = vpop.permute.xlu1 %4815  ;;  %v4821_v31 = vpop.permute.xlu0 %4820  ;;  %v7276_v21 = vunpack.i.h.bf16 %v5776_v56  ;;  %v7278_v24 = vunpack.i.l.bf16 %v5842_v6  ;;  %v1645_v51 = vsel %vm7271_vm2, %v4813_v17, %v7093_v40 }
 0x735   : > { %v1603_v41 = vsel %vm7273_vm9, %v7272_v27, %v4807_v44  ;;  %v6291_v19 = vsel %vm7275_vm8, %v4622_v13, %v7274_v7  ;;  %4329 = vmatprep.subr.bf16.mxu1 %v4328_v14  ;;  %v7279_v13 = vpack.c.bf16 %v6049_v25, %v6078_v47  ;;  %v4818_v49 = vunpack.i.h.bf16 %v4816_v15 }
 0x736   : > { %v1643_v50 = vsel %vm7277_vm11, %v7276_v21, %v4812_v9  ;;  %v1605_v62 = vsel %vm7270_vm1, %v4808_v45, %v7278_v24  ;;  %v4817_v44 = vunpack.i.l.bf16 %v4816_v15  ;;  %v4823_v42 = vunpack.i.h.bf16 %v4821_v31  ;;  %4331 = vmatpush1.bf16.msra.mxu1 %v4330_v46  ;;  %2393 = vrot.lane.b32.xlu1 %v5604_v28, %s7198_s23 }
 0x737   : > { %4235 = vmatpush1.bf16.msra.mxu0 %v7279_v13  ;;  %v4822_v10 = vunpack.i.l.bf16 %v4821_v31  ;;  %v7092_v56 = vunpack.i.l.bf16 %v5850_v33  ;;  %v4334_v9 = vpack.c.bf16 %v1644_v11, %v1604_v3  ;;  %v4236_v45 = vpack.c.bf16 %v1643_v50, %v1603_v41  ;;  %2433 = vrot.lane.b32.xlu0 %v5604_v28, %s7201_s17 }
 0x738   : > { %v4332_v53 = vpack.c.bf16 %v1645_v51, %v1605_v62  ;;  %v1684_v17 = vsel %vm7098_vm12, %v4817_v44, %v4818_v49  ;;  %v7280_v47 = vunpack.i.h.bf16 %v5774_v55  ;;  %v7281_v27 = vunpack.i.h.bf16 %v5782_v54  ;;  %v4826_v7 = vpop.permute.xlu1 %4825  ;;  %v4831_v15 = vpop.permute.xlu0 %4830 }
 0x739   : > { %v1723_v14 = vsel %vm7097_vm3, %v4822_v10, %v4823_v42  ;;  %v7282_v3 = vunpack.i.h.bf16 %v5810_v29  ;;  %vm7283_vm8 = vcmask 572416   ;;  %v7091_v41 = vunpack.i.l.bf16 %v5852_v35  ;;  %4237 = vmatprep.subr.bf16.mxu0 %v4236_v45 }
 0x73a   : > { %v1683_v25 = vsel %vm7098_vm12, %v7280_v47, %v4817_v44  ;;  %v1722_v46 = vsel %vm7097_vm3, %v7281_v27, %v4822_v10  ;;  %4333 = vmatprep.subr.bf16.mxu1 %v4332_v53  ;;  %v1685_v55 = vsel %vm7098_vm12, %v4818_v49, %v7092_v56  ;;  %v7284_v54 = vpack.c.bf16 %v6083_v8, %v6090_v18  ;;  %v6343_v10 = vld [vmem:[#allocation3 + $0x30] sm:$0xff] }
 0x73b   : > { %v6321_v11 = vsel %vm7283_vm8, %v4627_v36, %v7282_v3  ;;  %v4240_v28 = vpack.c.bf16 %v1722_v46, %v1683_v25  ;;  %v4828_v31 = vunpack.i.h.bf16 %v4826_v7  ;;  %v4827_v21 = vunpack.i.l.bf16 %v4826_v7  ;;  %4335 = vmatpush1.bf16.msra.mxu1 %v4334_v9  ;;  %3346 = vrot.lane.b32.xlu1 %v5904_v20, %s7149_s18 }
 0x73c   : > { %4239 = vmatpush1.bf16.msra.mxu0 %v7284_v54  ;;  %v4833_v50 = vunpack.i.h.bf16 %v4831_v15  ;;  %v4832_v36 = vunpack.i.l.bf16 %v4831_v15  ;;  %v7090_v24 = vunpack.i.l.bf16 %v5858_v37  ;;  %v4338_v62 = vpack.c.bf16 %v1723_v14, %v1684_v17  ;;  %3344 = vrot.lane.b32.xlu0 %v5893_v22, %s7149_s18  ;;  %v4836_v9 = vpop.permute.xlu1 %4835 }
 0x73d   : > { %v1724_v51 = vsel %vm7097_vm3, %v4823_v42, %v7091_v41  ;;  %v4258_v13 = vpack.c.bf16 %v6291_v19, %v6236_v12  ;;  %v7089_v8 = vunpack.i.l.bf16 %v5860_v38  ;;  %v1762_v18 = vsel %vm7074_vm4, %v4827_v21, %v4828_v31  ;;  %4241 = vmatprep.subr.bf16.mxu0 %v4240_v28  ;;  %v4841_v42 = vpop.permute.xlu0 %4840 }
 0x73e   : > { %v1801_v49 = vsel %vm7073_vm5, %v4832_v36, %v4833_v50  ;;  %v4336_v44 = vpack.c.bf16 %v1724_v51, %v1685_v55  ;;  %v7088_v20 = vunpack.i.l.bf16 %v5866_v39  ;;  %v7285_v45 = vunpack.i.h.bf16 %v5780_v52 }
 0x73f   : > { %v7286_v17 = vunpack.i.h.bf16 %v5788_v59  ;;  %v1763_v22 = vsel %vm7074_vm4, %v4828_v31, %v7090_v24  ;;  %v7287_v47 = vpack.c.bf16 %v6154_v2, %v6103_v26  ;;  %v4838_v25 = vunpack.i.h.bf16 %v4836_v9  ;;  %2953 = vrot.lane.b32.xlu1 %v6343_v10, %s7162_s29  ;;  %s7491_s29 = sld [smem:[#allocation94_spill]] }
 0x740   : > { %v1761_v53 = vsel %vm7074_vm4, %v7285_v45, %v4827_v21  ;;  %4337 = vmatprep.subr.bf16.mxu1 %v4336_v44  ;;  %v4837_v27 = vunpack.i.l.bf16 %v4836_v9  ;;  %v4843_v46 = vunpack.i.h.bf16 %v4841_v42  ;;  %v4842_v3 = vunpack.i.l.bf16 %v4841_v42  ;;  %2993 = vrot.lane.b32.xlu0 %v6343_v10, %s7163_s30  ;;  %v4846_v21 = vpop.permute.xlu1 %4845 }
 0x741   : > { %v1800_v14 = vsel %vm7073_vm5, %v7286_v17, %v4832_v36  ;;  %4243 = vmatpush1.bf16.msra.mxu0 %v7287_v47  ;;  %v7087_v52 = vunpack.i.l.bf16 %v5868_v43  ;;  %v4342_v7 = vpack.c.bf16 %v1801_v49, %v1762_v18  ;;  %4339 = vmatpush1.bf16.msra.mxu1 %v4338_v62  ;;  %v1802_v15 = vsel %vm7073_vm5, %v4833_v50, %v7089_v8  ;;  %v4851_v36 = vpop.permute.xlu0 %4850 }
 0x742   : > { %v4244_v59 = vpack.c.bf16 %v1800_v14, %v1761_v53  ;;  %v1841_v28 = vsel %vm7072_vm13, %v4837_v27, %v4838_v25  ;;  %v1881_v2 = vsel %vm7071_vm10, %v4842_v3, %v4843_v46  ;;  %v4340_v26 = vpack.c.bf16 %v1802_v15, %v1763_v22  ;;  %v6385_v53 = vld [vmem:[#allocation3] sm:$0xff] }
 0x743   : > { %v7288_v55 = vunpack.i.h.bf16 %v5786_v58  ;;  %v4638_v31 = vunpack.i.h.bf16 %v5818_v60  ;;  %v7289_v62 = vunpack.i.h.bf16 %v5796_v61  ;;  %v1842_v51 = vsel %vm7072_vm13, %v4838_v25, %v7088_v20  ;;  %2473 = vrot.lane.b32.xlu1 %v6385_v53, %s7204_s25 }
 0x744   : > { %4245 = vmatprep.subr.bf16.mxu0 %v4244_v59  ;;  %v1882_v18 = vsel %vm7071_vm10, %v4843_v46, %v7087_v52  ;;  %vm2115_vm9 = vcmask 564224   ;;  %4341 = vmatprep.subr.bf16.mxu1 %v4340_v26  ;;  %v7290_v58 = vpack.c.bf16 %v6171_v34, %v6201_v23  ;;  %v4848_v49 = vunpack.i.h.bf16 %v4846_v21  ;;  %v7329_v52 = vld [vmem:[#allocation58_spill] sm:$0xff] }
 0x745   : > { %v1840_v54 = vsel %vm7072_vm13, %v7288_v55, %v4837_v27  ;;  %v1880_v50 = vsel %vm7071_vm10, %v7289_v62, %v4842_v3  ;;  %v4847_v44 = vunpack.i.l.bf16 %v4846_v21  ;;  %v4853_v9 = vunpack.i.h.bf16 %v4851_v36  ;;  %4343 = vmatpush1.bf16.msra.mxu1 %v4342_v7  ;;  %2513 = vrot.lane.b32.xlu0 %v6385_v53, %s7207_s27  ;;  %v4856_v7 = vpop.permute.xlu1 %4855  ;;  %v4861_v59 = vpop.permute.xlu0 %4860  ;;  %s359_s30 = scalar_lea.vmem %s7491_s29, %s7490_s26 }
 0x746   : > { %4247 = vmatpush1.bf16.msra.mxu0 %v7290_v58  ;;  %v4852_v61 = vunpack.i.l.bf16 %v4851_v36  ;;  %v7086_v42 = vunpack.i.l.bf16 %v5875_v48  ;;  %v4346_v45 = vpack.c.bf16 %v1881_v2, %v1841_v28  ;;  %v4248_v17 = vpack.c.bf16 %v1880_v50, %v1840_v54  ;;  %v7295_v36 = vld [vmem:[#allocation36_spill] sm:$0xff] }
 0x747   : > { %v4344_v14 = vpack.c.bf16 %v1882_v18, %v1842_v51  ;;  %v1921_v22 = vsel %vm7070_vm14, %v4847_v44, %v4848_v49  ;;  %v7291_v23 = vunpack.i.h.bf16 %v5794_v57  ;;  %v7292_v25 = vunpack.i.h.bf16 %v5804_v63  ;;  %v7293_v57 = vld [vmem:[#allocation82_spill] sm:$0xff]  ;;  %3033 = vrot.lane.b32.xlu1 %v6343_v10, %s7164_s16  ;;  %v7296_v51 = vld [vmem:[#allocation37_spill] sm:$0xff] }
 0x748   : > { %v1961_v34 = vsel %vm7069_vm0, %v4852_v61, %v4853_v9  ;;  %v4633_v46 = vunpack.i.h.bf16 %v5820_v1  ;;  %v7085_v3 = vunpack.i.l.bf16 %v5877_v4  ;;  %4249 = vmatprep.subr.bf16.mxu0 %v4248_v17  ;;  %v1922_v28 = vsel %vm7070_vm14, %v4848_v49, %v7086_v42 }
 0x749   : > { %v1920_v47 = vsel %vm7070_vm14, %v7291_v23, %v4847_v44  ;;  %v1960_v27 = vsel %vm7069_vm0, %v7292_v25, %v4852_v61  ;;  %4345 = vmatprep.subr.bf16.mxu1 %v4344_v14  ;;  %v7294_v2 = vpack.c.bf16 %v6178_v16, %v7293_v57  ;;  %v4858_v63 = vunpack.i.h.bf16 %v4856_v7  ;;  %3073 = vrot.lane.b32.xlu0 %v6343_v10, %s7165_s12  ;;  %v7298_v44 = vld [vmem:[#allocation38_spill] sm:$0xff]  ;;  %v4871_v17 = vpop.permute.xlu0 %4870  ;;  %v7299_v14 = vld [vmem:[#allocation33_spill] sm:$0xff]  ;;  %v7303_v25 = vld [vmem:[#allocation84_spill] sm:$0xff] }
 0x74a   : > { %v4252_v15 = vpack.c.bf16 %v1960_v27, %v1920_v47  ;;  %v4857_v26 = vunpack.i.l.bf16 %v4856_v7  ;;  %v4863_v55 = vunpack.i.h.bf16 %v4861_v59  ;;  %v4862_v54 = vunpack.i.l.bf16 %v4861_v59  ;;  %4347 = vmatpush1.bf16.msra.mxu1 %v4346_v45  ;;  %v4866_v45 = vpop.permute.xlu1 %4865  ;;  %v7304_v27 = vld [vmem:[#allocation85_spill] sm:$0xff] }
 0x74b   : > { %4251 = vmatpush1.bf16.msra.mxu0 %v7294_v2  ;;  %vm2155_vm11 = vcmask 556032   ;;  %v4632_v21 = vunpack.i.l.bf16 %v5820_v1  ;;  %v7081_v62 = vunpack.i.l.bf16 %v7295_v36  ;;  %vm2195_vm1 = vcmask 547840   ;;  %v7306_v2 = vld [vmem:[#allocation39_spill] sm:$0xff]  ;;  %2553 = vrot.lane.b32.xlu1 %v6385_v53, %s7210_s28  ;;  %v7357_v36 = vld [vmem:[#allocation64_spill] sm:$0xff] }
 0x74c   : > { %v4350_v50 = vpack.c.bf16 %v1961_v34, %v1921_v22  ;;  %v1962_v16 = vsel %vm7069_vm0, %v4853_v9, %v7085_v3  ;;  %v7078_v18 = vunpack.i.l.bf16 %v7296_v51  ;;  %v2000_v58 = vsel %vm7068_vm6, %v4857_v26, %v4858_v63  ;;  %4253 = vmatprep.subr.bf16.mxu0 %v4252_v15  ;;  %v7328_v3 = vld [vmem:[#allocation55_spill] sm:$0xff] }
 0x74d   : > { %vm7297_vm2 = vcmask 580608   ;;  %v4348_v1 = vpack.c.bf16 %v1962_v16, %v1922_v28  ;;  %v7095_v61 = vunpack.i.l.bf16 %v7298_v44  ;;  %v7300_v22 = vunpack.i.h.bf16 %v7299_v14  ;;  %2593 = vrot.lane.b32.xlu0 %v6385_v53, %s7213_s6  ;;  %v4881_v14 = vpop.permute.xlu0 %4880  ;;  %v7355_v51 = vld [vmem:[#allocation71_spill] sm:$0xff] }
 0x74e   : > { %v2039_v49 = vsel %vm7297_vm2, %v4862_v54, %v4863_v55  ;;  %v7301_v9 = vunpack.i.h.bf16 %v5812_v0  ;;  %vm7302_vm8 = vmmov %vm7297_vm2  ;;  %v2001_v47 = vsel %vm7068_vm6, %v4858_v63, %v7081_v62  ;;  %v7305_v7 = vpack.c.bf16 %v7303_v25, %v7304_v27 }
 0x74f   : > { %v1999_v34 = vsel %vm7068_vm6, %v7300_v22, %v4857_v26  ;;  %4349 = vmatprep.subr.bf16.mxu1 %v4348_v1  ;;  %v4868_v59 = vunpack.i.h.bf16 %v4866_v45  ;;  %v4867_v15 = vunpack.i.l.bf16 %v4866_v45  ;;  %v4873_v28 = vunpack.i.h.bf16 %v4871_v17  ;;  %3112 = vrot.lane.b32.xlu1 %v6343_v10, %s7166_s20 }
 0x750   : > { %v2038_v23 = vsel %vm7302_vm8, %v7301_v9, %v4862_v54  ;;  %4255 = vmatpush1.bf16.msra.mxu0 %v7305_v7  ;;  %v4872_v57 = vunpack.i.l.bf16 %v4871_v17  ;;  %v7094_v16 = vunpack.i.l.bf16 %v7306_v2  ;;  %v4354_v26 = vpack.c.bf16 %v2039_v49, %v2000_v58  ;;  %4351 = vmatpush1.bf16.msra.mxu1 %v4350_v50  ;;  %v4876_v49 = vpop.permute.xlu1 %4875 }
 0x751   : > { %v4256_v0 = vpack.c.bf16 %v2038_v23, %v1999_v34  ;;  %v2040_v63 = vsel %vm7297_vm2, %v4863_v55, %v7078_v18  ;;  %vm7307_vm8 = vcmask 572416   ;;  %v7308_v17 = vunpack.i.h.bf16 %v5810_v29  ;;  %3152 = vrot.lane.b32.xlu0 %v6343_v10, %s7167_s0 }
 0x752   : > { %v2078_v54 = vsel %vm7307_vm8, %v4867_v15, %v4868_v59  ;;  %v2118_v1 = vsel %vm2115_vm9, %v4872_v57, %v4873_v28  ;;  %v4352_v45 = vpack.c.bf16 %v2040_v63, %v2001_v47  ;;  %vm7309_vm6 = vmmov %vm7307_vm8  ;;  %v2116_v58 = vsel %vm2115_vm9, %v4632_v21, %v4633_v46  ;;  %v7311_v63 = vld [vmem:[#allocation40_spill] sm:$0xff] }
 0x753   : > { %v2077_v50 = vsel %vm7309_vm6, %v7308_v17, %v4867_v15  ;;  %4257 = vmatprep.subr.bf16.mxu0 %v4256_v0  ;;  %v2117_v22 = vsel %vm2115_vm9, %v4633_v46, %v4872_v57  ;;  %vm7310_vm2 = vmmov %vm7309_vm6  ;;  %v2119_v34 = vsel %vm2115_vm9, %v4873_v28, %v7094_v16  ;;  %v4637_v9 = vunpack.i.l.bf16 %v5818_v60  ;;  %2633 = vrot.lane.b32.xlu1 %v6385_v53, %s7216_s7  ;;  %v7312_v60 = vld [vmem:[#allocation41_spill] sm:$0xff] }
 0x754   : > { %v2079_v55 = vsel %vm7310_vm2, %v4868_v59, %v7095_v61  ;;  %4353 = vmatprep.subr.bf16.mxu1 %v4352_v45  ;;  %4259 = vmatpush1.bf16.msra.mxu0 %v4258_v13  ;;  %v4877_v29 = vunpack.i.l.bf16 %v4876_v49  ;;  %v4883_v21 = vunpack.i.h.bf16 %v4881_v14  ;;  %v4882_v23 = vunpack.i.l.bf16 %v4881_v14  ;;  %v4886_v13 = vpop.permute.xlu1 %4885  ;;  %v4891_v59 = vpop.permute.xlu0 %4890 }
 0x755   : > { %v4358_v47 = vpack.c.bf16 %v2118_v1, %v2078_v54  ;;  %4355 = vmatpush1.bf16.msra.mxu1 %v4354_v26  ;;  %v4878_v46 = vunpack.i.h.bf16 %v4876_v49  ;;  %v4260_v25 = vpack.c.bf16 %v2117_v22, %v2077_v50  ;;  %v4356_v27 = vpack.c.bf16 %v2119_v34, %v2079_v55  ;;  %2673 = vrot.lane.b32.xlu0 %v6385_v53, %s7219_s13 }
 0x756   : > { %v4262_v7 = vpack.c.bf16 %v2116_v58, %v6321_v11  ;;  %v2157_v12 = vsel %vm2155_vm11, %v4638_v31, %v4877_v29  ;;  %v2197_v19 = vsel %vm2195_vm1, %v4882_v23, %v4883_v21  ;;  %v4888_v28 = vunpack.i.h.bf16 %v4886_v13 }
 0x757   : > { %4261 = vmatprep.subr.bf16.mxu0 %v4260_v25  ;;  %4357 = vmatprep.subr.bf16.mxu1 %v4356_v27  ;;  %v4264_v15 = vpack.c.bf16 %v2197_v19, %v2157_v12  ;;  %v4887_v57 = vunpack.i.l.bf16 %v4886_v13  ;;  %v2156_v26 = vsel %vm2155_vm11, %v4637_v9, %v4638_v31  ;;  %v2158_v11 = vsel %vm2155_vm11, %v4877_v29, %v4878_v46  ;;  %v7313_v13 = vld [vmem:[#allocation42_spill] sm:$0xff] }
 0x758   : > { %4263 = vmatpush1.bf16.msra.mxu0 %v4262_v7  ;;  %v4893_v0 = vunpack.i.h.bf16 %v4891_v59  ;;  %v2159_v54 = vsel %vm2155_vm11, %v4878_v46, %v7311_v63  ;;  %v2198_v45 = vsel %vm2195_vm1, %v4883_v21, %v4888_v28  ;;  %v4892_v17 = vunpack.i.l.bf16 %v4891_v59  ;;  %v4896_v49 = vpop.permute.xlu1 %4895  ;;  %v4901_v14 = vpop.permute.xlu0 %4900  ;;  %3192 = vrot.lane.b32.xlu1 %v6343_v10, %s7168_s1 }
 0x759   : > { %4359 = vmatpush1.bf16.msra.mxu1 %v4358_v47  ;;  %v2196_v1 = vsel %vm2195_vm1, %v4887_v57, %v4882_v23  ;;  %4265 = vmatprep.subr.bf16.mxu0 %v4264_v15  ;;  %v2199_v31 = vsel %vm2195_vm1, %v4888_v28, %v7312_v60  ;;  %v4362_v58 = vpack.c.bf16 %v2198_v45, %v2158_v11  ;;  %v4898_v55 = vunpack.i.h.bf16 %v4896_v49 }
 0x75a   : > { %v4266_v50 = vpack.c.bf16 %v2196_v1, %v2156_v26  ;;  %v4360_v22 = vpack.c.bf16 %v2199_v31, %v2159_v54  ;;  %v4897_v34 = vunpack.i.l.bf16 %v4896_v49  ;;  %vm2235_vm6 = vcmask 539648   ;;  %3232 = vrot.lane.b32.xlu0 %v6343_v10, %s7169_s2  ;;  %v7314_v26 = vld [vmem:[#allocation43_spill] sm:$0xff] }
 0x75b   : > { %vm7102_vm8 = vcmask 359424   ;;  %v4903_v9 = vunpack.i.h.bf16 %v4901_v14  ;;  %v4902_v29 = vunpack.i.l.bf16 %v4901_v14  ;;  %v2237_v53 = vsel %vm2235_vm6, %v4892_v17, %v4893_v0 }
 0x75c   : > { %4267 = vmatpush1.bf16.msra.mxu0 %v4266_v50  ;;  %4361 = vmatprep.subr.bf16.mxu1 %v4360_v22  ;;  %v2277_v21 = vsel %vm7102_vm8, %v4897_v34, %v4898_v55  ;;  %v4906_v23 = vpop.permute.xlu1 %4905  ;;  %v4911_v47 = vpop.permute.xlu0 %4910  ;;  %vm7100_vm2 = vcmask 351232   ;;  %vm7099_vm0 = vcmask 343040   ;;  %vm7084_vm14 = vcmask 334848  }
 0x75d   : > { %4363 = vmatpush1.bf16.msra.mxu1 %v4362_v58  ;;  %v4268_v46 = vpack.c.bf16 %v2277_v21, %v2237_v53  ;;  %v4908_v25 = vunpack.i.h.bf16 %v4906_v23  ;;  %v4907_v27 = vunpack.i.l.bf16 %v4906_v23  ;;  %v2236_v7 = vsel %vm2235_vm6, %v4902_v29, %v4892_v17  ;;  %3272 = vrot.lane.b32.xlu1 %v6343_v10, %s7170_s3  ;;  %v3619_v17 = vld [vmem:[%s6876_s9] sm:$0xff] }
 0x75e   : > { %v2238_v12 = vsel %vm2235_vm6, %v4893_v0, %v4903_v9  ;;  %v4913_v19 = vunpack.i.h.bf16 %v4911_v47  ;;  %v2239_v59 = vsel %vm2235_vm6, %v4903_v9, %v7313_v13  ;;  %v4912_v57 = vunpack.i.l.bf16 %v4911_v47  ;;  %3312 = vrot.lane.b32.xlu0 %v6343_v10, %s7171_s4 }
 0x75f   : > { %4269 = vmatprep.subr.bf16.mxu0 %v4268_v46  ;;  %v2276_v15 = vsel %vm7102_vm8, %v4907_v27, %v4897_v34  ;;  %v2278_v28 = vsel %vm7102_vm8, %v4898_v55, %v4908_v25  ;;  %v2279_v11 = vsel %vm7102_vm8, %v4908_v25, %v7314_v26  ;;  %vm7075_vm10 = vcmask 326656  }
 0x760   : > { %v4270_v0 = vpack.c.bf16 %v2276_v15, %v2236_v7  ;;  %v4366_v54 = vpack.c.bf16 %v2278_v28, %v2238_v12  ;;  %v4916_v1 = vpop.permute.xlu1 %4915  ;;  %v4921_v45 = vpop.permute.xlu0 %4920  ;;  %v4364_v31 = vpack.c.bf16 %v2279_v11, %v2239_v59  ;;  %v2317_v22 = vsel %vm7100_vm2, %v4912_v57, %v4913_v19  ;;  %v7316_v59 = vld [vmem:[#allocation45_spill] sm:$0xff] }
 0x761   : > { %v4918_v50 = vunpack.i.h.bf16 %v4916_v1  ;;  %v4917_v58 = vunpack.i.l.bf16 %v4916_v1  ;;  %v4923_v49 = vunpack.i.h.bf16 %v4921_v45  ;;  %v4922_v14 = vunpack.i.l.bf16 %v4921_v45  ;;  %3352 = vrot.lane.b32.xlu1 %v6343_v10, %s7149_s18  ;;  %v7315_v10 = vld [vmem:[#allocation44_spill] sm:$0xff] }
 0x762   : > { %4271 = vmatpush1.bf16.msra.mxu0 %v4270_v0  ;;  %3622 = vperm.xlu0 %4547, %v3619_v17   ;;  %vm7077_vm13 = vcmask 318464   ;;  %vm7076_vm5 = vcmask 310272   ;;  %vm7080_vm4 = vcmask 130048   ;;  %v4732_v20 = vunpack.i.l.bf16 %v7329_v52 }
 0x763   : > { %4365 = vmatprep.subr.bf16.mxu1 %v4364_v31  ;;  %v2357_v55 = vsel %vm7099_vm0, %v4917_v58, %v4918_v50  ;;  %v2316_v23 = vsel %vm7100_vm2, %v4922_v14, %v4912_v57  ;;  %v2318_v47 = vsel %vm7100_vm2, %v4913_v19, %v4923_v49  ;;  %v2319_v25 = vsel %vm7100_vm2, %v4923_v49, %v7315_v10 }
 0x764   : > { %4367 = vmatpush1.bf16.msra.mxu1 %v4366_v54  ;;  %v4926_v34 = vpop.permute.xlu1 %4925  ;;  %v4931_v9 = vpop.permute.xlu0 %4930  ;;  %v4272_v29 = vpack.c.bf16 %v2357_v55, %v2317_v22  ;;  %vm7335_vm3 = vcmask 932864  }
 0x765   : > { %v4928_v53 = vunpack.i.h.bf16 %v4926_v34  ;;  %v4927_v21 = vunpack.i.l.bf16 %v4926_v34  ;;  %v4933_v46 = vunpack.i.h.bf16 %v4931_v9  ;;  %v4932_v12 = vunpack.i.l.bf16 %v4931_v9  ;;  %vm7336_vm12 = vmmov %vm7335_vm3 }
 0x766   : > { %4273 = vmatprep.subr.bf16.mxu0 %v4272_v29 }
 0x767   : > { %v2356_v27 = vsel %vm7099_vm0, %v4927_v21, %v4917_v58  ;;  %v2358_v7 = vsel %vm7099_vm0, %v4918_v50, %v4928_v53  ;;  %v2359_v15 = vsel %vm7099_vm0, %v4928_v53, %v7316_v59  ;;  %v2397_v31 = vsel %vm7084_vm14, %v4932_v12, %v4933_v46  ;;  %v7317_v53 = vld [vmem:[#allocation46_spill] sm:$0xff] }
 0x768   : > { %v4274_v28 = vpack.c.bf16 %v2356_v27, %v2316_v23  ;;  %v4370_v11 = vpack.c.bf16 %v2358_v7, %v2318_v47  ;;  %v4936_v0 = vpop.permute.xlu1 %4935  ;;  %v4941_v54 = vpop.permute.xlu0 %4940  ;;  %v4368_v57 = vpack.c.bf16 %v2359_v15, %v2319_v25  ;;  %v7318_v27 = vld [vmem:[#allocation47_spill] sm:$0xff]  ;;  %vm7338_vm0 = vcmask 941056  }
 0x769   : > { %v4938_v19 = vunpack.i.h.bf16 %v4936_v0  ;;  %v4937_v1 = vunpack.i.l.bf16 %v4936_v0  ;;  %v4943_v45 = vunpack.i.h.bf16 %v4941_v54  ;;  %v4942_v17 = vunpack.i.l.bf16 %v4941_v54  ;;  %vm7339_vm2 = vmmov %vm7338_vm0 }
 0x76a   : > { %4275 = vmatpush1.bf16.msra.mxu0 %v4274_v28  ;;  %4369 = vmatprep.subr.bf16.mxu1 %v4368_v57 }
 0x76b   : > { %4371 = vmatpush1.bf16.msra.mxu1 %v4370_v11  ;;  %v2437_v50 = vsel %vm7075_vm10, %v4937_v1, %v4938_v19  ;;  %v2396_v34 = vsel %vm7084_vm14, %v4942_v17, %v4932_v12  ;;  %v2398_v9 = vsel %vm7084_vm14, %v4933_v46, %v4943_v45  ;;  %v2399_v21 = vsel %vm7084_vm14, %v4943_v45, %v7317_v53 }
 0x76c   : > { %v4946_v58 = vpop.permute.xlu1 %4945  ;;  %v4951_v49 = vpop.permute.xlu0 %4950  ;;  %v4276_v14 = vpack.c.bf16 %v2437_v50, %v2397_v31  ;;  %vm2795_vm14 = vcmask 80896  }
 0x76d   : > { %v4948_v22 = vunpack.i.h.bf16 %v4946_v58  ;;  %v4947_v55 = vunpack.i.l.bf16 %v4946_v58  ;;  %v4953_v29 = vunpack.i.h.bf16 %v4951_v49  ;;  %v4952_v25 = vunpack.i.l.bf16 %v4951_v49 }
 0x76e   : > { %4277 = vmatprep.subr.bf16.mxu0 %v4276_v14 }
 0x76f   : > { %v2436_v23 = vsel %vm7075_vm10, %v4947_v55, %v4937_v1  ;;  %v2438_v47 = vsel %vm7075_vm10, %v4938_v19, %v4948_v22  ;;  %v2439_v7 = vsel %vm7075_vm10, %v4948_v22, %v7318_v27  ;;  %v2477_v1 = vsel %vm7077_vm13, %v4952_v25, %v4953_v29 }
 0x770   : > { %v4278_v15 = vpack.c.bf16 %v2436_v23, %v2396_v34  ;;  %v4374_v28 = vpack.c.bf16 %v2438_v47, %v2398_v9  ;;  %v4956_v11 = vpop.permute.xlu1 %4955  ;;  %v4961_v0 = vpop.permute.xlu0 %4960  ;;  %v4372_v12 = vpack.c.bf16 %v2439_v7, %v2399_v21  ;;  %v7319_v34 = vld [vmem:[#allocation48_spill] sm:$0xff]  ;;  %v7320_v7 = vld [vmem:[#allocation49_spill] sm:$0xff]  ;;  %vm7079_vm10 = vcmask 121856  }
 0x771   : > { %v4958_v46 = vunpack.i.h.bf16 %v4956_v11  ;;  %v4957_v54 = vunpack.i.l.bf16 %v4956_v11  ;;  %v4963_v57 = vunpack.i.h.bf16 %v4961_v0  ;;  %v4962_v17 = vunpack.i.l.bf16 %v4961_v0 }
 0x772   : > { %4279 = vmatpush1.bf16.msra.mxu0 %v4278_v15  ;;  %4373 = vmatprep.subr.bf16.mxu1 %v4372_v12 }
 0x773   : > { %4375 = vmatpush1.bf16.msra.mxu1 %v4374_v28  ;;  %v2517_v19 = vsel %vm7076_vm5, %v4957_v54, %v4958_v46  ;;  %v2476_v14 = vsel %vm7077_vm13, %v4962_v17, %v4952_v25  ;;  %v2478_v22 = vsel %vm7077_vm13, %v4953_v29, %v4963_v57  ;;  %v2479_v9 = vsel %vm7077_vm13, %v4963_v57, %v7319_v34 }
 0x774   : > { %v4966_v45 = vpop.permute.xlu1 %4965  ;;  %v4971_v31 = vpop.permute.xlu0 %4970  ;;  %v4280_v50 = vpack.c.bf16 %v2517_v19, %v2477_v1  ;;  %vm7082_vm13 = vcmask 105472  }
 0x775   : > { %v4968_v58 = vunpack.i.h.bf16 %v4966_v45  ;;  %v4967_v49 = vunpack.i.l.bf16 %v4966_v45  ;;  %v4973_v55 = vunpack.i.h.bf16 %v4971_v31  ;;  %v4972_v47 = vunpack.i.l.bf16 %v4971_v31 }
 0x776   : > { %4281 = vmatprep.subr.bf16.mxu0 %v4280_v50 }
 0x777   : > { %v2516_v21 = vsel %vm7076_vm5, %v4967_v49, %v4957_v54  ;;  %v2518_v23 = vsel %vm7076_vm5, %v4958_v46, %v4968_v58  ;;  %v2519_v15 = vsel %vm7076_vm5, %v4968_v58, %v7320_v7  ;;  %v2557_v54 = vsel %vm7080_vm4, %v4972_v47, %v4973_v55 }
 0x778   : > { %v4282_v28 = vpack.c.bf16 %v2516_v21, %v2476_v14  ;;  %v4378_v11 = vpack.c.bf16 %v2518_v23, %v2478_v22  ;;  %v4976_v0 = vpop.permute.xlu1 %4975  ;;  %v4981_v12 = vpop.permute.xlu0 %4980  ;;  %v4376_v25 = vpack.c.bf16 %v2519_v15, %v2479_v9  ;;  %vm7083_vm5 = vcmask 113664   ;;  %v7321_v9 = vld [vmem:[#allocation50_spill] sm:$0xff] }
 0x779   : > { %v4978_v29 = vunpack.i.h.bf16 %v4976_v0  ;;  %v4977_v17 = vunpack.i.l.bf16 %v4976_v0  ;;  %v4983_v1 = vunpack.i.h.bf16 %v4981_v12  ;;  %v4982_v19 = vunpack.i.l.bf16 %v4981_v12 }
 0x77a   : > { %4283 = vmatpush1.bf16.msra.mxu0 %v4282_v28  ;;  %4377 = vmatprep.subr.bf16.mxu1 %v4376_v25 }
 0x77b   : > { %4379 = vmatpush1.bf16.msra.mxu1 %v4378_v11  ;;  %v2597_v46 = vsel %vm7079_vm10, %v4977_v17, %v4978_v29  ;;  %v2556_v49 = vsel %vm7080_vm4, %v4982_v19, %v4972_v47  ;;  %v2558_v14 = vsel %vm7080_vm4, %v4973_v55, %v4983_v1  ;;  %v2559_v21 = vsel %vm7080_vm4, %v4983_v1, %v7321_v9  ;;  %v7322_v11 = vld [vmem:[#allocation51_spill] sm:$0xff] }
 0x77c   : > { %v4986_v57 = vpop.permute.xlu1 %4985  ;;  %v4991_v45 = vpop.permute.xlu0 %4990  ;;  %v4284_v31 = vpack.c.bf16 %v2597_v46, %v2557_v54  ;;  %vm2755_vm4 = vcmask 89088  }
 0x77d   : > { %v4988_v50 = vunpack.i.h.bf16 %v4986_v57  ;;  %v4987_v58 = vunpack.i.l.bf16 %v4986_v57  ;;  %v4993_v22 = vunpack.i.h.bf16 %v4991_v45  ;;  %v4992_v28 = vunpack.i.l.bf16 %v4991_v45 }
 0x77e   : > { %4285 = vmatprep.subr.bf16.mxu0 %v4284_v31 }
 0x77f   : > { %v2596_v23 = vsel %vm7079_vm10, %v4987_v58, %v4977_v17  ;;  %v2598_v15 = vsel %vm7079_vm10, %v4978_v29, %v4988_v50  ;;  %v2599_v0 = vsel %vm7079_vm10, %v4988_v50, %v7322_v11  ;;  %v2637_v17 = vsel %vm7083_vm5, %v4992_v28, %v4993_v22 }
 0x780   : > { %v4286_v12 = vpack.c.bf16 %v2596_v23, %v2556_v49  ;;  %v4382_v25 = vpack.c.bf16 %v2598_v15, %v2558_v14  ;;  %v4996_v54 = vpop.permute.xlu1 %4995  ;;  %v5001_v46 = vpop.permute.xlu0 %5000  ;;  %v4380_v47 = vpack.c.bf16 %v2599_v0, %v2559_v21  ;;  %v7323_v15 = vld [vmem:[#allocation52_spill] sm:$0xff]  ;;  %vm2715_vm10 = vcmask 97280  }
 0x781   : > { %v4998_v55 = vunpack.i.h.bf16 %v4996_v54  ;;  %v4997_v19 = vunpack.i.l.bf16 %v4996_v54  ;;  %v5003_v57 = vunpack.i.h.bf16 %v5001_v46  ;;  %v5002_v31 = vunpack.i.l.bf16 %v5001_v46  ;;  %v7324_v46 = vld [vmem:[#allocation53_spill] sm:$0xff] }
 0x782   : > { %4287 = vmatpush1.bf16.msra.mxu0 %v4286_v12  ;;  %4381 = vmatprep.subr.bf16.mxu1 %v4380_v47 }
 0x783   : > { %4383 = vmatpush1.bf16.msra.mxu1 %v4382_v25  ;;  %v2677_v29 = vsel %vm7082_vm13, %v4997_v19, %v4998_v55  ;;  %v2636_v14 = vsel %vm7083_vm5, %v5002_v31, %v4992_v28  ;;  %v2638_v21 = vsel %vm7083_vm5, %v4993_v22, %v5003_v57  ;;  %v2639_v0 = vsel %vm7083_vm5, %v5003_v57, %v7323_v15  ;;  %v7345_v15 = vld [vmem:[#allocation60_spill] sm:$0xff] }
 0x784   : > { %v5006_v1 = vpop.permute.xlu1 %5005  ;;  %v5011_v45 = vpop.permute.xlu0 %5010  ;;  %v4288_v50 = vpack.c.bf16 %v2677_v29, %v2637_v17  ;;  %vm7101_vm5 = vcmask 64512  }
 0x785   : > { %v5008_v58 = vunpack.i.h.bf16 %v5006_v1  ;;  %v5007_v49 = vunpack.i.l.bf16 %v5006_v1  ;;  %v5013_v23 = vunpack.i.h.bf16 %v5011_v45  ;;  %v5012_v54 = vunpack.i.l.bf16 %v5011_v45 }
 0x786   : > { %4289 = vmatprep.subr.bf16.mxu0 %v4288_v50 }
 0x787   : > { %v2676_v12 = vsel %vm7082_vm13, %v5007_v49, %v4997_v19  ;;  %v2678_v25 = vsel %vm7082_vm13, %v4998_v55, %v5008_v58  ;;  %v2679_v47 = vsel %vm7082_vm13, %v5008_v58, %v7324_v46  ;;  %v6556_v55 = vld [vmem:[%s6875_s8] sm:$0xff]  ;;  %v2717_v19 = vsel %vm2715_vm10, %v5012_v54, %v5013_v23 }
 0x788   : > { %v4290_v17 = vpack.c.bf16 %v2676_v12, %v2636_v14  ;;  %v4386_v29 = vpack.c.bf16 %v2678_v25, %v2638_v21  ;;  %v5016_v1 = vpop.permute.xlu1 %5015  ;;  %v5021_v18 = vpop.permute.xlu0 %5020  ;;  %v4384_v28 = vpack.c.bf16 %v2679_v47, %v2639_v0  ;;  %7325 = vst [vmem:[#allocation82_spill] sm:$0xff] %v6556_v55  ;;  %vm2835_vm13 = vcmask 949248   ;;  %v7326_v14 = vld [vmem:[#allocation57_spill] sm:$0xff] }
 0x789   : > { %v5018_v31 = vunpack.i.h.bf16 %v5016_v1  ;;  %v5017_v22 = vunpack.i.l.bf16 %v5016_v1  ;;  %v5023_v50 = vunpack.i.h.bf16 %v5021_v18  ;;  %v5022_v62 = vunpack.i.l.bf16 %v5021_v18  ;;  %v6563_v18 = vld [vmem:[%s6875_s8 + $0x18] sm:$0xff] }
 0x78a   : > { %4291 = vmatpush1.bf16.msra.mxu0 %v4290_v17  ;;  %4385 = vmatprep.subr.bf16.mxu1 %v4384_v28  ;;  %v4728_v21 = vunpack.i.h.bf16 %v7326_v14 }
 0x78b   : > { %4387 = vmatpush1.bf16.msra.mxu1 %v4386_v29  ;;  %v2757_v57 = vsel %vm2755_vm4, %v5017_v22, %v5018_v31  ;;  %v2716_v25 = vsel %vm2715_vm10, %v5022_v62, %v5012_v54  ;;  %v2718_v47 = vsel %vm2715_vm10, %v5013_v23, %v5023_v50  ;;  %v4727_v62 = vunpack.i.l.bf16 %v7326_v14 }
 0x78c   : > { %v5026_v45 = vpop.permute.xlu1 %5025  ;;  %v5031_v58 = vpop.permute.xlu0 %5030  ;;  %v4292_v49 = vpack.c.bf16 %v2757_v57, %v2717_v19  ;;  %v7327_v19 = vld [vmem:[#allocation54_spill] sm:$0xff] }
 0x78d   : > { %v5028_v0 = vunpack.i.h.bf16 %v5026_v45  ;;  %v5027_v12 = vunpack.i.l.bf16 %v5026_v45  ;;  %3694 = vmatmul.mubr.f32.vlgmr.msra.gmra.mrb[4].mxu0 %v6556_v55  ;;  %v5033_v17 = vunpack.i.h.bf16 %v5031_v58  ;;  %v5032_v29 = vunpack.i.l.bf16 %v5031_v58 }
 0x78e   : > { %4293 = vmatprep.subr.bf16.mxu0 %v4292_v49  ;;  %3836 = vmatmul.mubr.f32.vlgmr.msra.gmra.mrb[4].mxu1 %v6556_v55  ;;  %v2719_v57 = vsel %vm2715_vm10, %v5023_v50, %v7327_v19  ;;  %v7333_v55 = vld [vmem:[#allocation62_spill] sm:$0xff] }
 0x78f   : > { %v2756_v1 = vsel %vm2755_vm4, %v5027_v12, %v5017_v22  ;;  %v2758_v28 = vsel %vm2755_vm4, %v5018_v31, %v5028_v0  ;;  %v2759_v45 = vsel %vm2755_vm4, %v5028_v0, %v7328_v3  ;;  %4124 = vmatprep.mubr.msk.f32.mxu0 %vm7101_vm5, %v6563_v18  ;;  %4125 = vmatprep.mubr.msk.f32.mxu1 %vm7101_vm5, %v6563_v18  ;;  %v7330_v0 = vld [vmem:[#allocation59_spill] sm:$0xff]  ;;  %vm7341_vm5 = vmmov %vm7338_vm0 }
 0x790   : > { %v4294_v23 = vpack.c.bf16 %v2756_v1, %v2716_v25  ;;  %v4390_v54 = vpack.c.bf16 %v2758_v28, %v2718_v47  ;;  %v5036_v58 = vpop.permute.xlu1 %5035  ;;  %v5041_v49 = vpop.permute.xlu0 %5040  ;;  %v4388_v42 = vpack.c.bf16 %v2759_v45, %v2719_v57  ;;  %v4737_v8 = vunpack.i.l.bf16 %v7330_v0  ;;  %v7331_v25 = vld [vmem:[#allocation7_spill] sm:$0xff] }
 0x791   : > { %v5038_v31 = vunpack.i.h.bf16 %v5036_v58  ;;  %v5037_v22 = vunpack.i.l.bf16 %v5036_v58  ;;  %v5043_v12 = vunpack.i.h.bf16 %v5041_v49  ;;  %v5042_v50 = vunpack.i.l.bf16 %v5041_v49 }
 0x792   : > { %4295 = vmatpush1.bf16.msra.mxu0 %v4294_v23  ;;  %4389 = vmatprep.subr.bf16.mxu1 %v4388_v42  ;;  %v2797_v14 = vsel %vm2795_vm14, %v5032_v29, %v5033_v17  ;;  %v2839_v47 = vsel %vm2835_vm13, %v4728_v21, %v7331_v25  ;;  %v7332_v23 = vld [vmem:[#allocation56_spill] sm:$0xff] }
 0x793   : > { %v2838_v1 = vsel %vm2835_vm13, %v5038_v31, %v4728_v21  ;;  %v2836_v28 = vsel %vm2835_vm13, %v4727_v62, %v5037_v22  ;;  %v2796_v57 = vsel %vm2795_vm14, %v5042_v50, %v5032_v29  ;;  %v2798_v45 = vsel %vm2795_vm14, %v5033_v17, %v5043_v12  ;;  %4391 = vmatpush1.bf16.msra.mxu1 %v4390_v54 }
 0x794   : > { %v4298_v58 = vpack.c.bf16 %v2836_v28, %v2796_v57  ;;  %v4394_v49 = vpack.c.bf16 %v2838_v1, %v2798_v45  ;;  %v5051_v24 = vpop.permute.xlu1 %5050  ;;  %v5046_v41 = vpop.permute.xlu0 %5045  ;;  %v2837_v42 = vsel %vm2835_vm13, %v5037_v22, %v5038_v31  ;;  %v2799_v56 = vsel %vm2795_vm14, %v5043_v12, %v7332_v23  ;;  %v7340_v12 = vld [vmem:[#allocation63_spill] sm:$0xff]  ;;  %v7342_v45 = vld [vmem:[#allocation66_spill] sm:$0xff] }
 0x795   : > { %v5053_v40 = vunpack.i.h.bf16 %v5051_v24  ;;  %v5052_v16 = vunpack.i.l.bf16 %v5051_v24  ;;  %v5048_v61 = vunpack.i.h.bf16 %v5046_v41  ;;  %v5047_v21 = vunpack.i.l.bf16 %v5046_v41 }
 0x796   : > { %v4742_v62 = vunpack.i.l.bf16 %v7333_v55  ;;  %v4296_v46 = vpack.c.bf16 %v2837_v42, %v2797_v14  ;;  %v4392_v29 = vpack.c.bf16 %v2839_v47, %v2799_v56  ;;  %v7334_v17 = vunpack.i.h.bf16 %v7330_v0 }
 0x797   : > { %v2916_v50 = vsel %vm7336_vm12, %v4737_v8, %v5052_v16  ;;  %v7337_v1 = vunpack.i.h.bf16 %v7329_v52  ;;  %v2876_v22 = vsel %vm7339_vm2, %v4732_v20, %v5047_v21  ;;  %v4747_v24 = vunpack.i.l.bf16 %v7340_v12 }
 0x798   : > { %v2918_v54 = vsel %vm7335_vm3, %v5053_v40, %v7334_v17  ;;  %v4302_v41 = vpack.c.bf16 %v2916_v50, %v2876_v22  ;;  %4297 = vmatprep.subr.bf16.mxu0 %v4296_v46  ;;  %4393 = vmatprep.subr.bf16.mxu1 %v4392_v29  ;;  %v5061_v14 = vpop.permute.xlu1 %5060  ;;  %v5056_v56 = vpop.permute.xlu0 %5055  ;;  %v2877_v0 = vsel %vm7341_vm5, %v5047_v21, %v5048_v61  ;;  %v4752_v42 = vunpack.i.l.bf16 %v7342_v45  ;;  %v7343_v17 = vld [vmem:[#allocation67_spill] sm:$0xff] }
 0x799   : > { %v2878_v31 = vsel %vm7338_vm0, %v5048_v61, %v7337_v1  ;;  %4299 = vmatpush1.bf16.msra.mxu0 %v4298_v58  ;;  %4395 = vmatpush1.bf16.msra.mxu1 %v4394_v49  ;;  %v5063_v47 = vunpack.i.h.bf16 %v5061_v14  ;;  %v5062_v8 = vunpack.i.l.bf16 %v5061_v14  ;;  %v5058_v57 = vunpack.i.h.bf16 %v5056_v56  ;;  %v7344_v1 = vld [vmem:[#allocation61_spill] sm:$0xff] }
 0x79a   : > { %v4398_v28 = vpack.c.bf16 %v2918_v54, %v2878_v31  ;;  %v5057_v52 = vunpack.i.l.bf16 %v5056_v56  ;;  %v4757_v20 = vunpack.i.l.bf16 %v7343_v17  ;;  %v7346_v54 = vpack.c.bf16 %v7344_v1, %v7345_v15 }
 0x79b   : > { %v2917_v46 = vsel %vm7335_vm3, %v5052_v16, %v5053_v40  ;;  %v7347_v29 = vunpack.i.h.bf16 %v7340_v12  ;;  %vm7348_vm0 = vcmask 916480   ;;  %v7350_v49 = vunpack.i.h.bf16 %v7333_v55 }
 0x79c   : > { %4397 = vmatprep.subr.bf16.mxu1 %v7346_v54  ;;  %vm7349_vm5 = vmmov %vm7348_vm0  ;;  %vm7351_vm12 = vcmask 924672   ;;  %v4300_v14 = vpack.c.bf16 %v2917_v46, %v2877_v0  ;;  %v5071_v56 = vpop.permute.xlu1 %5070  ;;  %v5066_v15 = vpop.permute.xlu0 %5065  ;;  %v4767_v55 = vunpack.i.l.bf16 %v7355_v51  ;;  %v7360_v46 = vunpack.i.h.bf16 %v7343_v17 }
 0x79d   : > { %v2998_v61 = vsel %vm7348_vm0, %v5063_v47, %v7347_v29  ;;  %v2996_v58 = vsel %vm7349_vm5, %v4747_v24, %v5062_v8  ;;  %v2958_v21 = vsel %vm7351_vm12, %v5058_v57, %v7350_v49  ;;  %vm7352_vm2 = vmmov %vm7351_vm12  ;;  %4399 = vmatpush1.bf16.msra.mxu1 %v4398_v28  ;;  %v5073_v40 = vunpack.i.h.bf16 %v5071_v56  ;;  %v7354_v29 = vld [vmem:[#allocation70_spill] sm:$0xff]  ;;  %v7356_v49 = vld [vmem:[#allocation65_spill] sm:$0xff] }
 0x79e   : > { %v2956_v50 = vsel %vm7352_vm2, %v4742_v62, %v5057_v52  ;;  %v4402_v31 = vpack.c.bf16 %v2998_v61, %v2958_v21  ;;  %vm7353_vm8 = vmmov %vm7352_vm2  ;;  %v5072_v16 = vunpack.i.l.bf16 %v5071_v56  ;;  %v5068_v12 = vunpack.i.h.bf16 %v5066_v15  ;;  %4301 = vmatprep.subr.bf16.mxu0 %v4300_v14 }
 0x79f   : > { %v4306_v22 = vpack.c.bf16 %v2996_v58, %v2956_v50  ;;  %v2957_v1 = vsel %vm7353_vm8, %v5057_v52, %v5058_v57  ;;  %v5067_v54 = vunpack.i.l.bf16 %v5066_v15  ;;  %v4762_v24 = vunpack.i.l.bf16 %v7354_v29  ;;  %vm7359_vm3 = vmmov %vm7348_vm0  ;;  %4303 = vmatpush1.bf16.msra.mxu0 %v4302_v41 }
 0x7a0   : > { %v7358_v62 = vpack.c.bf16 %v7356_v49, %v7357_v36  ;;  %v2997_v0 = vsel %vm7359_vm3, %v5062_v8, %v5063_v47  ;;  %vm7361_vm8 = vcmask 900096   ;;  %v7363_v52 = vunpack.i.h.bf16 %v7342_v45  ;;  %v5081_v36 = vpop.permute.xlu1 %5080  ;;  %v5076_v56 = vpop.permute.xlu0 %5075  ;;  %v7367_v49 = vld [vmem:[#allocation74_spill] sm:$0xff] }
 0x7a1   : > { %v3077_v28 = vsel %vm7361_vm8, %v5073_v40, %v7360_v46  ;;  %vm7362_vm0 = vmmov %vm7361_vm8  ;;  %vm7364_vm5 = vcmask 908288   ;;  %v4304_v14 = vpack.c.bf16 %v2997_v0, %v2957_v1  ;;  %v5083_v41 = vunpack.i.h.bf16 %v5081_v36  ;;  %v7369_v46 = vld [vmem:[#allocation69_spill] sm:$0xff] }
 0x7a2   : > { %4401 = vmatprep.subr.bf16.mxu1 %v7358_v62  ;;  %v3075_v57 = vsel %vm7362_vm0, %v4757_v20, %v5072_v16  ;;  %v3038_v61 = vsel %vm7364_vm5, %v5068_v12, %v7363_v52  ;;  %vm7365_vm12 = vmmov %vm7364_vm5  ;;  %v5082_v8 = vunpack.i.l.bf16 %v5081_v36  ;;  %v5078_v17 = vunpack.i.h.bf16 %v5076_v56  ;;  %v7368_v62 = vld [vmem:[#allocation75_spill] sm:$0xff]  ;;  %v7370_v52 = vld [vmem:[#allocation68_spill] sm:$0xff] }
 0x7a3   : > { %v3036_v58 = vsel %vm7365_vm12, %v4752_v42, %v5067_v54  ;;  %v4406_v21 = vpack.c.bf16 %v3077_v28, %v3038_v61  ;;  %vm7366_vm2 = vmmov %vm7364_vm5  ;;  %4403 = vmatpush1.bf16.msra.mxu1 %v4402_v31  ;;  %v5077_v15 = vunpack.i.l.bf16 %v5076_v56  ;;  %v4772_v20 = vunpack.i.l.bf16 %v7367_v49  ;;  %4305 = vmatprep.subr.bf16.mxu0 %v4304_v14 }
 0x7a4   : > { %v4310_v50 = vpack.c.bf16 %v3075_v57, %v3036_v58  ;;  %v3037_v47 = vsel %vm7366_vm2, %v5067_v54, %v5068_v12  ;;  %v4777_v45 = vunpack.i.l.bf16 %v7368_v62  ;;  %v7371_v42 = vpack.c.bf16 %v7369_v46, %v7370_v52  ;;  %vm7372_vm3 = vmmov %vm7362_vm0  ;;  %4307 = vmatpush1.bf16.msra.mxu0 %v4306_v22  ;;  %v5091_v36 = vpop.permute.xlu1 %5090  ;;  %v5086_v56 = vpop.permute.xlu0 %5085  ;;  %v7380_v52 = vld [vmem:[#allocation78_spill] sm:$0xff] }
 0x7a5   : > { %v3076_v1 = vsel %vm7372_vm3, %v5072_v16, %v5073_v40  ;;  %v7373_v0 = vunpack.i.h.bf16 %v7355_v51  ;;  %vm7374_vm8 = vcmask 711680   ;;  %v7376_v54 = vunpack.i.h.bf16 %v7354_v29 }
 0x7a6   : > { %4405 = vmatprep.subr.bf16.mxu1 %v7371_v42  ;;  %vm7375_vm0 = vmmov %vm7374_vm8  ;;  %vm7377_vm5 = vcmask 719872   ;;  %v4308_v14 = vpack.c.bf16 %v3076_v1, %v3037_v47  ;;  %v5093_v22 = vunpack.i.h.bf16 %v5091_v36  ;;  %v5092_v51 = vunpack.i.l.bf16 %v5091_v36  ;;  %v7381_v42 = vld [vmem:[#allocation79_spill] sm:$0xff] }
 0x7a7   : > { %v3157_v31 = vsel %vm7374_vm8, %v5083_v41, %v7373_v0  ;;  %v3155_v12 = vsel %vm7375_vm0, %v4767_v55, %v5082_v8  ;;  %v3117_v28 = vsel %vm7377_vm5, %v5078_v17, %v7376_v54  ;;  %vm7378_vm12 = vmmov %vm7377_vm5  ;;  %4407 = vmatpush1.bf16.msra.mxu1 %v4406_v21  ;;  %v5088_v16 = vunpack.i.h.bf16 %v5086_v56  ;;  %v7382_v0 = vld [vmem:[#allocation73_spill] sm:$0xff]  ;;  %v7383_v54 = vld [vmem:[#allocation72_spill] sm:$0xff] }
 0x7a8   : > { %v3115_v57 = vsel %vm7378_vm12, %v4762_v24, %v5077_v15  ;;  %v4410_v61 = vpack.c.bf16 %v3157_v31, %v3117_v28  ;;  %vm7379_vm2 = vmmov %vm7377_vm5  ;;  %v5087_v46 = vunpack.i.l.bf16 %v5086_v56  ;;  %v4782_v55 = vunpack.i.l.bf16 %v7380_v52  ;;  %4309 = vmatprep.subr.bf16.mxu0 %v4308_v14  ;;  %v5101_v36 = vpop.permute.xlu1 %5100  ;;  %v5096_v56 = vpop.permute.xlu0 %5095 }
 0x7a9   : > { %v4314_v58 = vpack.c.bf16 %v3155_v12, %v3115_v57  ;;  %v3116_v40 = vsel %vm7379_vm2, %v5077_v15, %v5078_v17  ;;  %v4787_v29 = vunpack.i.l.bf16 %v7381_v42  ;;  %v7384_v24 = vpack.c.bf16 %v7382_v0, %v7383_v54  ;;  %vm7385_vm3 = vmmov %vm7375_vm0  ;;  %4311 = vmatpush1.bf16.msra.mxu0 %v4310_v50  ;;  %v7389_v54 = vld [vmem:[#allocation76_spill] sm:$0xff] }
 0x7aa   : > { %v3156_v47 = vsel %vm7385_vm3, %v5082_v8, %v5083_v41  ;;  %v7386_v1 = vunpack.i.h.bf16 %v7368_v62  ;;  %v3235_v17 = vsel %vm3234_vm7, %v4777_v45, %v5092_v51  ;;  %v7387_v15 = vunpack.i.h.bf16 %v7367_v49  ;;  %v7388_v45 = vld [vmem:[#allocation77_spill] sm:$0xff] }
 0x7ab   : > { %4409 = vmatprep.subr.bf16.mxu1 %v7384_v24  ;;  %v3195_v12 = vsel %vm3194_vm15, %v4772_v20, %v5087_v46  ;;  %v4312_v14 = vpack.c.bf16 %v3156_v47, %v3116_v40  ;;  %v3196_v41 = vsel %vm3194_vm15, %v5087_v46, %v5088_v16  ;;  %v5103_v50 = vunpack.i.h.bf16 %v5101_v36 }
 0x7ac   : > { %v3237_v21 = vsel %vm3234_vm7, %v5093_v22, %v7386_v1  ;;  %v3197_v31 = vsel %vm3194_vm15, %v5088_v16, %v7387_v15  ;;  %v4318_v57 = vpack.c.bf16 %v3235_v17, %v3195_v12  ;;  %4411 = vmatpush1.bf16.msra.mxu1 %v4410_v61  ;;  %v5102_v8 = vunpack.i.l.bf16 %v5101_v36  ;;  %v6676_v15 = vpop.permute.xlu1 %2393 }
 0x7ad   : > { %v4414_v28 = vpack.c.bf16 %v3237_v21, %v3197_v31  ;;  %v5098_v62 = vunpack.i.h.bf16 %v5096_v56  ;;  %v5097_v0 = vunpack.i.l.bf16 %v5096_v56  ;;  %4313 = vmatprep.subr.bf16.mxu0 %v4312_v14  ;;  %v7390_v49 = vpack.c.bf16 %v7388_v45, %v7389_v54  ;;  %v7402_v14 = vld [vmem:[#allocation35_spill] sm:$0xff]  ;;  %v7406_v45 = vld [vmem:[#allocation24_spill] sm:$0xff] }
 0x7ae   : > { %v3236_v24 = vsel %vm3234_vm7, %v5092_v51, %v5093_v22  ;;  %4315 = vmatpush1.bf16.msra.mxu0 %v4314_v58  ;;  %v7391_v20 = vunpack.i.h.bf16 %v7381_v42  ;;  %vm7392_vm8 = vcmask 678912   ;;  %v7394_v61 = vunpack.i.h.bf16 %v7380_v52  ;;  %v6679_v58 = vpop.permute.xlu0 %2433  ;;  %v7399_v42 = vld [vmem:[#allocation81_spill] sm:$0xff] }
 0x7af   : > { %4413 = vmatprep.subr.bf16.mxu1 %v7390_v49  ;;  %vm7393_vm0 = vmmov %vm7392_vm8  ;;  %vm7395_vm5 = vcmask 687104   ;;  %v4316_v17 = vpack.c.bf16 %v3236_v24, %v3196_v41  ;;  %v4723_v12 = vunpack.i.h.bf16 %v7306_v2  ;;  %v4643_v36 = vunpack.i.h.bf16 %v7402_v14  ;;  %v7403_v41 = vld [vmem:[#allocation20_spill] sm:$0xff]  ;;  %v6703_v24 = vld [vmem:[%s6875_s8 + $0x10] sm:$0xff] }
 0x7b0   : > { %v3317_v40 = vsel %vm7392_vm8, %v5103_v50, %v7391_v20  ;;  %v3315_v47 = vsel %vm7393_vm0, %v4787_v29, %v5102_v8  ;;  %v3277_v16 = vsel %vm7395_vm5, %v5098_v62, %v7394_v61  ;;  %vm7396_vm12 = vmmov %vm7395_vm5  ;;  %4415 = vmatpush1.bf16.msra.mxu1 %v4414_v28  ;;  %v7400_v29 = vld [vmem:[#allocation80_spill] sm:$0xff]  ;;  %vm3354_vm8 = vcmask 670720   ;;  %v3347_v28 = vpop.permute.xlu1 %3346 }
 0x7b1   : > { %v3275_v46 = vsel %vm7396_vm12, %v4782_v55, %v5097_v0  ;;  %v4418_v1 = vpack.c.bf16 %v3317_v40, %v3277_v16  ;;  %vm7397_vm2 = vmmov %vm7395_vm5  ;;  %4317 = vmatprep.subr.bf16.mxu0 %v4316_v17  ;;  %v7401_v52 = vpack.c.bf16 %v7399_v42, %v7400_v29  ;;  %v4718_v55 = vunpack.i.h.bf16 %v7298_v44 }
 0x7b2   : > { %v4322_v21 = vpack.c.bf16 %v3315_v47, %v3275_v46  ;;  %v3276_v22 = vsel %vm7397_vm2, %v5097_v0, %v5098_v62  ;;  %vm7398_vm3 = vmmov %vm7393_vm0  ;;  %4319 = vmatpush1.bf16.msra.mxu0 %v4318_v57  ;;  %v3345_v56 = vpop.permute.xlu0 %3344  ;;  %v7405_v62 = vld [vmem:[#allocation23_spill] sm:$0xff]  ;;  %v2760_v54 = vsel %vm2755_vm4, %v7328_v3, %v7406_v45  ;;  %v7407_v20 = vunpack.i.l.bf16 %v7298_v44  ;;  %v7413_v44 = vld [vmem:[#allocation21_spill] sm:$0xff] }
 0x7b3   : > { %v3316_v51 = vsel %vm7398_vm3, %v5102_v8, %v5103_v50  ;;  %4417 = vmatprep.subr.bf16.mxu1 %v7401_v52  ;;  %v7404_v50 = vld [vmem:[#allocation83_spill] sm:$0xff]  ;;  %v2720_v0 = vsel %vm2715_vm10, %v7327_v19, %v7405_v62  ;;  %v3356_v49 = vsel %vm3354_vm8, %v3345_v56, %v3347_v28  ;;  %vm7408_vm0 = vcmask 572416   ;;  %v7421_v45 = vld [vmem:[#allocation25_spill] sm:$0xff] }
 0x7b4   : > { %v4320_v31 = vpack.c.bf16 %v3316_v51, %v3276_v22  ;;  %4419 = vmatpush1.bf16.msra.mxu1 %v4418_v1  ;;  %v3358_v8 = vsel %vm3354_vm8, %v7404_v50, %v7403_v41  ;;  %v3357_v57 = vsel %vm3354_vm8, %v3347_v28, %v7404_v50  ;;  %v2080_v19 = vsel %vm7408_vm0, %v7407_v20, %v4718_v55  ;;  %v7412_v1 = vld [vmem:[#allocation34_spill] sm:$0xff]  ;;  %v2954_v17 = vpop.permute.xlu1 %2953  ;;  %v7415_v52 = vld [vmem:[#allocation27_spill] sm:$0xff]  ;;  %v7424_v20 = vld [vmem:[#allocation32_spill] sm:$0xff] }
 0x7b5   : > { %3874 = vmatprep.subr.mxu1 %v3358_v8  ;;  %v7409_v40 = vunpack.i.l.bf16 %v7306_v2  ;;  %v7410_v47 = vunpack.i.l.bf16 %v7402_v14  ;;  %vm7411_vm4 = vcmask 1039360   ;;  %v4648_v16 = vunpack.i.h.bf16 %v5834_v5  ;;  %v7414_v2 = vld [vmem:[#allocation22_spill] sm:$0xff]  ;;  %v1453_v14 = vld [vmem:[#allocation3 + $0x20] sm:$0xff] }
 0x7b6   : > { %4321 = vmatprep.subr.bf16.mxu0 %v4320_v31  ;;  %v4653_v46 = vunpack.i.h.bf16 %v5836_v30  ;;  %v2160_v22 = vsel %vm2155_vm11, %v7311_v63, %v7413_v44  ;;  %v2200_v51 = vsel %vm2195_vm1, %v7312_v60, %v7414_v2  ;;  %v4453_v42 = vpack.c.bf16 %v2760_v54, %v2720_v0  ;;  %v2994_v29 = vpop.permute.xlu0 %2993 }
 0x7b7   : > { %4323 = vmatpush1.bf16.msra.mxu0 %v4322_v21  ;;  %v2120_v3 = vsel %vm2115_vm9, %v7409_v40, %v4723_v12  ;;  %v1487_v61 = vsel %vm7411_vm4, %v7410_v47, %v4643_v36  ;;  %v3355_v21 = vsel %vm3354_vm8, %v7412_v1, %v3345_v56  ;;  %v2800_v31 = vsel %vm2795_vm14, %v7332_v23, %v7415_v52  ;;  %v7416_v36 = vld [vmem:[#allocation28_spill] sm:$0xff] }
 0x7b8   : > { %3732 = vmatprep.subr.mxu0 %v3356_v49  ;;  %3875 = vmatpush1.msra.mxu1 %v3357_v57  ;;  %v4420_v55 = vpack.c.bf16 %v2120_v3, %v2080_v19  ;;  %v5187_v12 = vmov 0.0|0.0   ;;  %v2840_v63 = vsel %vm2835_vm13, %v7331_v25, %v7416_v36  ;;  %v4658_v60 = vunpack.i.h.bf16 %v5842_v6  ;;  %v2474_v25 = vpop.permute.xlu1 %2473  ;;  %v7422_v57 = vld [vmem:[#allocation26_spill] sm:$0xff]  ;;  %v7425_v19 = vld [vmem:[#allocation9_spill] sm:$0xff]  ;;  %v7427_v3 = vld [vmem:[#allocation31_spill] sm:$0xff] }
 0x7b9   : > { %3907 = vmatmul.mubr.f32.vlgmr.msra.gmra.mrb[4].mxu1 %v6703_v24  ;;  %4452 = vmatprep.subr.bf16.mxu1 %v5187_v12  ;;  %v4422_v28 = vpack.c.bf16 %v1487_v61, %v1453_v14  ;;  %v7417_v56 = vunpack.i.l.bf16 %v5834_v5  ;;  %vm7418_vm10 = vcmask 1031168   ;;  %v7419_v50 = vunpack.i.l.bf16 %v5836_v30  ;;  %v7428_v47 = vld [vmem:[#allocation8_spill] sm:$0xff]  ;;  %v7441_v36 = vld [vmem:[#allocation11_spill] sm:$0xff] }
 0x7ba   : > { %4454 = vmatpush1.bf16.msra.mxu1 %v4453_v42  ;;  %vm7420_vm14 = vcmask 1022976   ;;  %v4663_v62 = vunpack.i.h.bf16 %v5844_v32  ;;  %v4424_v0 = vpack.c.bf16 %v2200_v51, %v2160_v22  ;;  %v2240_v54 = vsel %vm2235_vm6, %v7313_v13, %v7421_v45  ;;  %v2514_v30 = vpop.permute.xlu0 %2513  ;;  %v5124_v13 = vld [vmem:[%s6875_s8 + $0x8] sm:$0xff]  ;;  %v7435_v42 = vld [vmem:[#allocation29_spill] sm:$0xff] }
 0x7bb   : > { %3733 = vmatpush1.msra.mxu0 %v3355_v21  ;;  %v1526_v23 = vsel %vm7418_vm10, %v7417_v56, %v4648_v16  ;;  %v1566_v8 = vsel %vm7420_vm14, %v7419_v50, %v4653_v46  ;;  %vm7423_vm13 = vcmask 359424   ;;  %v4456_v49 = vpack.c.bf16 %v2840_v63, %v2800_v31  ;;  %4455 = vmatprep.subr.bf16.mxu1 %v5187_v12  ;;  %v7437_v31 = vld [vmem:[#allocation30_spill] sm:$0xff] }
 0x7bc   : > { %3765 = vmatmul.mubr.f32.vlgmr.msra.gmra.mrb[4].mxu0 %v6703_v24  ;;  %4421 = vmatprep.subr.bf16.mxu0 %v4420_v55  ;;  %v2280_v5 = vsel %vm7423_vm13, %v7314_v26, %v7422_v57  ;;  %vm7426_vm9 = vcmask 932864   ;;  %vm7429_vm11 = vcmask 941056   ;;  %v7430_v26 = vunpack.i.l.bf16 %v5842_v6  ;;  %v3034_v51 = vpop.permute.xlu1 %3033  ;;  %v7439_v55 = vld [vmem:[#allocation10_spill] sm:$0xff] }
 0x7bd   : > { %4423 = vmatpush3.bf16.msra.mxu0 %v4422_v28  ;;  %v2920_v40 = vsel %vm7426_vm9, %v7425_v19, %v7424_v20  ;;  %v2880_v61 = vsel %vm7429_vm11, %v7428_v47, %v7427_v3  ;;  %3977 = vmatprep.mubr.f32.mxu0 %v5124_v13  ;;  %vm7431_vm1 = vcmask 1014784   ;;  %v4426_v46 = vpack.c.bf16 %v1566_v8, %v1526_v23 }
 0x7be   : > { %4425 = vmatprep.subr.bf16.mxu0 %v4424_v0  ;;  %v1606_v16 = vsel %vm7431_vm1, %v7430_v26, %v4658_v60  ;;  %4457 = vmatpush1.bf16.msra.mxu1 %v4456_v49  ;;  %vm7432_vm6 = vcmask 64512   ;;  %v7433_v1 = vunpack.i.l.bf16 %v5844_v32  ;;  %vm7434_vm5 = vcmask 1006592   ;;  %v3074_v32 = vpop.permute.xlu0 %3073  ;;  %v7461_v26 = vld [vmem:[#allocation15_spill] sm:$0xff] }
 0x7bf   : > { %4126 = vmatprep.mubr.msk.f32.mxu1 %vm7432_vm6, %v6563_v18  ;;  %v4668_v44 = vunpack.i.h.bf16 %v5850_v33  ;;  %v4673_v22 = vunpack.i.h.bf16 %v5852_v35  ;;  %v4428_v2 = vpack.c.bf16 %v2280_v5, %v2240_v54  ;;  %4458 = vmatprep.subr.bf16.mxu1 %v5187_v12  ;;  %v4459_v6 = vpack.c.bf16 %v2920_v40, %v2880_v61  ;;  %v7451_v54 = vld [vmem:[#allocation13_spill] sm:$0xff]  ;;  %v7459_v61 = vld [vmem:[#allocation14_spill] sm:$0xff] }
 0x7c0   : > { %v1646_v21 = vsel %vm7434_vm5, %v7433_v1, %v4663_v62  ;;  %vm7436_vm12 = vcmask 351232   ;;  %vm7438_vm2 = vcmask 343040   ;;  %vm7440_vm3 = vcmask 924672  }
 0x7c1   : > { %v2320_v52 = vsel %vm7436_vm12, %v7315_v10, %v7435_v42  ;;  %v2360_v18 = vsel %vm7438_vm2, %v7316_v59, %v7437_v31  ;;  %4427 = vmatpush3.bf16.msra.mxu0 %v4426_v46  ;;  %v2960_v14 = vsel %vm7440_vm3, %v7439_v55, %v2954_v17  ;;  %vm7442_vm0 = vcmask 916480   ;;  %v2554_v17 = vpop.permute.xlu1 %2553 }
 0x7c2   : > { %v3000_v63 = vsel %vm7442_vm0, %v7441_v36, %v2994_v29  ;;  %4429 = vmatprep.subr.bf16.mxu0 %v4428_v2  ;;  %v4678_v60 = vunpack.i.h.bf16 %v5858_v37  ;;  %v4430_v28 = vpack.c.bf16 %v1646_v21, %v1606_v16  ;;  %4460 = vmatpush1.bf16.msra.mxu1 %v4459_v6  ;;  %v7443_v56 = vunpack.i.l.bf16 %v5850_v33  ;;  %v2594_v0 = vpop.permute.xlu0 %2593 }
 0x7c3   : > { %vm7444_vm4 = vcmask 998400   ;;  %v7445_v23 = vunpack.i.l.bf16 %v5852_v35  ;;  %vm7446_vm10 = vcmask 818176   ;;  %v4683_v50 = vunpack.i.h.bf16 %v5860_v38  ;;  %4461 = vmatprep.subr.bf16.mxu1 %v5187_v12  ;;  %v7449_v35 = vld [vmem:[#allocation12_spill] sm:$0xff] }
 0x7c4   : > { %v1686_v10 = vsel %vm7444_vm4, %v7443_v56, %v4668_v44  ;;  %v4432_v8 = vpack.c.bf16 %v2360_v18, %v2320_v52  ;;  %vm7447_vm14 = vcmask 334848   ;;  %vm7448_vm13 = vcmask 326656   ;;  %v7479_v56 = vld [vmem:[#allocation16_spill] sm:$0xff] }
 0x7c5   : > { %v1725_v59 = vsel %vm7446_vm10, %v7445_v23, %v4673_v22  ;;  %v2400_v29 = vsel %vm7447_vm14, %v7317_v53, %v6676_v15  ;;  %v2440_v33 = vsel %vm7448_vm13, %v7318_v27, %v6679_v58  ;;  %v4462_v62 = vpack.c.bf16 %v3000_v63, %v2960_v14  ;;  %4431 = vmatpush3.bf16.msra.mxu0 %v4430_v28  ;;  %v3113_v40 = vpop.permute.xlu1 %3112  ;;  %v7474_v14 = vld [vmem:[#allocation37_spill] sm:$0xff] }
 0x7c6   : > { %vm7450_vm9 = vcmask 908288   ;;  %vm7452_vm11 = vcmask 900096   ;;  %4433 = vmatprep.subr.bf16.mxu0 %v4432_v8  ;;  %v7453_v5 = vunpack.i.l.bf16 %v5858_v37  ;;  %vm7454_vm1 = vcmask 809984   ;;  %v3153_v13 = vpop.permute.xlu0 %3152  ;;  %v7480_v23 = vld [vmem:[#allocation17_spill] sm:$0xff] }
 0x7c7   : > { %v3040_v45 = vsel %vm7450_vm9, %v7449_v35, %v3034_v51  ;;  %v3079_v57 = vsel %vm7452_vm11, %v7451_v54, %v3074_v32  ;;  %v4434_v20 = vpack.c.bf16 %v1725_v59, %v1686_v10  ;;  %4463 = vmatpush1.bf16.msra.mxu1 %v4462_v62  ;;  %v7455_v53 = vunpack.i.l.bf16 %v5860_v38  ;;  %v7473_v32 = vld [vmem:[#allocation36_spill] sm:$0xff] }
 0x7c8   : > { %v1764_v49 = vsel %vm7454_vm1, %v7453_v5, %v4678_v60  ;;  %vm7456_vm6 = vcmask 801792   ;;  %v4688_v15 = vunpack.i.h.bf16 %v5866_v39  ;;  %v4693_v58 = vunpack.i.h.bf16 %v5868_v43  ;;  %4464 = vmatprep.subr.bf16.mxu1 %v5187_v12  ;;  %v7487_v5 = vld [vmem:[#allocation19_spill] sm:$0xff] }
 0x7c9   : > { %v1803_v27 = vsel %vm7456_vm6, %v7455_v53, %v4683_v50  ;;  %v4436_v19 = vpack.c.bf16 %v2440_v33, %v2400_v29  ;;  %vm7457_vm5 = vcmask 318464   ;;  %vm7458_vm12 = vcmask 310272   ;;  %4435 = vmatpush3.bf16.msra.mxu0 %v4434_v20  ;;  %v2634_v2 = vpop.permute.xlu1 %2633 }
 0x7ca   : > { %v2480_v3 = vsel %vm7457_vm5, %v7319_v34, %v2474_v25  ;;  %v2520_v37 = vsel %vm7458_vm12, %v7320_v7, %v2514_v30  ;;  %v4465_v47 = vpack.c.bf16 %v3079_v57, %v3040_v45  ;;  %vm7460_vm2 = vcmask 719872   ;;  %v7485_v45 = vld [vmem:[#allocation18_spill] sm:$0xff] }
 0x7cb   : > { %v3119_v38 = vsel %vm7460_vm2, %v7459_v61, %v3113_v40  ;;  %4437 = vmatprep.subr.bf16.mxu0 %v4436_v19  ;;  %vm7462_vm3 = vcmask 711680   ;;  %v4698_v46 = vunpack.i.h.bf16 %v5875_v48  ;;  %v4438_v21 = vpack.c.bf16 %v1803_v27, %v1764_v49  ;;  %v7489_v19 = vld [vmem:[#allocation82_spill] sm:$0xff] }
 0x7cc   : > { %v3159_v16 = vsel %vm7462_vm3, %v7461_v26, %v3153_v13  ;;  %4466 = vmatpush1.bf16.msra.mxu1 %v4465_v47  ;;  %v7463_v34 = vunpack.i.l.bf16 %v5866_v39  ;;  %vm7464_vm0 = vcmask 793600   ;;  %v7465_v7 = vunpack.i.l.bf16 %v5868_v43  ;;  %v2674_v39 = vpop.permute.xlu0 %2673 }
 0x7cd   : > { %v4468_v1 = vpack.c.bf16 %v3159_v16, %v3119_v38  ;;  %vm7466_vm4 = vcmask 785408   ;;  %v4703_v44 = vunpack.i.h.bf16 %v5877_v4  ;;  %v4440_v22 = vpack.c.bf16 %v2520_v37, %v2480_v3  ;;  %4467 = vmatprep.subr.bf16.mxu1 %v5187_v12  ;;  %4439 = vmatpush3.bf16.msra.mxu0 %v4438_v21  ;;  %v3193_v63 = vpop.permute.xlu1 %3192 }
 0x7ce   : > { %v1843_v25 = vsel %vm7464_vm0, %v7463_v34, %v4688_v15  ;;  %v1883_v30 = vsel %vm7466_vm4, %v7465_v7, %v4693_v58  ;;  %vm7467_vm10 = vcmask 130048   ;;  %vm7468_vm14 = vcmask 121856   ;;  %v5125_v15 = vld [vmem:[#allocation3] sm:$0xff] }
 0x7cf   : > { %v2560_v51 = vsel %vm7467_vm10, %v7321_v9, %v2554_v17  ;;  %v2600_v6 = vsel %vm7468_vm14, %v7322_v11, %v2594_v0  ;;  %4441 = vmatprep.subr.bf16.mxu0 %v4440_v22  ;;  %v7469_v42 = vunpack.i.l.bf16 %v5875_v48  ;;  %vm7470_vm13 = vcmask 777216   ;;  %v7475_v11 = vld [vmem:[#allocation52_spill] sm:$0xff]  ;;  %v7477_v48 = vld [vmem:[#allocation53_spill] sm:$0xff] }
 0x7d0   : > { %v4442_v52 = vpack.c.bf16 %v1883_v30, %v1843_v25  ;;  %4469 = vmatpush1.bf16.msra.mxu1 %v4468_v1  ;;  %v7471_v31 = vunpack.i.l.bf16 %v5877_v4  ;;  %vm7472_vm9 = vcmask 769024   ;;  %v4708_v55 = vunpack.i.h.bf16 %v7473_v32  ;;  %v3233_v10 = vpop.permute.xlu0 %3232 }
 0x7d1   : > { %v1923_v43 = vsel %vm7470_vm13, %v7469_v42, %v4698_v46  ;;  %v4713_v9 = vunpack.i.h.bf16 %v7474_v14  ;;  %v4444_v36 = vpack.c.bf16 %v2600_v6, %v2560_v51  ;;  %4470 = vmatprep.subr.bf16.mxu1 %v5187_v12  ;;  %vm7476_vm11 = vcmask 113664   ;;  %v3273_v35 = vpop.permute.xlu1 %3272 }
 0x7d2   : > { %v1963_v18 = vsel %vm7472_vm9, %v7471_v31, %v4703_v44  ;;  %v2640_v60 = vsel %vm7476_vm11, %v7475_v11, %v2634_v2  ;;  %vm7478_vm1 = vcmask 105472   ;;  %4443 = vmatpush3.bf16.msra.mxu0 %v4442_v52  ;;  %v3199_v4 = vsel %vm3194_vm15, %v7479_v56, %v3193_v63 }
 0x7d3   : > { %v2680_v28 = vsel %vm7478_vm1, %v7477_v48, %v2674_v39  ;;  %4445 = vmatprep.subr.bf16.mxu0 %v4444_v36  ;;  %v3239_v59 = vsel %vm3234_vm7, %v7480_v23, %v3233_v10  ;;  %v4446_v8 = vpack.c.bf16 %v1963_v18, %v1923_v43  ;;  %v7481_v17 = vunpack.i.l.bf16 %v7473_v32 }
 0x7d4   : > { %v4471_v50 = vpack.c.bf16 %v3239_v59, %v3199_v4  ;;  %vm7482_vm6 = vcmask 588800   ;;  %v7483_v33 = vunpack.i.l.bf16 %v7474_v14  ;;  %vm7484_vm5 = vcmask 580608   ;;  %v3313_v57 = vpop.permute.xlu0 %3312 }
 0x7d5   : > { %v2002_v29 = vsel %vm7482_vm6, %v7481_v17, %v4708_v55  ;;  %v4448_v0 = vpack.c.bf16 %v2680_v28, %v2640_v60  ;;  %vm7486_vm15 = vcmask 687104   ;;  %vm7488_vm7 = vcmask 678912   ;;  %v3353_v27 = vpop.permute.xlu1 %3352 }
 0x7d6   : > { %v2041_v62 = vsel %vm7484_vm5, %v7483_v33, %v4713_v9  ;;  %4447 = vmatpush3.bf16.msra.mxu0 %v4446_v8  ;;  %v3279_v54 = vsel %vm7486_vm15, %v7485_v45, %v3273_v35  ;;  %4472 = vmatpush1.bf16.msra.mxu1 %v4471_v50  ;;  %v3319_v49 = vsel %vm7488_vm7, %v7487_v5, %v3313_v57 }
 0x7d7   : > { %4449 = vmatprep.subr.bf16.mxu0 %v4448_v0  ;;  %4473 = vmatprep.subr.bf16.mxu1 %v5187_v12  ;;  %v4474_v20 = vpack.c.bf16 %v3319_v49, %v3279_v54  ;;  %v4450_v53 = vpack.c.bf16 %v2041_v62, %v2002_v29  ;;  %v3359_v58 = vsel %vm3354_vm8, %v7403_v41, %v3353_v27 }
 0x7da   : > { %4451 = vmatpush3.bf16.msra.mxu0 %v4450_v53  ;;  %4475 = vmatpush1.bf16.msra.mxu1 %v4474_v20 }
 0x7db   : > { %4015 = vmatprep.subr.mxu1 %v5125_v15 }
 0x7dd   : > { %3978 = vmatmul.mubr.f32.vlgmr.msra.gmra.mrb[6].mxu0 %v7489_v19 }
 0x7de   : > { %4016 = vmatpush1.msra.mxu1 %v3359_v58 }
 0x7df   : > { %4048 = vmatmul.mubr.f32.vlgmr.msra.gmra.mrb[6].mxu1 %v6703_v24 }
 0x7e1   : > { %v3623_v40 = vpop.permute.xlu0 %3622 }
 0x88c   : > { %v3908_v12 = vpop.f32.mrb[4].mxu1 }
 0x88d   : > { %v4478_v3 = vadd.f32 %v3908_v12, %v3623_v40  ;;  %v3910_v37 = vpop.f32.mrb[5].mxu1 }
 0x88e   : > { %v4479_v61 = vadd.f32 %v3910_v37, %v3623_v40 }
 0x88f   : > { %v3766_v47 = vpop.f32.mrb[4].mxu0  ;;  %4055 = vst [vmem:[%s359_s30 + $0x10] sm:$0xff] %v4478_v3 }
 0x890   : > { %v4476_v38 = vadd.f32 %v3766_v47, %v3623_v40  ;;  %v3768_v13 = vpop.f32.mrb[5].mxu0  ;;  %4056 = vst [vmem:[%s359_s30 + $0x18] sm:$0xff] %v4479_v61 }
 0x891   : > { %v4477_v41 = vadd.f32 %v3768_v13, %v3623_v40 }
 0x892   : > { %4053 = vst [vmem:[%s359_s30] sm:$0xff] %v4476_v38 }
 0x893   : > { %4054 = vst [vmem:[%s359_s30 + $0x8] sm:$0xff] %v4477_v41 }
 0x8b0   : > { %v4161_v26 = vpop.f32.mrb[6].mxu0 }
 0x8b1   : > { %v4162_v24 = vpop.f32.mrb[7].mxu0 }
 0x8b2   : > { %v4163_v16 = vadd.f32 %v4162_v24, %v4161_v26  ;;  %v4049_v46 = vpop.f32.mrb[6].mxu1 }
 0x8b3   : > { %v4051_v1 = vpop.f32.mrb[7].mxu1 }
 0x8b4   : > { %v3980_v21 = vadd.f32 %v4163_v16, %v3623_v40 }
 0x8b6   : > { %v4050_v34 = vadd.f32 %v4049_v46, %v3980_v21 }
 0x8b8   : > { %4057 = vst [vmem:[%s359_s30 + $0x20] sm:$0xff] %v4050_v34 }
 0x8b9 PF: > { %s7492_s14 = sld [smem:[#allocation6_spill]] }
 0x8bf   : > { %s20_s13 = sadd.s32 1, %s7492_s14  }
 0x8c0   : > { %p17_p4 = scmp.ge.s32.totalorder %s20_s13, 4  }
 0x8c2   :  { %19 = sbr.rel (!%p17_p4) target bundleno = 10 (0xa), region = 90 }

</bundles_post_ra>
